<compile_context>
chip_gen: v6e
topology: v6e:2x2x1
jax: 0.10.0
libtpu: 0.0.40
codegen_flags: <defaults>
</compile_context>

<pallas_src>
import jax
import jax.numpy as jnp
from jax.experimental import pallas as pl
from jax.experimental.pallas import tpu as pltpu


def _round_up(x, m):
    return ((x + m - 1) // m) * m


# -----------------------------------------------------------------------------
# Fused matmul kernel:
#   out[g] = post_act( pre_act(A[g] * scale_k + shift_k) @ B[g] + bias )
# -----------------------------------------------------------------------------
def _make_mm_kernel(has_affine, has_bias, pre_act, post_act):
    def kernel(*refs):
        idx = 0
        a_ref = refs[idx]; idx += 1
        b_ref = refs[idx]; idx += 1
        if has_affine:
            scale_ref, shift_ref = refs[idx], refs[idx + 1]; idx += 2
        if has_bias:
            bias_ref = refs[idx]; idx += 1
        o_ref, acc_ref = refs[idx], refs[idx + 1]

        k = pl.program_id(3)

        @pl.when(k == 0)
        def _init():
            acc_ref[...] = jnp.zeros_like(acc_ref)

        if has_affine:
            # Deferred BatchNorm of the producing layer: per-K-column scale/shift
            # (channel value repeated per tap).  Done in f32 for accuracy.
            av = a_ref[...].astype(jnp.float32) * scale_ref[...] + shift_ref[...]
        else:
            av = a_ref[...]                      # stay in bf16 (v6e/v7x VPU path)
        if pre_act == "lrelu":
            av = jnp.where(av > 0, av, av * 0.2)
        elif pre_act == "relu":
            av = jnp.maximum(av, 0)
        elif pre_act != "none":
            raise ValueError(pre_act)
        av = av.astype(jnp.bfloat16)

        acc_ref[...] += jnp.dot(av, b_ref[...], preferred_element_type=jnp.float32)

        @pl.when(k == pl.num_programs(3) - 1)
        def _finalize():
            r = acc_ref[...]
            if has_bias:
                r = r + bias_ref[...]
            if post_act == "relu":
                r = jnp.maximum(r, 0.0)
            elif post_act == "tanh":
                r = jnp.tanh(r)
            elif post_act != "none":
                raise ValueError(post_act)
            o_ref[...] = r.astype(o_ref.dtype)

    return kernel


def matmul_fused(a, b, bias=None, *, scale=None, shift=None,
                 pre_act="none", post_act="none", out_dtype=jnp.float32):
    """Batched (G,M,K) @ (G,K,N) with fused prologue affine+activation, bias and
    epilogue activation.  Operands are bf16 on the MXU with f32 accumulation;
    M/N/K are zero-padded to tile multiples and the padding is sliced off."""
    G, M, K = a.shape
    N = b.shape[2]

    tm = 512 if M > 512 else _round_up(M, 16)          # 16 = bf16 sublane minimum
    tn = min(_round_up(N, 128), 512)                    # one tile covers full N
    tk = 1024 if K > 1024 else _round_up(K, 128)
    Mp, Np, Kp = _round_up(M, tm), _round_up(N, tn), _round_up(K, tk)

    a = a.astype(jnp.bfloat16)
    b = b.astype(jnp.bfloat16)
    if (Mp, Kp) != (M, K):
        a = jnp.pad(a, ((0, 0), (0, Mp - M), (0, Kp - K)))
    if (Kp, Np) != (K, N):
        b = jnp.pad(b, ((0, 0), (0, Kp - K), (0, Np - N)))

    grid = (G, Mp // tm, Np // tn, Kp // tk)
    in_specs = [
        pl.BlockSpec((None, tm, tk), lambda g, i, j, k: (g, i, k)),
        pl.BlockSpec((None, tk, tn), lambda g, i, j, k: (g, k, j)),
    ]
    args = [a, b]

    has_affine = scale is not None
    if has_affine:
        sc = scale.astype(jnp.float32).reshape(1, K)
        sh = shift.astype(jnp.float32).reshape(1, K)
        if Kp != K:   # zero-padded columns hit zero B rows -> contribution is 0
            sc = jnp.pad(sc, ((0, 0), (0, Kp - K)))
            sh = jnp.pad(sh, ((0, 0), (0, Kp - K)))
        in_specs += [pl.BlockSpec((1, tk), lambda g, i, j, k: (0, k)),
                     pl.BlockSpec((1, tk), lambda g, i, j, k: (0, k))]
        args += [sc, sh]

    has_bias = bias is not None
    if has_bias:
        bz = bias.astype(jnp.float32).reshape(1, N)
        if Np != N:
            bz = jnp.pad(bz, ((0, 0), (0, Np - N)))
        in_specs.append(pl.BlockSpec((1, tn), lambda g, i, j, k: (0, j)))
        args.append(bz)

    out = pl.pallas_call(
        _make_mm_kernel(has_affine, has_bias, pre_act, post_act),
        out_shape=jax.ShapeDtypeStruct((G, Mp, Np), out_dtype),
        grid=grid,
        in_specs=in_specs,
        out_specs=pl.BlockSpec((None, tm, tn), lambda g, i, j, k: (g, i, j)),
        scratch_shapes=[pltpu.VMEM((tm, tn), jnp.float32)],
        compiler_params=pltpu.CompilerParams(
            dimension_semantics=("parallel", "parallel", "parallel", "arbitrary"),
            # double-buffered working set at (512,512,1024) is ~7 MiB; 32 MiB
            # leaves headroom on every generation (v7x physical VMEM is 64 MiB).
            vmem_limit_bytes=32 * 1024 * 1024,
        ),
    )(*args)
    return out[:, :M, :N]


# -----------------------------------------------------------------------------
# BatchNorm2d (training-mode) folded to per-channel (scale, shift).
# Single Pallas reduction pass on a lane-dense (n*h, w*c) layout; the normalize
# is applied later in the consumer conv's prologue.
# -----------------------------------------------------------------------------
def _bn_stats_kernel(x_ref, stats_ref):
    @pl.when(pl.program_id(0) == 0)
    def _():
        stats_ref[...] = jnp.zeros_like(stats_ref)

    x = x_ref[...].astype(jnp.float32)
    stats_ref[0:1, :] += jnp.sum(x, axis=0, keepdims=True)
    stats_ref[1:2, :] += jnp.sum(x * x, axis=0, keepdims=True)


def bn_affine(x, gamma, beta, *, eps=1e-5):
    """Return (scale, shift) such that BN(x)[..., c] == x[..., c]*scale[c]+shift[c]
    with training-mode batch statistics (biased variance, eps=1e-5)."""
    n, h, w, c = x.shape
    rows, lanes = n * h, w * c
    xf = x.reshape(rows, lanes)

    bytes_per_row = lanes * xf.dtype.itemsize
    cap = max(16, ((2 << 20) // max(bytes_per_row, 1)) // 16 * 16)
    tm = min(_round_up(rows, 16), cap)
    rp = _round_up(rows, tm)
    if rp != rows:
        xf = jnp.pad(xf, ((0, rp - rows), (0, 0)))     # zero rows: no effect on sums

    stats = pl.pallas_call(
        _bn_stats_kernel,
        out_shape=jax.ShapeDtypeStruct((8, lanes), jnp.float32),
        grid=(rp // tm,),
        in_specs=[pl.BlockSpec((tm, lanes), lambda i: (i, 0))],
        out_specs=pl.BlockSpec((8, lanes), lambda i: (0, 0)),
        compiler_params=pltpu.CompilerParams(dimension_semantics=("arbitrary",)),
    )(xf)

    s = stats[:2].reshape(2, w, c).sum(axis=1)          # tiny XLA fold over w
    count = float(n * h * w)
    mean = s[0] / count
    var = s[1] / count - mean * mean                    # biased variance (train mode)
    scale = gamma.astype(jnp.float32) * jax.lax.rsqrt(var + eps)
    shift = beta.astype(jnp.float32) - mean * scale
    return scale, shift


def _identity_affine(c):
    return jnp.ones((c,), jnp.float32), jnp.zeros((c,), jnp.float32)


def _concat_affine(aff_a, ca, aff_b, cb):
    sa, ha = aff_a if aff_a is not None else _identity_affine(ca)
    sb, hb = aff_b if aff_b is not None else _identity_affine(cb)
    return jnp.concatenate([sa, sb]), jnp.concatenate([ha, hb])


def _expand_affine(scale_c, shift_c, taps):
    if scale_c is None:
        return None, None
    return jnp.tile(scale_c, taps), jnp.tile(shift_c, taps)


# -----------------------------------------------------------------------------
# Convolutions via (reduced-duplication) im2col + fused Pallas matmul
# -----------------------------------------------------------------------------
def conv_down(x, w, *, scale=None, shift=None, pre_act="none", post_act="none",
              out_dtype=jnp.bfloat16):
    """Conv2d(Cin->Cout, k=4, s=2, p=1, bias=False). x: NHWC, w: (Cout,Cin,4,4).
    Expressed as a dense 2x2-tap conv over the 4 input parity planes so the
    im2col buffer duplicates data only 4x (not 16x)."""
    n, h, wd, cin = x.shape
    cout = w.shape[0]
    ho, wo = h // 2, wd // 2
    xp = jnp.pad(x.astype(jnp.bfloat16), ((0, 0), (1, 1), (1, 1), (0, 0)))
    # parity planes: p4[n, Y, X, (p,q,c)] = xp[n, 2Y+p, 2X+q, c]
    p4 = xp.reshape(n, ho + 1, 2, wo + 1, 2, cin)
    p4 = jnp.transpose(p4, (0, 1, 3, 2, 4, 5)).reshape(n, ho + 1, wo + 1, 4 * cin)
    cols = [p4[:, a:a + ho, b:b + wo, :] for a in (0, 1) for b in (0, 1)]
    a_mat = jnp.stack(cols, axis=3).reshape(1, n * ho * wo, 16 * cin)  # K=(a,b,p,q,c)
    # weight reindexed to the same K layout: wk[(a,b,p,q,c), o] = w[o,c,2a+p,2b+q]
    wk = jnp.transpose(w, (2, 3, 1, 0)).reshape(2, 2, 2, 2, cin, cout)  # (a,p,b,q,c,o)
    wk = jnp.transpose(wk, (0, 2, 1, 3, 4, 5)).reshape(1, 16 * cin, cout)
    sk, hk = _expand_affine(scale, shift, 16)
    out = matmul_fused(a_mat, wk, None, scale=sk, shift=hk,
                       pre_act=pre_act, post_act=post_act, out_dtype=out_dtype)
    return out.reshape(n, ho, wo, cout)


def conv_up(x, w, bias=None, *, scale=None, shift=None, pre_act="none",
            post_act="none", out_dtype=jnp.bfloat16):
    """ConvTranspose2d(Cin->Cout, k=4, s=2, p=1) via 4 output-parity
    sub-convolutions.  x: NHWC, w: PyTorch layout (Cin,Cout,4,4)."""
    n, h, wd, cin = x.shape
    cout = w.shape[1]
    xp = jnp.pad(x.astype(jnp.bfloat16), ((0, 0), (1, 1), (1, 1), (0, 0)))
    a_list, w_list = [], []
    for dy in (0, 1):
        for dx in (0, 1):
            patches, taps = [], []
            for p in (0, 1):
                for q in (0, 1):
                    patches.append(xp[:, dy + p:dy + p + h, dx + q:dx + q + wd, :])
                    taps.append(w[:, :, (3 - dy) - 2 * p, (3 - dx) - 2 * q])
            a_list.append(jnp.stack(patches, axis=3).reshape(n * h * wd, 4 * cin))
            w_list.append(jnp.stack(taps, axis=0).reshape(4 * cin, cout))
    a_mat = jnp.stack(a_list, axis=0)      # (4, M, 4*Cin), K order (p,q,c)
    wm = jnp.stack(w_list, axis=0)         # (4, 4*Cin, Cout)
    sk, hk = _expand_affine(scale, shift, 4)
    out = matmul_fused(a_mat, wm, bias, scale=sk, shift=hk,
                       pre_act=pre_act, post_act=post_act, out_dtype=out_dtype)
    # interleave the 4 output phases: g = dy*2 + dx
    out = out.reshape(2, 2, n, h, wd, cout)
    out = jnp.transpose(out, (2, 3, 0, 4, 1, 5)).reshape(n, 2 * h, 2 * wd, cout)
    return out


# -----------------------------------------------------------------------------
# U-Net structure (mirrors UnetSkipConnectionBlock / UnetGenerator).
# Activations flow as (tensor, pending_affine) where pending_affine is the
# producing layer's deferred BatchNorm (applied in the consumer conv prologue).
# -----------------------------------------------------------------------------
def block_forward(p, x, aff):
    kind = p["kind"]
    if kind == "outermost":
        # down = [downconv]; up = [uprelu, upconv, tanh]
        h = conv_down(x, p["down_w"], pre_act="none", post_act="none")
        h, h_aff = block_forward(p["sub"], h, None)
        sc, sh = h_aff
        return conv_up(h, p["up_w"], p["up_b"], scale=sc, shift=sh,
                       pre_act="relu", post_act="tanh", out_dtype=jnp.float32)

    sc, sh = aff if aff is not None else (None, None)
    if kind == "innermost":
        # down = [downrelu, downconv]; up = [uprelu, upconv, upnorm]
        h = conv_down(x, p["down_w"], scale=sc, shift=sh,
                      pre_act="lrelu", post_act="relu")
        u = conv_up(h, p["up_w"], None, pre_act="none", post_act="none")
        u_aff = bn_affine(u, p["up_gamma"], p["up_beta"])
        cat = jnp.concatenate([x, u], axis=-1)
        return cat, _concat_affine(aff, x.shape[-1], u_aff, u.shape[-1])

    # middle: down=[downrelu, downconv, downnorm]; up=[uprelu, upconv, upnorm]
    h = conv_down(x, p["down_w"], scale=sc, shift=sh, pre_act="lrelu")
    d_aff = bn_affine(h, p["down_gamma"], p["down_beta"])
    s, s_aff = block_forward(p["sub"], h, d_aff)
    ssc, ssh = s_aff
    u = conv_up(s, p["up_w"], None, scale=ssc, shift=ssh, pre_act="relu")
    u_aff = bn_affine(u, p["up_gamma"], p["up_beta"])
    cat = jnp.concatenate([x, u], axis=-1)
    return cat, _concat_affine(aff, x.shape[-1], u_aff, u.shape[-1])


def build_unet_params(key, input_nc, output_nc, num_downs, ngf):
    keys = iter(jax.random.split(key, 256))

    def conv_w(cin, cout):   # Conv2d weight (Cout,Cin,4,4)
        return jax.random.normal(next(keys), (cout, cin, 4, 4), jnp.float32) * 0.02

    def convT_w(cin, cout):  # ConvTranspose2d weight (Cin,Cout,4,4)
        return jax.random.normal(next(keys), (cin, cout, 4, 4), jnp.float32) * 0.02

    blk = {
        "kind": "innermost",
        "down_w": conv_w(ngf * 8, ngf * 8),
        "up_w": convT_w(ngf * 8, ngf * 8),
        "up_gamma": jnp.ones((ngf * 8,), jnp.float32),
        "up_beta": jnp.zeros((ngf * 8,), jnp.float32),
    }
    for _ in range(num_downs - 5):
        blk = {
            "kind": "middle",
            "down_w": conv_w(ngf * 8, ngf * 8),
            "down_gamma": jnp.ones((ngf * 8,), jnp.float32),
            "down_beta": jnp.zeros((ngf * 8,), jnp.float32),
            "up_w": convT_w(ngf * 8 * 2, ngf * 8),
            "up_gamma": jnp.ones((ngf * 8,), jnp.float32),
            "up_beta": jnp.zeros((ngf * 8,), jnp.float32),
            "sub": blk,
        }
    for outer, inner in [(ngf * 4, ngf * 8), (ngf * 2, ngf * 4), (ngf, ngf * 2)]:
        blk = {
            "kind": "middle",
            "down_w": conv_w(outer, inner),
            "down_gamma": jnp.ones((inner,), jnp.float32),
            "down_beta": jnp.zeros((inner,), jnp.float32),
            "up_w": convT_w(inner * 2, outer),
            "up_gamma": jnp.ones((outer,), jnp.float32),
            "up_beta": jnp.zeros((outer,), jnp.float32),
            "sub": blk,
        }
    blk = {
        "kind": "outermost",
        "down_w": conv_w(input_nc, ngf),
        "up_w": convT_w(ngf * 2, output_nc),
        "up_b": jax.random.normal(next(keys), (output_nc,), jnp.float32) * 0.02,
        "sub": blk,
    }
    return blk


def unet_generator_forward(params, x_nchw):
    """Matches UnetGenerator.forward: NCHW in, NCHW out."""
    x = jnp.transpose(x_nchw, (0, 2, 3, 1))     # NCHW -> NHWC
    y = block_forward(params, x, None)
    return jnp.transpose(y, (0, 3, 1, 2))       # NHWC -> NCHW


# -----------------------------------------------------------------------------
if __name__ == "__main__":
    key = jax.random.PRNGKey(0)
    pkey, xkey = jax.random.split(key)

    input_nc, output_nc, num_downs, ngf = 4, 3, 5, 8
    # num_downs=5 is the module's minimum; spatial size must be 2**num_downs.
    x = jax.random.normal(xkey, (2, input_nc, 32, 32), jnp.float32)  # NCHW

    params = build_unet_params(pkey, input_nc, output_nc, num_downs, ngf)
    fwd = jax.jit(lambda inp: unet_generator_forward(params, inp))
    y = jax.block_until_ready(fwd(x))

    assert y.shape == (2, output_nc, 32, 32), y.shape
    assert bool(jnp.all(jnp.isfinite(y)))
    print("KERNEL_OK")
</pallas_src>

<mosaic_0001>
module attributes {stable_mosaic.version = 11 : i64} {
  func.func @kernel(%arg0: i32, %arg1: i32, %arg2: i32, %arg3: i32, %arg4: memref<1x512x128xbf16, #tpu.memory_space<vmem>>, %arg5: memref<1x128x128xbf16, #tpu.memory_space<vmem>>, %arg6: memref<1x512x128xbf16, #tpu.memory_space<vmem>>, %arg7: memref<512x128xf32, #tpu.memory_space<vmem>>) attributes {dimension_semantics = [#tpu.dimension_semantics<parallel>, #tpu.dimension_semantics<parallel>, #tpu.dimension_semantics<parallel>, #tpu.dimension_semantics<arbitrary>], iteration_bounds = array<i64: 1, 1, 1, 1>, scalar_prefetch = 0 : i64, scratch_operands = 1 : i64, tpu.core_type = #tpu.core_type<tc>, window_params = [{transform_indices = @transform_0, window_bounds = array<i64: 1, 512, 128>}, {transform_indices = @transform_1, window_bounds = array<i64: 1, 128, 128>}, {transform_indices = @transform_2, window_bounds = array<i64: 1, 512, 128>}]} {
    %c0_i32 = arith.constant 0 : i32
    %0 = arith.cmpi eq, %arg3, %c0_i32 : i32
    %1 = arith.extui %0 : i1 to i32
    %c0_i32_0 = arith.constant 0 : i32
    %2 = arith.cmpi ne, %1, %c0_i32_0 : i32
    scf.if %2 {
      %cst_12 = arith.constant 0.000000e+00 : f32
      %14 = vector.broadcast %cst_12 : f32 to vector<512x128xf32>
      %c0_13 = arith.constant 0 : index
      %c0_14 = arith.constant 0 : index
      %15 = vector.load %arg7[%c0_13, %c0_14] : memref<512x128xf32, #tpu.memory_space<vmem>>, vector<512x128xf32>
      tpu.vector_store %arg7[%c0_13, %c0_14], %14 {strides = array<i32>} : memref<512x128xf32, #tpu.memory_space<vmem>>, vector<512x128xf32>,
    } else {
    }
    %c0 = arith.constant 0 : index
    %c0_1 = arith.constant 0 : index
    %c0_2 = arith.constant 0 : index
    %3 = vector.load %arg4[%c0, %c0_1, %c0_2] : memref<1x512x128xbf16, #tpu.memory_space<vmem>>, vector<1x512x128xbf16>
    %4 = vector.shape_cast %3 : vector<1x512x128xbf16> to vector<512x128xbf16>
    %c0_3 = arith.constant 0 : index
    %c0_4 = arith.constant 0 : index
    %5 = vector.load %arg7[%c0_3, %c0_4] : memref<512x128xf32, #tpu.memory_space<vmem>>, vector<512x128xf32>
    %c0_5 = arith.constant 0 : index
    %c0_6 = arith.constant 0 : index
    %c0_7 = arith.constant 0 : index
    %6 = vector.load %arg5[%c0_5, %c0_6, %c0_7] : memref<1x128x128xbf16, #tpu.memory_space<vmem>>, vector<1x128x128xbf16>
    %7 = vector.shape_cast %6 : vector<1x128x128xbf16> to vector<128x128xbf16>
    %cst = arith.constant dense<0.000000e+00> : vector<512x128xf32>
    %8 = tpu.matmul %4, %7, %cst {dimension_numbers = #tpu.dot_dimension_numbers<[1], [0], [0], [1], [0, 0, 1, 1], [], []>} : vector<512x128xbf16>, vector<128x128xbf16>, vector<512x128xf32> -> vector<512x128xf32>
    %9 = arith.addf %5, %8 : vector<512x128xf32>
    %c0_8 = arith.constant 0 : index
    %c0_9 = arith.constant 0 : index
    %10 = vector.load %arg7[%c0_8, %c0_9] : memref<512x128xf32, #tpu.memory_space<vmem>>, vector<512x128xf32>
    tpu.vector_store %arg7[%c0_8, %c0_9], %9 {strides = array<i32>} : memref<512x128xf32, #tpu.memory_space<vmem>>, vector<512x128xf32>,
    %c0_i32_10 = arith.constant 0 : i32
    %11 = arith.cmpi eq, %arg3, %c0_i32_10 : i32
    %12 = arith.extui %11 : i1 to i32
    %c0_i32_11 = arith.constant 0 : i32
    %13 = arith.cmpi ne, %12, %c0_i32_11 : i32
    scf.if %13 {
      %c0_12 = arith.constant 0 : index
      %c0_13 = arith.constant 0 : index
      %14 = vector.load %arg7[%c0_12, %c0_13] : memref<512x128xf32, #tpu.memory_space<vmem>>, vector<512x128xf32>
      %15 = arith.truncf %14 : vector<512x128xf32> to vector<512x128xbf16>
      %c0_14 = arith.constant 0 : index
      %c0_15 = arith.constant 0 : index
      %c0_16 = arith.constant 0 : index
      %16 = vector.load %arg6[%c0_14, %c0_15, %c0_16] : memref<1x512x128xbf16, #tpu.memory_space<vmem>>, vector<1x512x128xbf16>
      %17 = vector.shape_cast %16 : vector<1x512x128xbf16> to vector<512x128xbf16>
      %18 = vector.shape_cast %15 : vector<512x128xbf16> to vector<1x512x128xbf16>
      tpu.vector_store %arg6[%c0_14, %c0_15, %c0_16], %18 {strides = array<i32>} : memref<1x512x128xbf16, #tpu.memory_space<vmem>>, vector<1x512x128xbf16>,
    } else {
    }
    return
  }
  func.func @transform_0(%arg0: i32, %arg1: i32, %arg2: i32, %arg3: i32) -> (i32, i32, i32) {
    %c0_i32 = arith.constant 0 : i32
    return %arg0, %arg1, %arg3 : i32, i32, i32
  }
  func.func @transform_1(%arg0: i32, %arg1: i32, %arg2: i32, %arg3: i32) -> (i32, i32, i32) {
    %c0_i32 = arith.constant 0 : i32
    return %arg0, %arg3, %arg2 : i32, i32, i32
  }
  func.func @transform_2(%arg0: i32, %arg1: i32, %arg2: i32, %arg3: i32) -> (i32, i32, i32) {
    %c0_i32 = arith.constant 0 : i32
    return %arg0, %arg1, %arg2 : i32, i32, i32
  }
}

module attributes {stable_mosaic.version = 11 : i64} {
  func.func @kernel(%arg0: i32, %arg1: i32, %arg2: i32, %arg3: i32, %arg4: memref<1x128x128xbf16, #tpu.memory_space<vmem>>, %arg5: memref<1x128x128xbf16, #tpu.memory_space<vmem>>, %arg6: memref<1x128x128xbf16, #tpu.memory_space<vmem>>, %arg7: memref<128x128xf32, #tpu.memory_space<vmem>>) attributes {dimension_semantics = [#tpu.dimension_semantics<parallel>, #tpu.dimension_semantics<parallel>, #tpu.dimension_semantics<parallel>, #tpu.dimension_semantics<arbitrary>], iteration_bounds = array<i64: 1, 1, 1, 1>, scalar_prefetch = 0 : i64, scratch_operands = 1 : i64, tpu.core_type = #tpu.core_type<tc>, window_params = [{transform_indices = @transform_0, window_bounds = array<i64: 1, 128, 128>}, {transform_indices = @transform_1, window_bounds = array<i64: 1, 128, 128>}, {transform_indices = @transform_2, window_bounds = array<i64: 1, 128, 128>}]} {
    %c0_i32 = arith.constant 0 : i32
    %0 = arith.cmpi eq, %arg3, %c0_i32 : i32
    %1 = arith.extui %0 : i1 to i32
    %c0_i32_0 = arith.constant 0 : i32
    %2 = arith.cmpi ne, %1, %c0_i32_0 : i32
    scf.if %2 {
      %cst_14 = arith.constant 0.000000e+00 : f32
      %19 = vector.broadcast %cst_14 : f32 to vector<128x128xf32>
      %c0_15 = arith.constant 0 : index
      %c0_16 = arith.constant 0 : index
      %20 = vector.load %arg7[%c0_15, %c0_16] : memref<128x128xf32, #tpu.memory_space<vmem>>, vector<128x128xf32>
      tpu.vector_store %arg7[%c0_15, %c0_16], %19 {strides = array<i32>} : memref<128x128xf32, #tpu.memory_space<vmem>>, vector<128x128xf32>,
    } else {
    }
    %c0 = arith.constant 0 : index
    %c0_1 = arith.constant 0 : index
    %c0_2 = arith.constant 0 : index
    %3 = vector.load %arg4[%c0, %c0_1, %c0_2] : memref<1x128x128xbf16, #tpu.memory_space<vmem>>, vector<1x128x128xbf16>
    %4 = vector.shape_cast %3 : vector<1x128x128xbf16> to vector<128x128xbf16>
    %cst = arith.constant 0.000000e+00 : bf16
    %5 = vector.broadcast %cst : bf16 to vector<128x128xbf16>
    %6 = arith.cmpf ogt, %4, %5 : vector<128x128xbf16>
    %cst_3 = arith.constant 2.001950e-01 : bf16
    %7 = vector.broadcast %cst_3 : bf16 to vector<128x128xbf16>
    %8 = arith.mulf %4, %7 : vector<128x128xbf16>
    %9 = arith.select %6, %4, %8 : vector<128x128xi1>, vector<128x128xbf16>
    %c0_4 = arith.constant 0 : index
    %c0_5 = arith.constant 0 : index
    %10 = vector.load %arg7[%c0_4, %c0_5] : memref<128x128xf32, #tpu.memory_space<vmem>>, vector<128x128xf32>
    %c0_6 = arith.constant 0 : index
    %c0_7 = arith.constant 0 : index
    %c0_8 = arith.constant 0 : index
    %11 = vector.load %arg5[%c0_6, %c0_7, %c0_8] : memref<1x128x128xbf16, #tpu.memory_space<vmem>>, vector<1x128x128xbf16>
    %12 = vector.shape_cast %11 : vector<1x128x128xbf16> to vector<128x128xbf16>
    %cst_9 = arith.constant dense<0.000000e+00> : vector<128x128xf32>
    %13 = tpu.matmul %9, %12, %cst_9 {dimension_numbers = #tpu.dot_dimension_numbers<[1], [0], [0], [1], [0, 0, 1, 1], [], []>} : vector<128x128xbf16>, vector<128x128xbf16>, vector<128x128xf32> -> vector<128x128xf32>
    %14 = arith.addf %10, %13 : vector<128x128xf32>
    %c0_10 = arith.constant 0 : index
    %c0_11 = arith.constant 0 : index
    %15 = vector.load %arg7[%c0_10, %c0_11] : memref<128x128xf32, #tpu.memory_space<vmem>>, vector<128x128xf32>
    tpu.vector_store %arg7[%c0_10, %c0_11], %14 {strides = array<i32>} : memref<128x128xf32, #tpu.memory_space<vmem>>, vector<128x128xf32>,
    %c0_i32_12 = arith.constant 0 : i32
    %16 = arith.cmpi eq, %arg3, %c0_i32_12 : i32
    %17 = arith.extui %16 : i1 to i32
    %c0_i32_13 = arith.constant 0 : i32
    %18 = arith.cmpi ne, %17, %c0_i32_13 : i32
    scf.if %18 {
      %c0_14 = arith.constant 0 : index
      %c0_15 = arith.constant 0 : index
      %19 = vector.load %arg7[%c0_14, %c0_15] : memref<128x128xf32, #tpu.memory_space<vmem>>, vector<128x128xf32>
      %20 = arith.truncf %19 : vector<128x128xf32> to vector<128x128xbf16>
      %c0_16 = arith.constant 0 : index
      %c0_17 = arith.constant 0 : index
      %c0_18 = arith.constant 0 : index
      %21 = vector.load %arg6[%c0_16, %c0_17, %c0_18] : memref<1x128x128xbf16, #tpu.memory_space<vmem>>, vector<1x128x128xbf16>
      %22 = vector.shape_cast %21 : vector<1x128x128xbf16> to vector<128x128xbf16>
      %23 = vector.shape_cast %20 : vector<128x128xbf16> to vector<1x128x128xbf16>
      tpu.vector_store %arg6[%c0_16, %c0_17, %c0_18], %23 {strides = array<i32>} : memref<1x128x128xbf16, #tpu.memory_space<vmem>>, vector<1x128x128xbf16>,
    } else {
    }
    return
  }
  func.func @transform_0(%arg0: i32, %arg1: i32, %arg2: i32, %arg3: i32) -> (i32, i32, i32) {
    %c0_i32 = arith.constant 0 : i32
    return %arg0, %arg1, %arg3 : i32, i32, i32
  }
  func.func @transform_1(%arg0: i32, %arg1: i32, %arg2: i32, %arg3: i32) -> (i32, i32, i32) {
    %c0_i32 = arith.constant 0 : i32
    return %arg0, %arg3, %arg2 : i32, i32, i32
  }
  func.func @transform_2(%arg0: i32, %arg1: i32, %arg2: i32, %arg3: i32) -> (i32, i32, i32) {
    %c0_i32 = arith.constant 0 : i32
    return %arg0, %arg1, %arg2 : i32, i32, i32
  }
}

module attributes {stable_mosaic.version = 11 : i64} {
  func.func @_bn_stats_kernel(%arg0: i32, %arg1: memref<16x128xbf16, #tpu.memory_space<vmem>>, %arg2: memref<8x128xf32, #tpu.memory_space<vmem>>) attributes {dimension_semantics = [#tpu.dimension_semantics<arbitrary>], iteration_bounds = array<i64: 1>, scalar_prefetch = 0 : i64, scratch_operands = 0 : i64, tpu.core_type = #tpu.core_type<tc>, window_params = [{transform_indices = @transform_0, window_bounds = array<i64: 16, 128>}, {pipeline_mode = #tpu.pipeline_mode<synchronous>, transform_indices = @transform_1, window_bounds = array<i64: 8, 128>}]} {
    %c0_i32 = arith.constant 0 : i32
    %0 = arith.cmpi eq, %arg0, %c0_i32 : i32
    %1 = arith.extui %0 : i1 to i32
    %c0_i32_0 = arith.constant 0 : i32
    %2 = arith.cmpi ne, %1, %c0_i32_0 : i32
    scf.if %2 {
      %cst_10 = arith.constant 0.000000e+00 : f32
      %16 = vector.broadcast %cst_10 : f32 to vector<8x128xf32>
      %c0_11 = arith.constant 0 : index
      %c0_12 = arith.constant 0 : index
      %17 = vector.load %arg2[%c0_11, %c0_12] : memref<8x128xf32, #tpu.memory_space<vmem>>, vector<8x128xf32>
      tpu.vector_store %arg2[%c0_11, %c0_12], %16 {strides = array<i32>} : memref<8x128xf32, #tpu.memory_space<vmem>>, vector<8x128xf32>,
    } else {
    }
    %c0 = arith.constant 0 : index
    %c0_1 = arith.constant 0 : index
    %3 = vector.load %arg1[%c0, %c0_1] : memref<16x128xbf16, #tpu.memory_space<vmem>>, vector<16x128xbf16>
    %4 = arith.extf %3 : vector<16x128xbf16> to vector<16x128xf32>
    %c0_2 = arith.constant 0 : index
    %c0_3 = arith.constant 0 : index
    %5 = vector.load %arg2[%c0_2, %c0_3] : memref<8x128xf32, #tpu.memory_space<vmem>>, vector<1x128xf32>
    %cst = arith.constant dense<0.000000e+00> : vector<128xf32>
    %6 = vector.multi_reduction <add>, %4, %cst [0] : vector<16x128xf32> to vector<128xf32>
    %7 = vector.shape_cast %6 : vector<128xf32> to vector<1x128xf32>
    %8 = arith.addf %5, %7 : vector<1x128xf32>
    %c0_4 = arith.constant 0 : index
    %c0_5 = arith.constant 0 : index
    %9 = vector.load %arg2[%c0_4, %c0_5] : memref<8x128xf32, #tpu.memory_space<vmem>>, vector<1x128xf32>
    tpu.vector_store %arg2[%c0_4, %c0_5], %8 {strides = array<i32>} : memref<8x128xf32, #tpu.memory_space<vmem>>, vector<1x128xf32>,
    %c1 = arith.constant 1 : index
    %c0_6 = arith.constant 0 : index
    %10 = vector.load %arg2[%c1, %c0_6] : memref<8x128xf32, #tpu.memory_space<vmem>>, vector<1x128xf32>
    %11 = arith.mulf %4, %4 : vector<16x128xf32>
    %cst_7 = arith.constant dense<0.000000e+00> : vector<128xf32>
    %12 = vector.multi_reduction <add>, %11, %cst_7 [0] : vector<16x128xf32> to vector<128xf32>
    %13 = vector.shape_cast %12 : vector<128xf32> to vector<1x128xf32>
    %14 = arith.addf %10, %13 : vector<1x128xf32>
    %c1_8 = arith.constant 1 : index
    %c0_9 = arith.constant 0 : index
    %15 = vector.load %arg2[%c1_8, %c0_9] : memref<8x128xf32, #tpu.memory_space<vmem>>, vector<1x128xf32>
    tpu.vector_store %arg2[%c1_8, %c0_9], %14 {strides = array<i32>} : memref<8x128xf32, #tpu.memory_space<vmem>>, vector<1x128xf32>,
    return
  }
  func.func @transform_0(%arg0: i32) -> (i32, i32) {
    %c0_i32 = arith.constant 0 : i32
    %c0_i32_0 = arith.constant 0 : i32
    return %arg0, %c0_i32 : i32, i32
  }
  func.func @transform_1(%arg0: i32) -> (i32, i32) {
    %c0_i32 = arith.constant 0 : i32
    %c0_i32_0 = arith.constant 0 : i32
    %c0_i32_1 = arith.constant 0 : i32
    return %c0_i32, %c0_i32_0 : i32, i32
  }
}

module attributes {stable_mosaic.version = 11 : i64} {
  func.func @kernel(%arg0: i32, %arg1: i32, %arg2: i32, %arg3: i32, %arg4: memref<1x32x256xbf16, #tpu.memory_space<vmem>>, %arg5: memref<1x256x128xbf16, #tpu.memory_space<vmem>>, %arg6: memref<1x256xf32, #tpu.memory_space<vmem>>, %arg7: memref<1x256xf32, #tpu.memory_space<vmem>>, %arg8: memref<1x32x128xbf16, #tpu.memory_space<vmem>>, %arg9: memref<32x128xf32, #tpu.memory_space<vmem>>) attributes {dimension_semantics = [#tpu.dimension_semantics<parallel>, #tpu.dimension_semantics<parallel>, #tpu.dimension_semantics<parallel>, #tpu.dimension_semantics<arbitrary>], iteration_bounds = array<i64: 1, 1, 1, 1>, scalar_prefetch = 0 : i64, scratch_operands = 1 : i64, tpu.core_type = #tpu.core_type<tc>, window_params = [{transform_indices = @transform_0, window_bounds = array<i64: 1, 32, 256>}, {transform_indices = @transform_1, window_bounds = array<i64: 1, 256, 128>}, {transform_indices = @transform_2, window_bounds = array<i64: 1, 256>}, {transform_indices = @transform_3, window_bounds = array<i64: 1, 256>}, {transform_indices = @transform_4, window_bounds = array<i64: 1, 32, 128>}]} {
    %c0_i32 = arith.constant 0 : i32
    %0 = arith.cmpi eq, %arg3, %c0_i32 : i32
    %1 = arith.extui %0 : i1 to i32
    %c0_i32_0 = arith.constant 0 : i32
    %2 = arith.cmpi ne, %1, %c0_i32_0 : i32
    scf.if %2 {
      %cst_18 = arith.constant 0.000000e+00 : f32
      %27 = vector.broadcast %cst_18 : f32 to vector<32x128xf32>
      %c0_19 = arith.constant 0 : index
      %c0_20 = arith.constant 0 : index
      %28 = vector.load %arg9[%c0_19, %c0_20] : memref<32x128xf32, #tpu.memory_space<vmem>>, vector<32x128xf32>
      tpu.vector_store %arg9[%c0_19, %c0_20], %27 {strides = array<i32>} : memref<32x128xf32, #tpu.memory_space<vmem>>, vector<32x128xf32>,
    } else {
    }
    %c0 = arith.constant 0 : index
    %c0_1 = arith.constant 0 : index
    %c0_2 = arith.constant 0 : index
    %3 = vector.load %arg4[%c0, %c0_1, %c0_2] : memref<1x32x256xbf16, #tpu.memory_space<vmem>>, vector<1x32x256xbf16>
    %4 = vector.shape_cast %3 : vector<1x32x256xbf16> to vector<32x256xbf16>
    %5 = arith.extf %4 : vector<32x256xbf16> to vector<32x256xf32>
    %c0_3 = arith.constant 0 : index
    %c0_4 = arith.constant 0 : index
    %6 = vector.load %arg6[%c0_3, %c0_4] : memref<1x256xf32, #tpu.memory_space<vmem>>, vector<1x256xf32>
    %7 = vector.broadcast %6 : vector<1x256xf32> to vector<32x256xf32>
    %8 = arith.mulf %5, %7 : vector<32x256xf32>
    %c0_5 = arith.constant 0 : index
    %c0_6 = arith.constant 0 : index
    %9 = vector.load %arg7[%c0_5, %c0_6] : memref<1x256xf32, #tpu.memory_space<vmem>>, vector<1x256xf32>
    %10 = vector.broadcast %9 : vector<1x256xf32> to vector<32x256xf32>
    %11 = arith.addf %8, %10 : vector<32x256xf32>
    %cst = arith.constant 0.000000e+00 : f32
    %12 = vector.broadcast %cst : f32 to vector<32x256xf32>
    %13 = arith.cmpf ogt, %11, %12 : vector<32x256xf32>
    %cst_7 = arith.constant 2.000000e-01 : f32
    %14 = vector.broadcast %cst_7 : f32 to vector<32x256xf32>
    %15 = arith.mulf %11, %14 : vector<32x256xf32>
    %16 = arith.select %13, %11, %15 : vector<32x256xi1>, vector<32x256xf32>
    %17 = arith.truncf %16 : vector<32x256xf32> to vector<32x256xbf16>
    %c0_8 = arith.constant 0 : index
    %c0_9 = arith.constant 0 : index
    %18 = vector.load %arg9[%c0_8, %c0_9] : memref<32x128xf32, #tpu.memory_space<vmem>>, vector<32x128xf32>
    %c0_10 = arith.constant 0 : index
    %c0_11 = arith.constant 0 : index
    %c0_12 = arith.constant 0 : index
    %19 = vector.load %arg5[%c0_10, %c0_11, %c0_12] : memref<1x256x128xbf16, #tpu.memory_space<vmem>>, vector<1x256x128xbf16>
    %20 = vector.shape_cast %19 : vector<1x256x128xbf16> to vector<256x128xbf16>
    %cst_13 = arith.constant dense<0.000000e+00> : vector<32x128xf32>
    %21 = tpu.matmul %17, %20, %cst_13 {dimension_numbers = #tpu.dot_dimension_numbers<[1], [0], [0], [1], [0, 0, 1, 1], [], []>} : vector<32x256xbf16>, vector<256x128xbf16>, vector<32x128xf32> -> vector<32x128xf32>
    %22 = arith.addf %18, %21 : vector<32x128xf32>
    %c0_14 = arith.constant 0 : index
    %c0_15 = arith.constant 0 : index
    %23 = vector.load %arg9[%c0_14, %c0_15] : memref<32x128xf32, #tpu.memory_space<vmem>>, vector<32x128xf32>
    tpu.vector_store %arg9[%c0_14, %c0_15], %22 {strides = array<i32>} : memref<32x128xf32, #tpu.memory_space<vmem>>, vector<32x128xf32>,
    %c0_i32_16 = arith.constant 0 : i32
    %24 = arith.cmpi eq, %arg3, %c0_i32_16 : i32
    %25 = arith.extui %24 : i1 to i32
    %c0_i32_17 = arith.constant 0 : i32
    %26 = arith.cmpi ne, %25, %c0_i32_17 : i32
    scf.if %26 {
      %c0_18 = arith.constant 0 : index
      %c0_19 = arith.constant 0 : index
      %27 = vector.load %arg9[%c0_18, %c0_19] : memref<32x128xf32, #tpu.memory_space<vmem>>, vector<32x128xf32>
      %28 = arith.truncf %27 : vector<32x128xf32> to vector<32x128xbf16>
      %c0_20 = arith.constant 0 : index
      %c0_21 = arith.constant 0 : index
      %c0_22 = arith.constant 0 : index
      %29 = vector.load %arg8[%c0_20, %c0_21, %c0_22] : memref<1x32x128xbf16, #tpu.memory_space<vmem>>, vector<1x32x128xbf16>
      %30 = vector.shape_cast %29 : vector<1x32x128xbf16> to vector<32x128xbf16>
      %31 = vector.shape_cast %28 : vector<32x128xbf16> to vector<1x32x128xbf16>
      tpu.vector_store %arg8[%c0_20, %c0_21, %c0_22], %31 {strides = array<i32>} : memref<1x32x128xbf16, #tpu.memory_space<vmem>>, vector<1x32x128xbf16>,
    } else {
    }
    return
  }
  func.func @transform_0(%arg0: i32, %arg1: i32, %arg2: i32, %arg3: i32) -> (i32, i32, i32) {
    %c0_i32 = arith.constant 0 : i32
    return %arg0, %arg1, %arg3 : i32, i32, i32
  }
  func.func @transform_1(%arg0: i32, %arg1: i32, %arg2: i32, %arg3: i32) -> (i32, i32, i32) {
    %c0_i32 = arith.constant 0 : i32
    return %arg0, %arg3, %arg2 : i32, i32, i32
  }
  func.func @transform_2(%arg0: i32, %arg1: i32, %arg2: i32, %arg3: i32) -> (i32, i32) {
    %c0_i32 = arith.constant 0 : i32
    %c0_i32_0 = arith.constant 0 : i32
    return %c0_i32, %arg3 : i32, i32
  }
  func.func @transform_3(%arg0: i32, %arg1: i32, %arg2: i32, %arg3: i32) -> (i32, i32) {
    %c0_i32 = arith.constant 0 : i32
    %c0_i32_0 = arith.constant 0 : i32
    return %c0_i32, %arg3 : i32, i32
  }
  func.func @transform_4(%arg0: i32, %arg1: i32, %arg2: i32, %arg3: i32) -> (i32, i32, i32) {
    %c0_i32 = arith.constant 0 : i32
    return %arg0, %arg1, %arg2 : i32, i32, i32
  }
}

module attributes {stable_mosaic.version = 11 : i64} {
  func.func @kernel(%arg0: i32, %arg1: i32, %arg2: i32, %arg3: i32, %arg4: memref<1x16x512xbf16, #tpu.memory_space<vmem>>, %arg5: memref<1x512x128xbf16, #tpu.memory_space<vmem>>, %arg6: memref<1x512xf32, #tpu.memory_space<vmem>>, %arg7: memref<1x512xf32, #tpu.memory_space<vmem>>, %arg8: memref<1x16x128xbf16, #tpu.memory_space<vmem>>, %arg9: memref<16x128xf32, #tpu.memory_space<vmem>>) attributes {dimension_semantics = [#tpu.dimension_semantics<parallel>, #tpu.dimension_semantics<parallel>, #tpu.dimension_semantics<parallel>, #tpu.dimension_semantics<arbitrary>], iteration_bounds = array<i64: 1, 1, 1, 1>, scalar_prefetch = 0 : i64, scratch_operands = 1 : i64, tpu.core_type = #tpu.core_type<tc>, window_params = [{transform_indices = @transform_0, window_bounds = array<i64: 1, 16, 512>}, {transform_indices = @transform_1, window_bounds = array<i64: 1, 512, 128>}, {transform_indices = @transform_2, window_bounds = array<i64: 1, 512>}, {transform_indices = @transform_3, window_bounds = array<i64: 1, 512>}, {transform_indices = @transform_4, window_bounds = array<i64: 1, 16, 128>}]} {
    %c0_i32 = arith.constant 0 : i32
    %0 = arith.cmpi eq, %arg3, %c0_i32 : i32
    %1 = arith.extui %0 : i1 to i32
    %c0_i32_0 = arith.constant 0 : i32
    %2 = arith.cmpi ne, %1, %c0_i32_0 : i32
    scf.if %2 {
      %cst_18 = arith.constant 0.000000e+00 : f32
      %27 = vector.broadcast %cst_18 : f32 to vector<16x128xf32>
      %c0_19 = arith.constant 0 : index
      %c0_20 = arith.constant 0 : index
      %28 = vector.load %arg9[%c0_19, %c0_20] : memref<16x128xf32, #tpu.memory_space<vmem>>, vector<16x128xf32>
      tpu.vector_store %arg9[%c0_19, %c0_20], %27 {strides = array<i32>} : memref<16x128xf32, #tpu.memory_space<vmem>>, vector<16x128xf32>,
    } else {
    }
    %c0 = arith.constant 0 : index
    %c0_1 = arith.constant 0 : index
    %c0_2 = arith.constant 0 : index
    %3 = vector.load %arg4[%c0, %c0_1, %c0_2] : memref<1x16x512xbf16, #tpu.memory_space<vmem>>, vector<1x16x512xbf16>
    %4 = vector.shape_cast %3 : vector<1x16x512xbf16> to vector<16x512xbf16>
    %5 = arith.extf %4 : vector<16x512xbf16> to vector<16x512xf32>
    %c0_3 = arith.constant 0 : index
    %c0_4 = arith.constant 0 : index
    %6 = vector.load %arg6[%c0_3, %c0_4] : memref<1x512xf32, #tpu.memory_space<vmem>>, vector<1x512xf32>
    %7 = vector.broadcast %6 : vector<1x512xf32> to vector<16x512xf32>
    %8 = arith.mulf %5, %7 : vector<16x512xf32>
    %c0_5 = arith.constant 0 : index
    %c0_6 = arith.constant 0 : index
    %9 = vector.load %arg7[%c0_5, %c0_6] : memref<1x512xf32, #tpu.memory_space<vmem>>, vector<1x512xf32>
    %10 = vector.broadcast %9 : vector<1x512xf32> to vector<16x512xf32>
    %11 = arith.addf %8, %10 : vector<16x512xf32>
    %cst = arith.constant 0.000000e+00 : f32
    %12 = vector.broadcast %cst : f32 to vector<16x512xf32>
    %13 = arith.cmpf ogt, %11, %12 : vector<16x512xf32>
    %cst_7 = arith.constant 2.000000e-01 : f32
    %14 = vector.broadcast %cst_7 : f32 to vector<16x512xf32>
    %15 = arith.mulf %11, %14 : vector<16x512xf32>
    %16 = arith.select %13, %11, %15 : vector<16x512xi1>, vector<16x512xf32>
    %17 = arith.truncf %16 : vector<16x512xf32> to vector<16x512xbf16>
    %c0_8 = arith.constant 0 : index
    %c0_9 = arith.constant 0 : index
    %18 = vector.load %arg9[%c0_8, %c0_9] : memref<16x128xf32, #tpu.memory_space<vmem>>, vector<16x128xf32>
    %c0_10 = arith.constant 0 : index
    %c0_11 = arith.constant 0 : index
    %c0_12 = arith.constant 0 : index
    %19 = vector.load %arg5[%c0_10, %c0_11, %c0_12] : memref<1x512x128xbf16, #tpu.memory_space<vmem>>, vector<1x512x128xbf16>
    %20 = vector.shape_cast %19 : vector<1x512x128xbf16> to vector<512x128xbf16>
    %cst_13 = arith.constant dense<0.000000e+00> : vector<16x128xf32>
    %21 = tpu.matmul %17, %20, %cst_13 {dimension_numbers = #tpu.dot_dimension_numbers<[1], [0], [0], [1], [0, 0, 1, 1], [], []>} : vector<16x512xbf16>, vector<512x128xbf16>, vector<16x128xf32> -> vector<16x128xf32>
    %22 = arith.addf %18, %21 : vector<16x128xf32>
    %c0_14 = arith.constant 0 : index
    %c0_15 = arith.constant 0 : index
    %23 = vector.load %arg9[%c0_14, %c0_15] : memref<16x128xf32, #tpu.memory_space<vmem>>, vector<16x128xf32>
    tpu.vector_store %arg9[%c0_14, %c0_15], %22 {strides = array<i32>} : memref<16x128xf32, #tpu.memory_space<vmem>>, vector<16x128xf32>,
    %c0_i32_16 = arith.constant 0 : i32
    %24 = arith.cmpi eq, %arg3, %c0_i32_16 : i32
    %25 = arith.extui %24 : i1 to i32
    %c0_i32_17 = arith.constant 0 : i32
    %26 = arith.cmpi ne, %25, %c0_i32_17 : i32
    scf.if %26 {
      %c0_18 = arith.constant 0 : index
      %c0_19 = arith.constant 0 : index
      %27 = vector.load %arg9[%c0_18, %c0_19] : memref<16x128xf32, #tpu.memory_space<vmem>>, vector<16x128xf32>
      %28 = arith.truncf %27 : vector<16x128xf32> to vector<16x128xbf16>
      %c0_20 = arith.constant 0 : index
      %c0_21 = arith.constant 0 : index
      %c0_22 = arith.constant 0 : index
      %29 = vector.load %arg8[%c0_20, %c0_21, %c0_22] : memref<1x16x128xbf16, #tpu.memory_space<vmem>>, vector<1x16x128xbf16>
      %30 = vector.shape_cast %29 : vector<1x16x128xbf16> to vector<16x128xbf16>
      %31 = vector.shape_cast %28 : vector<16x128xbf16> to vector<1x16x128xbf16>
      tpu.vector_store %arg8[%c0_20, %c0_21, %c0_22], %31 {strides = array<i32>} : memref<1x16x128xbf16, #tpu.memory_space<vmem>>, vector<1x16x128xbf16>,
    } else {
    }
    return
  }
  func.func @transform_0(%arg0: i32, %arg1: i32, %arg2: i32, %arg3: i32) -> (i32, i32, i32) {
    %c0_i32 = arith.constant 0 : i32
    return %arg0, %arg1, %arg3 : i32, i32, i32
  }
  func.func @transform_1(%arg0: i32, %arg1: i32, %arg2: i32, %arg3: i32) -> (i32, i32, i32) {
    %c0_i32 = arith.constant 0 : i32
    return %arg0, %arg3, %arg2 : i32, i32, i32
  }
  func.func @transform_2(%arg0: i32, %arg1: i32, %arg2: i32, %arg3: i32) -> (i32, i32) {
    %c0_i32 = arith.constant 0 : i32
    %c0_i32_0 = arith.constant 0 : i32
    return %c0_i32, %arg3 : i32, i32
  }
  func.func @transform_3(%arg0: i32, %arg1: i32, %arg2: i32, %arg3: i32) -> (i32, i32) {
    %c0_i32 = arith.constant 0 : i32
    %c0_i32_0 = arith.constant 0 : i32
    return %c0_i32, %arg3 : i32, i32
  }
  func.func @transform_4(%arg0: i32, %arg1: i32, %arg2: i32, %arg3: i32) -> (i32, i32, i32) {
    %c0_i32 = arith.constant 0 : i32
    return %arg0, %arg1, %arg2 : i32, i32, i32
  }
}

module attributes {stable_mosaic.version = 11 : i64} {
  func.func @kernel(%arg0: i32, %arg1: i32, %arg2: i32, %arg3: i32, %arg4: memref<1x16x1024xbf16, #tpu.memory_space<vmem>>, %arg5: memref<1x1024x128xbf16, #tpu.memory_space<vmem>>, %arg6: memref<1x1024xf32, #tpu.memory_space<vmem>>, %arg7: memref<1x1024xf32, #tpu.memory_space<vmem>>, %arg8: memref<1x16x128xbf16, #tpu.memory_space<vmem>>, %arg9: memref<16x128xf32, #tpu.memory_space<vmem>>) attributes {dimension_semantics = [#tpu.dimension_semantics<parallel>, #tpu.dimension_semantics<parallel>, #tpu.dimension_semantics<parallel>, #tpu.dimension_semantics<arbitrary>], iteration_bounds = array<i64: 1, 1, 1, 1>, scalar_prefetch = 0 : i64, scratch_operands = 1 : i64, tpu.core_type = #tpu.core_type<tc>, window_params = [{transform_indices = @transform_0, window_bounds = array<i64: 1, 16, 1024>}, {transform_indices = @transform_1, window_bounds = array<i64: 1, 1024, 128>}, {transform_indices = @transform_2, window_bounds = array<i64: 1, 1024>}, {transform_indices = @transform_3, window_bounds = array<i64: 1, 1024>}, {transform_indices = @transform_4, window_bounds = array<i64: 1, 16, 128>}]} {
    %c0_i32 = arith.constant 0 : i32
    %0 = arith.cmpi eq, %arg3, %c0_i32 : i32
    %1 = arith.extui %0 : i1 to i32
    %c0_i32_0 = arith.constant 0 : i32
    %2 = arith.cmpi ne, %1, %c0_i32_0 : i32
    scf.if %2 {
      %cst_18 = arith.constant 0.000000e+00 : f32
      %27 = vector.broadcast %cst_18 : f32 to vector<16x128xf32>
      %c0_19 = arith.constant 0 : index
      %c0_20 = arith.constant 0 : index
      %28 = vector.load %arg9[%c0_19, %c0_20] : memref<16x128xf32, #tpu.memory_space<vmem>>, vector<16x128xf32>
      tpu.vector_store %arg9[%c0_19, %c0_20], %27 {strides = array<i32>} : memref<16x128xf32, #tpu.memory_space<vmem>>, vector<16x128xf32>,
    } else {
    }
    %c0 = arith.constant 0 : index
    %c0_1 = arith.constant 0 : index
    %c0_2 = arith.constant 0 : index
    %3 = vector.load %arg4[%c0, %c0_1, %c0_2] : memref<1x16x1024xbf16, #tpu.memory_space<vmem>>, vector<1x16x1024xbf16>
    %4 = vector.shape_cast %3 : vector<1x16x1024xbf16> to vector<16x1024xbf16>
    %5 = arith.extf %4 : vector<16x1024xbf16> to vector<16x1024xf32>
    %c0_3 = arith.constant 0 : index
    %c0_4 = arith.constant 0 : index
    %6 = vector.load %arg6[%c0_3, %c0_4] : memref<1x1024xf32, #tpu.memory_space<vmem>>, vector<1x1024xf32>
    %7 = vector.broadcast %6 : vector<1x1024xf32> to vector<16x1024xf32>
    %8 = arith.mulf %5, %7 : vector<16x1024xf32>
    %c0_5 = arith.constant 0 : index
    %c0_6 = arith.constant 0 : index
    %9 = vector.load %arg7[%c0_5, %c0_6] : memref<1x1024xf32, #tpu.memory_space<vmem>>, vector<1x1024xf32>
    %10 = vector.broadcast %9 : vector<1x1024xf32> to vector<16x1024xf32>
    %11 = arith.addf %8, %10 : vector<16x1024xf32>
    %cst = arith.constant 0.000000e+00 : f32
    %12 = vector.broadcast %cst : f32 to vector<16x1024xf32>
    %13 = arith.cmpf ogt, %11, %12 : vector<16x1024xf32>
    %cst_7 = arith.constant 2.000000e-01 : f32
    %14 = vector.broadcast %cst_7 : f32 to vector<16x1024xf32>
    %15 = arith.mulf %11, %14 : vector<16x1024xf32>
    %16 = arith.select %13, %11, %15 : vector<16x1024xi1>, vector<16x1024xf32>
    %17 = arith.truncf %16 : vector<16x1024xf32> to vector<16x1024xbf16>
    %c0_8 = arith.constant 0 : index
    %c0_9 = arith.constant 0 : index
    %18 = vector.load %arg9[%c0_8, %c0_9] : memref<16x128xf32, #tpu.memory_space<vmem>>, vector<16x128xf32>
    %c0_10 = arith.constant 0 : index
    %c0_11 = arith.constant 0 : index
    %c0_12 = arith.constant 0 : index
    %19 = vector.load %arg5[%c0_10, %c0_11, %c0_12] : memref<1x1024x128xbf16, #tpu.memory_space<vmem>>, vector<1x1024x128xbf16>
    %20 = vector.shape_cast %19 : vector<1x1024x128xbf16> to vector<1024x128xbf16>
    %cst_13 = arith.constant dense<0.000000e+00> : vector<16x128xf32>
    %21 = tpu.matmul %17, %20, %cst_13 {dimension_numbers = #tpu.dot_dimension_numbers<[1], [0], [0], [1], [0, 0, 1, 1], [], []>} : vector<16x1024xbf16>, vector<1024x128xbf16>, vector<16x128xf32> -> vector<16x128xf32>
    %22 = arith.addf %18, %21 : vector<16x128xf32>
    %c0_14 = arith.constant 0 : index
    %c0_15 = arith.constant 0 : index
    %23 = vector.load %arg9[%c0_14, %c0_15] : memref<16x128xf32, #tpu.memory_space<vmem>>, vector<16x128xf32>
    tpu.vector_store %arg9[%c0_14, %c0_15], %22 {strides = array<i32>} : memref<16x128xf32, #tpu.memory_space<vmem>>, vector<16x128xf32>,
    %c0_i32_16 = arith.constant 0 : i32
    %24 = arith.cmpi eq, %arg3, %c0_i32_16 : i32
    %25 = arith.extui %24 : i1 to i32
    %c0_i32_17 = arith.constant 0 : i32
    %26 = arith.cmpi ne, %25, %c0_i32_17 : i32
    scf.if %26 {
      %c0_18 = arith.constant 0 : index
      %c0_19 = arith.constant 0 : index
      %27 = vector.load %arg9[%c0_18, %c0_19] : memref<16x128xf32, #tpu.memory_space<vmem>>, vector<16x128xf32>
      %cst_20 = arith.constant 0.000000e+00 : f32
      %28 = vector.broadcast %cst_20 : f32 to vector<16x128xf32>
      %29 = arith.maximumf %27, %28 : vector<16x128xf32>
      %30 = arith.truncf %29 : vector<16x128xf32> to vector<16x128xbf16>
      %c0_21 = arith.constant 0 : index
      %c0_22 = arith.constant 0 : index
      %c0_23 = arith.constant 0 : index
      %31 = vector.load %arg8[%c0_21, %c0_22, %c0_23] : memref<1x16x128xbf16, #tpu.memory_space<vmem>>, vector<1x16x128xbf16>
      %32 = vector.shape_cast %31 : vector<1x16x128xbf16> to vector<16x128xbf16>
      %33 = vector.shape_cast %30 : vector<16x128xbf16> to vector<1x16x128xbf16>
      tpu.vector_store %arg8[%c0_21, %c0_22, %c0_23], %33 {strides = array<i32>} : memref<1x16x128xbf16, #tpu.memory_space<vmem>>, vector<1x16x128xbf16>,
    } else {
    }
    return
  }
  func.func @transform_0(%arg0: i32, %arg1: i32, %arg2: i32, %arg3: i32) -> (i32, i32, i32) {
    %c0_i32 = arith.constant 0 : i32
    return %arg0, %arg1, %arg3 : i32, i32, i32
  }
  func.func @transform_1(%arg0: i32, %arg1: i32, %arg2: i32, %arg3: i32) -> (i32, i32, i32) {
    %c0_i32 = arith.constant 0 : i32
    return %arg0, %arg3, %arg2 : i32, i32, i32
  }
  func.func @transform_2(%arg0: i32, %arg1: i32, %arg2: i32, %arg3: i32) -> (i32, i32) {
    %c0_i32 = arith.constant 0 : i32
    %c0_i32_0 = arith.constant 0 : i32
    return %c0_i32, %arg3 : i32, i32
  }
  func.func @transform_3(%arg0: i32, %arg1: i32, %arg2: i32, %arg3: i32) -> (i32, i32) {
    %c0_i32 = arith.constant 0 : i32
    %c0_i32_0 = arith.constant 0 : i32
    return %c0_i32, %arg3 : i32, i32
  }
  func.func @transform_4(%arg0: i32, %arg1: i32, %arg2: i32, %arg3: i32) -> (i32, i32, i32) {
    %c0_i32 = arith.constant 0 : i32
    return %arg0, %arg1, %arg2 : i32, i32, i32
  }
}

module attributes {stable_mosaic.version = 11 : i64} {
  func.func @kernel(%arg0: i32, %arg1: i32, %arg2: i32, %arg3: i32, %arg4: memref<1x16x256xbf16, #tpu.memory_space<vmem>>, %arg5: memref<1x256x128xbf16, #tpu.memory_space<vmem>>, %arg6: memref<1x16x128xbf16, #tpu.memory_space<vmem>>, %arg7: memref<16x128xf32, #tpu.memory_space<vmem>>) attributes {dimension_semantics = [#tpu.dimension_semantics<parallel>, #tpu.dimension_semantics<parallel>, #tpu.dimension_semantics<parallel>, #tpu.dimension_semantics<arbitrary>], iteration_bounds = array<i64: 4, 1, 1, 1>, scalar_prefetch = 0 : i64, scratch_operands = 1 : i64, tpu.core_type = #tpu.core_type<tc>, window_params = [{transform_indices = @transform_0, window_bounds = array<i64: 1, 16, 256>}, {transform_indices = @transform_1, window_bounds = array<i64: 1, 256, 128>}, {transform_indices = @transform_2, window_bounds = array<i64: 1, 16, 128>}]} {
    %c0_i32 = arith.constant 0 : i32
    %0 = arith.cmpi eq, %arg3, %c0_i32 : i32
    %1 = arith.extui %0 : i1 to i32
    %c0_i32_0 = arith.constant 0 : i32
    %2 = arith.cmpi ne, %1, %c0_i32_0 : i32
    scf.if %2 {
      %cst_12 = arith.constant 0.000000e+00 : f32
      %14 = vector.broadcast %cst_12 : f32 to vector<16x128xf32>
      %c0_13 = arith.constant 0 : index
      %c0_14 = arith.constant 0 : index
      %15 = vector.load %arg7[%c0_13, %c0_14] : memref<16x128xf32, #tpu.memory_space<vmem>>, vector<16x128xf32>
      tpu.vector_store %arg7[%c0_13, %c0_14], %14 {strides = array<i32>} : memref<16x128xf32, #tpu.memory_space<vmem>>, vector<16x128xf32>,
    } else {
    }
    %c0 = arith.constant 0 : index
    %c0_1 = arith.constant 0 : index
    %c0_2 = arith.constant 0 : index
    %3 = vector.load %arg4[%c0, %c0_1, %c0_2] : memref<1x16x256xbf16, #tpu.memory_space<vmem>>, vector<1x16x256xbf16>
    %4 = vector.shape_cast %3 : vector<1x16x256xbf16> to vector<16x256xbf16>
    %c0_3 = arith.constant 0 : index
    %c0_4 = arith.constant 0 : index
    %5 = vector.load %arg7[%c0_3, %c0_4] : memref<16x128xf32, #tpu.memory_space<vmem>>, vector<16x128xf32>
    %c0_5 = arith.constant 0 : index
    %c0_6 = arith.constant 0 : index
    %c0_7 = arith.constant 0 : index
    %6 = vector.load %arg5[%c0_5, %c0_6, %c0_7] : memref<1x256x128xbf16, #tpu.memory_space<vmem>>, vector<1x256x128xbf16>
    %7 = vector.shape_cast %6 : vector<1x256x128xbf16> to vector<256x128xbf16>
    %cst = arith.constant dense<0.000000e+00> : vector<16x128xf32>
    %8 = tpu.matmul %4, %7, %cst {dimension_numbers = #tpu.dot_dimension_numbers<[1], [0], [0], [1], [0, 0, 1, 1], [], []>} : vector<16x256xbf16>, vector<256x128xbf16>, vector<16x128xf32> -> vector<16x128xf32>
    %9 = arith.addf %5, %8 : vector<16x128xf32>
    %c0_8 = arith.constant 0 : index
    %c0_9 = arith.constant 0 : index
    %10 = vector.load %arg7[%c0_8, %c0_9] : memref<16x128xf32, #tpu.memory_space<vmem>>, vector<16x128xf32>
    tpu.vector_store %arg7[%c0_8, %c0_9], %9 {strides = array<i32>} : memref<16x128xf32, #tpu.memory_space<vmem>>, vector<16x128xf32>,
    %c0_i32_10 = arith.constant 0 : i32
    %11 = arith.cmpi eq, %arg3, %c0_i32_10 : i32
    %12 = arith.extui %11 : i1 to i32
    %c0_i32_11 = arith.constant 0 : i32
    %13 = arith.cmpi ne, %12, %c0_i32_11 : i32
    scf.if %13 {
      %c0_12 = arith.constant 0 : index
      %c0_13 = arith.constant 0 : index
      %14 = vector.load %arg7[%c0_12, %c0_13] : memref<16x128xf32, #tpu.memory_space<vmem>>, vector<16x128xf32>
      %15 = arith.truncf %14 : vector<16x128xf32> to vector<16x128xbf16>
      %c0_14 = arith.constant 0 : index
      %c0_15 = arith.constant 0 : index
      %c0_16 = arith.constant 0 : index
      %16 = vector.load %arg6[%c0_14, %c0_15, %c0_16] : memref<1x16x128xbf16, #tpu.memory_space<vmem>>, vector<1x16x128xbf16>
      %17 = vector.shape_cast %16 : vector<1x16x128xbf16> to vector<16x128xbf16>
      %18 = vector.shape_cast %15 : vector<16x128xbf16> to vector<1x16x128xbf16>
      tpu.vector_store %arg6[%c0_14, %c0_15, %c0_16], %18 {strides = array<i32>} : memref<1x16x128xbf16, #tpu.memory_space<vmem>>, vector<1x16x128xbf16>,
    } else {
    }
    return
  }
  func.func @transform_0(%arg0: i32, %arg1: i32, %arg2: i32, %arg3: i32) -> (i32, i32, i32) {
    %c0_i32 = arith.constant 0 : i32
    return %arg0, %arg1, %arg3 : i32, i32, i32
  }
  func.func @transform_1(%arg0: i32, %arg1: i32, %arg2: i32, %arg3: i32) -> (i32, i32, i32) {
    %c0_i32 = arith.constant 0 : i32
    return %arg0, %arg3, %arg2 : i32, i32, i32
  }
  func.func @transform_2(%arg0: i32, %arg1: i32, %arg2: i32, %arg3: i32) -> (i32, i32, i32) {
    %c0_i32 = arith.constant 0 : i32
    return %arg0, %arg1, %arg2 : i32, i32, i32
  }
}

module attributes {stable_mosaic.version = 11 : i64} {
  func.func @kernel(%arg0: i32, %arg1: i32, %arg2: i32, %arg3: i32, %arg4: memref<1x16x512xbf16, #tpu.memory_space<vmem>>, %arg5: memref<1x512x128xbf16, #tpu.memory_space<vmem>>, %arg6: memref<1x512xf32, #tpu.memory_space<vmem>>, %arg7: memref<1x512xf32, #tpu.memory_space<vmem>>, %arg8: memref<1x16x128xbf16, #tpu.memory_space<vmem>>, %arg9: memref<16x128xf32, #tpu.memory_space<vmem>>) attributes {dimension_semantics = [#tpu.dimension_semantics<parallel>, #tpu.dimension_semantics<parallel>, #tpu.dimension_semantics<parallel>, #tpu.dimension_semantics<arbitrary>], iteration_bounds = array<i64: 4, 1, 1, 1>, scalar_prefetch = 0 : i64, scratch_operands = 1 : i64, tpu.core_type = #tpu.core_type<tc>, window_params = [{transform_indices = @transform_0, window_bounds = array<i64: 1, 16, 512>}, {transform_indices = @transform_1, window_bounds = array<i64: 1, 512, 128>}, {transform_indices = @transform_2, window_bounds = array<i64: 1, 512>}, {transform_indices = @transform_3, window_bounds = array<i64: 1, 512>}, {transform_indices = @transform_4, window_bounds = array<i64: 1, 16, 128>}]} {
    %c0_i32 = arith.constant 0 : i32
    %0 = arith.cmpi eq, %arg3, %c0_i32 : i32
    %1 = arith.extui %0 : i1 to i32
    %c0_i32_0 = arith.constant 0 : i32
    %2 = arith.cmpi ne, %1, %c0_i32_0 : i32
    scf.if %2 {
      %cst_17 = arith.constant 0.000000e+00 : f32
      %24 = vector.broadcast %cst_17 : f32 to vector<16x128xf32>
      %c0_18 = arith.constant 0 : index
      %c0_19 = arith.constant 0 : index
      %25 = vector.load %arg9[%c0_18, %c0_19] : memref<16x128xf32, #tpu.memory_space<vmem>>, vector<16x128xf32>
      tpu.vector_store %arg9[%c0_18, %c0_19], %24 {strides = array<i32>} : memref<16x128xf32, #tpu.memory_space<vmem>>, vector<16x128xf32>,
    } else {
    }
    %c0 = arith.constant 0 : index
    %c0_1 = arith.constant 0 : index
    %c0_2 = arith.constant 0 : index
    %3 = vector.load %arg4[%c0, %c0_1, %c0_2] : memref<1x16x512xbf16, #tpu.memory_space<vmem>>, vector<1x16x512xbf16>
    %4 = vector.shape_cast %3 : vector<1x16x512xbf16> to vector<16x512xbf16>
    %5 = arith.extf %4 : vector<16x512xbf16> to vector<16x512xf32>
    %c0_3 = arith.constant 0 : index
    %c0_4 = arith.constant 0 : index
    %6 = vector.load %arg6[%c0_3, %c0_4] : memref<1x512xf32, #tpu.memory_space<vmem>>, vector<1x512xf32>
    %7 = vector.broadcast %6 : vector<1x512xf32> to vector<16x512xf32>
    %8 = arith.mulf %5, %7 : vector<16x512xf32>
    %c0_5 = arith.constant 0 : index
    %c0_6 = arith.constant 0 : index
    %9 = vector.load %arg7[%c0_5, %c0_6] : memref<1x512xf32, #tpu.memory_space<vmem>>, vector<1x512xf32>
    %10 = vector.broadcast %9 : vector<1x512xf32> to vector<16x512xf32>
    %11 = arith.addf %8, %10 : vector<16x512xf32>
    %cst = arith.constant 0.000000e+00 : f32
    %12 = vector.broadcast %cst : f32 to vector<16x512xf32>
    %13 = arith.maximumf %11, %12 : vector<16x512xf32>
    %14 = arith.truncf %13 : vector<16x512xf32> to vector<16x512xbf16>
    %c0_7 = arith.constant 0 : index
    %c0_8 = arith.constant 0 : index
    %15 = vector.load %arg9[%c0_7, %c0_8] : memref<16x128xf32, #tpu.memory_space<vmem>>, vector<16x128xf32>
    %c0_9 = arith.constant 0 : index
    %c0_10 = arith.constant 0 : index
    %c0_11 = arith.constant 0 : index
    %16 = vector.load %arg5[%c0_9, %c0_10, %c0_11] : memref<1x512x128xbf16, #tpu.memory_space<vmem>>, vector<1x512x128xbf16>
    %17 = vector.shape_cast %16 : vector<1x512x128xbf16> to vector<512x128xbf16>
    %cst_12 = arith.constant dense<0.000000e+00> : vector<16x128xf32>
    %18 = tpu.matmul %14, %17, %cst_12 {dimension_numbers = #tpu.dot_dimension_numbers<[1], [0], [0], [1], [0, 0, 1, 1], [], []>} : vector<16x512xbf16>, vector<512x128xbf16>, vector<16x128xf32> -> vector<16x128xf32>
    %19 = arith.addf %15, %18 : vector<16x128xf32>
    %c0_13 = arith.constant 0 : index
    %c0_14 = arith.constant 0 : index
    %20 = vector.load %arg9[%c0_13, %c0_14] : memref<16x128xf32, #tpu.memory_space<vmem>>, vector<16x128xf32>
    tpu.vector_store %arg9[%c0_13, %c0_14], %19 {strides = array<i32>} : memref<16x128xf32, #tpu.memory_space<vmem>>, vector<16x128xf32>,
    %c0_i32_15 = arith.constant 0 : i32
    %21 = arith.cmpi eq, %arg3, %c0_i32_15 : i32
    %22 = arith.extui %21 : i1 to i32
    %c0_i32_16 = arith.constant 0 : i32
    %23 = arith.cmpi ne, %22, %c0_i32_16 : i32
    scf.if %23 {
      %c0_17 = arith.constant 0 : index
      %c0_18 = arith.constant 0 : index
      %24 = vector.load %arg9[%c0_17, %c0_18] : memref<16x128xf32, #tpu.memory_space<vmem>>, vector<16x128xf32>
      %25 = arith.truncf %24 : vector<16x128xf32> to vector<16x128xbf16>
      %c0_19 = arith.constant 0 : index
      %c0_20 = arith.constant 0 : index
      %c0_21 = arith.constant 0 : index
      %26 = vector.load %arg8[%c0_19, %c0_20, %c0_21] : memref<1x16x128xbf16, #tpu.memory_space<vmem>>, vector<1x16x128xbf16>
      %27 = vector.shape_cast %26 : vector<1x16x128xbf16> to vector<16x128xbf16>
      %28 = vector.shape_cast %25 : vector<16x128xbf16> to vector<1x16x128xbf16>
      tpu.vector_store %arg8[%c0_19, %c0_20, %c0_21], %28 {strides = array<i32>} : memref<1x16x128xbf16, #tpu.memory_space<vmem>>, vector<1x16x128xbf16>,
    } else {
    }
    return
  }
  func.func @transform_0(%arg0: i32, %arg1: i32, %arg2: i32, %arg3: i32) -> (i32, i32, i32) {
    %c0_i32 = arith.constant 0 : i32
    return %arg0, %arg1, %arg3 : i32, i32, i32
  }
  func.func @transform_1(%arg0: i32, %arg1: i32, %arg2: i32, %arg3: i32) -> (i32, i32, i32) {
    %c0_i32 = arith.constant 0 : i32
    return %arg0, %arg3, %arg2 : i32, i32, i32
  }
  func.func @transform_2(%arg0: i32, %arg1: i32, %arg2: i32, %arg3: i32) -> (i32, i32) {
    %c0_i32 = arith.constant 0 : i32
    %c0_i32_0 = arith.constant 0 : i32
    return %c0_i32, %arg3 : i32, i32
  }
  func.func @transform_3(%arg0: i32, %arg1: i32, %arg2: i32, %arg3: i32) -> (i32, i32) {
    %c0_i32 = arith.constant 0 : i32
    %c0_i32_0 = arith.constant 0 : i32
    return %c0_i32, %arg3 : i32, i32
  }
  func.func @transform_4(%arg0: i32, %arg1: i32, %arg2: i32, %arg3: i32) -> (i32, i32, i32) {
    %c0_i32 = arith.constant 0 : i32
    return %arg0, %arg1, %arg2 : i32, i32, i32
  }
}

module attributes {stable_mosaic.version = 11 : i64} {
  func.func @kernel(%arg0: i32, %arg1: i32, %arg2: i32, %arg3: i32, %arg4: memref<1x32x256xbf16, #tpu.memory_space<vmem>>, %arg5: memref<1x256x128xbf16, #tpu.memory_space<vmem>>, %arg6: memref<1x256xf32, #tpu.memory_space<vmem>>, %arg7: memref<1x256xf32, #tpu.memory_space<vmem>>, %arg8: memref<1x32x128xbf16, #tpu.memory_space<vmem>>, %arg9: memref<32x128xf32, #tpu.memory_space<vmem>>) attributes {dimension_semantics = [#tpu.dimension_semantics<parallel>, #tpu.dimension_semantics<parallel>, #tpu.dimension_semantics<parallel>, #tpu.dimension_semantics<arbitrary>], iteration_bounds = array<i64: 4, 1, 1, 1>, scalar_prefetch = 0 : i64, scratch_operands = 1 : i64, tpu.core_type = #tpu.core_type<tc>, window_params = [{transform_indices = @transform_0, window_bounds = array<i64: 1, 32, 256>}, {transform_indices = @transform_1, window_bounds = array<i64: 1, 256, 128>}, {transform_indices = @transform_2, window_bounds = array<i64: 1, 256>}, {transform_indices = @transform_3, window_bounds = array<i64: 1, 256>}, {transform_indices = @transform_4, window_bounds = array<i64: 1, 32, 128>}]} {
    %c0_i32 = arith.constant 0 : i32
    %0 = arith.cmpi eq, %arg3, %c0_i32 : i32
    %1 = arith.extui %0 : i1 to i32
    %c0_i32_0 = arith.constant 0 : i32
    %2 = arith.cmpi ne, %1, %c0_i32_0 : i32
    scf.if %2 {
      %cst_17 = arith.constant 0.000000e+00 : f32
      %24 = vector.broadcast %cst_17 : f32 to vector<32x128xf32>
      %c0_18 = arith.constant 0 : index
      %c0_19 = arith.constant 0 : index
      %25 = vector.load %arg9[%c0_18, %c0_19] : memref<32x128xf32, #tpu.memory_space<vmem>>, vector<32x128xf32>
      tpu.vector_store %arg9[%c0_18, %c0_19], %24 {strides = array<i32>} : memref<32x128xf32, #tpu.memory_space<vmem>>, vector<32x128xf32>,
    } else {
    }
    %c0 = arith.constant 0 : index
    %c0_1 = arith.constant 0 : index
    %c0_2 = arith.constant 0 : index
    %3 = vector.load %arg4[%c0, %c0_1, %c0_2] : memref<1x32x256xbf16, #tpu.memory_space<vmem>>, vector<1x32x256xbf16>
    %4 = vector.shape_cast %3 : vector<1x32x256xbf16> to vector<32x256xbf16>
    %5 = arith.extf %4 : vector<32x256xbf16> to vector<32x256xf32>
    %c0_3 = arith.constant 0 : index
    %c0_4 = arith.constant 0 : index
    %6 = vector.load %arg6[%c0_3, %c0_4] : memref<1x256xf32, #tpu.memory_space<vmem>>, vector<1x256xf32>
    %7 = vector.broadcast %6 : vector<1x256xf32> to vector<32x256xf32>
    %8 = arith.mulf %5, %7 : vector<32x256xf32>
    %c0_5 = arith.constant 0 : index
    %c0_6 = arith.constant 0 : index
    %9 = vector.load %arg7[%c0_5, %c0_6] : memref<1x256xf32, #tpu.memory_space<vmem>>, vector<1x256xf32>
    %10 = vector.broadcast %9 : vector<1x256xf32> to vector<32x256xf32>
    %11 = arith.addf %8, %10 : vector<32x256xf32>
    %cst = arith.constant 0.000000e+00 : f32
    %12 = vector.broadcast %cst : f32 to vector<32x256xf32>
    %13 = arith.maximumf %11, %12 : vector<32x256xf32>
    %14 = arith.truncf %13 : vector<32x256xf32> to vector<32x256xbf16>
    %c0_7 = arith.constant 0 : index
    %c0_8 = arith.constant 0 : index
    %15 = vector.load %arg9[%c0_7, %c0_8] : memref<32x128xf32, #tpu.memory_space<vmem>>, vector<32x128xf32>
    %c0_9 = arith.constant 0 : index
    %c0_10 = arith.constant 0 : index
    %c0_11 = arith.constant 0 : index
    %16 = vector.load %arg5[%c0_9, %c0_10, %c0_11] : memref<1x256x128xbf16, #tpu.memory_space<vmem>>, vector<1x256x128xbf16>
    %17 = vector.shape_cast %16 : vector<1x256x128xbf16> to vector<256x128xbf16>
    %cst_12 = arith.constant dense<0.000000e+00> : vector<32x128xf32>
    %18 = tpu.matmul %14, %17, %cst_12 {dimension_numbers = #tpu.dot_dimension_numbers<[1], [0], [0], [1], [0, 0, 1, 1], [], []>} : vector<32x256xbf16>, vector<256x128xbf16>, vector<32x128xf32> -> vector<32x128xf32>
    %19 = arith.addf %15, %18 : vector<32x128xf32>
    %c0_13 = arith.constant 0 : index
    %c0_14 = arith.constant 0 : index
    %20 = vector.load %arg9[%c0_13, %c0_14] : memref<32x128xf32, #tpu.memory_space<vmem>>, vector<32x128xf32>
    tpu.vector_store %arg9[%c0_13, %c0_14], %19 {strides = array<i32>} : memref<32x128xf32, #tpu.memory_space<vmem>>, vector<32x128xf32>,
    %c0_i32_15 = arith.constant 0 : i32
    %21 = arith.cmpi eq, %arg3, %c0_i32_15 : i32
    %22 = arith.extui %21 : i1 to i32
    %c0_i32_16 = arith.constant 0 : i32
    %23 = arith.cmpi ne, %22, %c0_i32_16 : i32
    scf.if %23 {
      %c0_17 = arith.constant 0 : index
      %c0_18 = arith.constant 0 : index
      %24 = vector.load %arg9[%c0_17, %c0_18] : memref<32x128xf32, #tpu.memory_space<vmem>>, vector<32x128xf32>
      %25 = arith.truncf %24 : vector<32x128xf32> to vector<32x128xbf16>
      %c0_19 = arith.constant 0 : index
      %c0_20 = arith.constant 0 : index
      %c0_21 = arith.constant 0 : index
      %26 = vector.load %arg8[%c0_19, %c0_20, %c0_21] : memref<1x32x128xbf16, #tpu.memory_space<vmem>>, vector<1x32x128xbf16>
      %27 = vector.shape_cast %26 : vector<1x32x128xbf16> to vector<32x128xbf16>
      %28 = vector.shape_cast %25 : vector<32x128xbf16> to vector<1x32x128xbf16>
      tpu.vector_store %arg8[%c0_19, %c0_20, %c0_21], %28 {strides = array<i32>} : memref<1x32x128xbf16, #tpu.memory_space<vmem>>, vector<1x32x128xbf16>,
    } else {
    }
    return
  }
  func.func @transform_0(%arg0: i32, %arg1: i32, %arg2: i32, %arg3: i32) -> (i32, i32, i32) {
    %c0_i32 = arith.constant 0 : i32
    return %arg0, %arg1, %arg3 : i32, i32, i32
  }
  func.func @transform_1(%arg0: i32, %arg1: i32, %arg2: i32, %arg3: i32) -> (i32, i32, i32) {
    %c0_i32 = arith.constant 0 : i32
    return %arg0, %arg3, %arg2 : i32, i32, i32
  }
  func.func @transform_2(%arg0: i32, %arg1: i32, %arg2: i32, %arg3: i32) -> (i32, i32) {
    %c0_i32 = arith.constant 0 : i32
    %c0_i32_0 = arith.constant 0 : i32
    return %c0_i32, %arg3 : i32, i32
  }
  func.func @transform_3(%arg0: i32, %arg1: i32, %arg2: i32, %arg3: i32) -> (i32, i32) {
    %c0_i32 = arith.constant 0 : i32
    %c0_i32_0 = arith.constant 0 : i32
    return %c0_i32, %arg3 : i32, i32
  }
  func.func @transform_4(%arg0: i32, %arg1: i32, %arg2: i32, %arg3: i32) -> (i32, i32, i32) {
    %c0_i32 = arith.constant 0 : i32
    return %arg0, %arg1, %arg2 : i32, i32, i32
  }
}

module attributes {stable_mosaic.version = 11 : i64} {
  func.func @kernel(%arg0: i32, %arg1: i32, %arg2: i32, %arg3: i32, %arg4: memref<1x128x128xbf16, #tpu.memory_space<vmem>>, %arg5: memref<1x128x128xbf16, #tpu.memory_space<vmem>>, %arg6: memref<1x128xf32, #tpu.memory_space<vmem>>, %arg7: memref<1x128xf32, #tpu.memory_space<vmem>>, %arg8: memref<1x128x128xbf16, #tpu.memory_space<vmem>>, %arg9: memref<128x128xf32, #tpu.memory_space<vmem>>) attributes {dimension_semantics = [#tpu.dimension_semantics<parallel>, #tpu.dimension_semantics<parallel>, #tpu.dimension_semantics<parallel>, #tpu.dimension_semantics<arbitrary>], iteration_bounds = array<i64: 4, 1, 1, 1>, scalar_prefetch = 0 : i64, scratch_operands = 1 : i64, tpu.core_type = #tpu.core_type<tc>, window_params = [{transform_indices = @transform_0, window_bounds = array<i64: 1, 128, 128>}, {transform_indices = @transform_1, window_bounds = array<i64: 1, 128, 128>}, {transform_indices = @transform_2, window_bounds = array<i64: 1, 128>}, {transform_indices = @transform_3, window_bounds = array<i64: 1, 128>}, {transform_indices = @transform_4, window_bounds = array<i64: 1, 128, 128>}]} {
    %c0_i32 = arith.constant 0 : i32
    %0 = arith.cmpi eq, %arg3, %c0_i32 : i32
    %1 = arith.extui %0 : i1 to i32
    %c0_i32_0 = arith.constant 0 : i32
    %2 = arith.cmpi ne, %1, %c0_i32_0 : i32
    scf.if %2 {
      %cst_17 = arith.constant 0.000000e+00 : f32
      %24 = vector.broadcast %cst_17 : f32 to vector<128x128xf32>
      %c0_18 = arith.constant 0 : index
      %c0_19 = arith.constant 0 : index
      %25 = vector.load %arg9[%c0_18, %c0_19] : memref<128x128xf32, #tpu.memory_space<vmem>>, vector<128x128xf32>
      tpu.vector_store %arg9[%c0_18, %c0_19], %24 {strides = array<i32>} : memref<128x128xf32, #tpu.memory_space<vmem>>, vector<128x128xf32>,
    } else {
    }
    %c0 = arith.constant 0 : index
    %c0_1 = arith.constant 0 : index
    %c0_2 = arith.constant 0 : index
    %3 = vector.load %arg4[%c0, %c0_1, %c0_2] : memref<1x128x128xbf16, #tpu.memory_space<vmem>>, vector<1x128x128xbf16>
    %4 = vector.shape_cast %3 : vector<1x128x128xbf16> to vector<128x128xbf16>
    %5 = arith.extf %4 : vector<128x128xbf16> to vector<128x128xf32>
    %c0_3 = arith.constant 0 : index
    %c0_4 = arith.constant 0 : index
    %6 = vector.load %arg6[%c0_3, %c0_4] : memref<1x128xf32, #tpu.memory_space<vmem>>, vector<1x128xf32>
    %7 = vector.broadcast %6 : vector<1x128xf32> to vector<128x128xf32>
    %8 = arith.mulf %5, %7 : vector<128x128xf32>
    %c0_5 = arith.constant 0 : index
    %c0_6 = arith.constant 0 : index
    %9 = vector.load %arg7[%c0_5, %c0_6] : memref<1x128xf32, #tpu.memory_space<vmem>>, vector<1x128xf32>
    %10 = vector.broadcast %9 : vector<1x128xf32> to vector<128x128xf32>
    %11 = arith.addf %8, %10 : vector<128x128xf32>
    %cst = arith.constant 0.000000e+00 : f32
    %12 = vector.broadcast %cst : f32 to vector<128x128xf32>
    %13 = arith.maximumf %11, %12 : vector<128x128xf32>
    %14 = arith.truncf %13 : vector<128x128xf32> to vector<128x128xbf16>
    %c0_7 = arith.constant 0 : index
    %c0_8 = arith.constant 0 : index
    %15 = vector.load %arg9[%c0_7, %c0_8] : memref<128x128xf32, #tpu.memory_space<vmem>>, vector<128x128xf32>
    %c0_9 = arith.constant 0 : index
    %c0_10 = arith.constant 0 : index
    %c0_11 = arith.constant 0 : index
    %16 = vector.load %arg5[%c0_9, %c0_10, %c0_11] : memref<1x128x128xbf16, #tpu.memory_space<vmem>>, vector<1x128x128xbf16>
    %17 = vector.shape_cast %16 : vector<1x128x128xbf16> to vector<128x128xbf16>
    %cst_12 = arith.constant dense<0.000000e+00> : vector<128x128xf32>
    %18 = tpu.matmul %14, %17, %cst_12 {dimension_numbers = #tpu.dot_dimension_numbers<[1], [0], [0], [1], [0, 0, 1, 1], [], []>} : vector<128x128xbf16>, vector<128x128xbf16>, vector<128x128xf32> -> vector<128x128xf32>
    %19 = arith.addf %15, %18 : vector<128x128xf32>
    %c0_13 = arith.constant 0 : index
    %c0_14 = arith.constant 0 : index
    %20 = vector.load %arg9[%c0_13, %c0_14] : memref<128x128xf32, #tpu.memory_space<vmem>>, vector<128x128xf32>
    tpu.vector_store %arg9[%c0_13, %c0_14], %19 {strides = array<i32>} : memref<128x128xf32, #tpu.memory_space<vmem>>, vector<128x128xf32>,
    %c0_i32_15 = arith.constant 0 : i32
    %21 = arith.cmpi eq, %arg3, %c0_i32_15 : i32
    %22 = arith.extui %21 : i1 to i32
    %c0_i32_16 = arith.constant 0 : i32
    %23 = arith.cmpi ne, %22, %c0_i32_16 : i32
    scf.if %23 {
      %c0_17 = arith.constant 0 : index
      %c0_18 = arith.constant 0 : index
      %24 = vector.load %arg9[%c0_17, %c0_18] : memref<128x128xf32, #tpu.memory_space<vmem>>, vector<128x128xf32>
      %25 = arith.truncf %24 : vector<128x128xf32> to vector<128x128xbf16>
      %c0_19 = arith.constant 0 : index
      %c0_20 = arith.constant 0 : index
      %c0_21 = arith.constant 0 : index
      %26 = vector.load %arg8[%c0_19, %c0_20, %c0_21] : memref<1x128x128xbf16, #tpu.memory_space<vmem>>, vector<1x128x128xbf16>
      %27 = vector.shape_cast %26 : vector<1x128x128xbf16> to vector<128x128xbf16>
      %28 = vector.shape_cast %25 : vector<128x128xbf16> to vector<1x128x128xbf16>
      tpu.vector_store %arg8[%c0_19, %c0_20, %c0_21], %28 {strides = array<i32>} : memref<1x128x128xbf16, #tpu.memory_space<vmem>>, vector<1x128x128xbf16>,
    } else {
    }
    return
  }
  func.func @transform_0(%arg0: i32, %arg1: i32, %arg2: i32, %arg3: i32) -> (i32, i32, i32) {
    %c0_i32 = arith.constant 0 : i32
    return %arg0, %arg1, %arg3 : i32, i32, i32
  }
  func.func @transform_1(%arg0: i32, %arg1: i32, %arg2: i32, %arg3: i32) -> (i32, i32, i32) {
    %c0_i32 = arith.constant 0 : i32
    return %arg0, %arg3, %arg2 : i32, i32, i32
  }
  func.func @transform_2(%arg0: i32, %arg1: i32, %arg2: i32, %arg3: i32) -> (i32, i32) {
    %c0_i32 = arith.constant 0 : i32
    %c0_i32_0 = arith.constant 0 : i32
    return %c0_i32, %arg3 : i32, i32
  }
  func.func @transform_3(%arg0: i32, %arg1: i32, %arg2: i32, %arg3: i32) -> (i32, i32) {
    %c0_i32 = arith.constant 0 : i32
    %c0_i32_0 = arith.constant 0 : i32
    return %c0_i32, %arg3 : i32, i32
  }
  func.func @transform_4(%arg0: i32, %arg1: i32, %arg2: i32, %arg3: i32) -> (i32, i32, i32) {
    %c0_i32 = arith.constant 0 : i32
    return %arg0, %arg1, %arg2 : i32, i32, i32
  }
}

module attributes {stable_mosaic.version = 11 : i64} {
  func.func @_bn_stats_kernel(%arg0: i32, %arg1: memref<32x128xbf16, #tpu.memory_space<vmem>>, %arg2: memref<8x128xf32, #tpu.memory_space<vmem>>) attributes {dimension_semantics = [#tpu.dimension_semantics<arbitrary>], iteration_bounds = array<i64: 1>, scalar_prefetch = 0 : i64, scratch_operands = 0 : i64, tpu.core_type = #tpu.core_type<tc>, window_params = [{transform_indices = @transform_0, window_bounds = array<i64: 32, 128>}, {pipeline_mode = #tpu.pipeline_mode<synchronous>, transform_indices = @transform_1, window_bounds = array<i64: 8, 128>}]} {
    %c0_i32 = arith.constant 0 : i32
    %0 = arith.cmpi eq, %arg0, %c0_i32 : i32
    %1 = arith.extui %0 : i1 to i32
    %c0_i32_0 = arith.constant 0 : i32
    %2 = arith.cmpi ne, %1, %c0_i32_0 : i32
    scf.if %2 {
      %cst_10 = arith.constant 0.000000e+00 : f32
      %16 = vector.broadcast %cst_10 : f32 to vector<8x128xf32>
      %c0_11 = arith.constant 0 : index
      %c0_12 = arith.constant 0 : index
      %17 = vector.load %arg2[%c0_11, %c0_12] : memref<8x128xf32, #tpu.memory_space<vmem>>, vector<8x128xf32>
      tpu.vector_store %arg2[%c0_11, %c0_12], %16 {strides = array<i32>} : memref<8x128xf32, #tpu.memory_space<vmem>>, vector<8x128xf32>,
    } else {
    }
    %c0 = arith.constant 0 : index
    %c0_1 = arith.constant 0 : index
    %3 = vector.load %arg1[%c0, %c0_1] : memref<32x128xbf16, #tpu.memory_space<vmem>>, vector<32x128xbf16>
    %4 = arith.extf %3 : vector<32x128xbf16> to vector<32x128xf32>
    %c0_2 = arith.constant 0 : index
    %c0_3 = arith.constant 0 : index
    %5 = vector.load %arg2[%c0_2, %c0_3] : memref<8x128xf32, #tpu.memory_space<vmem>>, vector<1x128xf32>
    %cst = arith.constant dense<0.000000e+00> : vector<128xf32>
    %6 = vector.multi_reduction <add>, %4, %cst [0] : vector<32x128xf32> to vector<128xf32>
    %7 = vector.shape_cast %6 : vector<128xf32> to vector<1x128xf32>
    %8 = arith.addf %5, %7 : vector<1x128xf32>
    %c0_4 = arith.constant 0 : index
    %c0_5 = arith.constant 0 : index
    %9 = vector.load %arg2[%c0_4, %c0_5] : memref<8x128xf32, #tpu.memory_space<vmem>>, vector<1x128xf32>
    tpu.vector_store %arg2[%c0_4, %c0_5], %8 {strides = array<i32>} : memref<8x128xf32, #tpu.memory_space<vmem>>, vector<1x128xf32>,
    %c1 = arith.constant 1 : index
    %c0_6 = arith.constant 0 : index
    %10 = vector.load %arg2[%c1, %c0_6] : memref<8x128xf32, #tpu.memory_space<vmem>>, vector<1x128xf32>
    %11 = arith.mulf %4, %4 : vector<32x128xf32>
    %cst_7 = arith.constant dense<0.000000e+00> : vector<128xf32>
    %12 = vector.multi_reduction <add>, %11, %cst_7 [0] : vector<32x128xf32> to vector<128xf32>
    %13 = vector.shape_cast %12 : vector<128xf32> to vector<1x128xf32>
    %14 = arith.addf %10, %13 : vector<1x128xf32>
    %c1_8 = arith.constant 1 : index
    %c0_9 = arith.constant 0 : index
    %15 = vector.load %arg2[%c1_8, %c0_9] : memref<8x128xf32, #tpu.memory_space<vmem>>, vector<1x128xf32>
    tpu.vector_store %arg2[%c1_8, %c0_9], %14 {strides = array<i32>} : memref<8x128xf32, #tpu.memory_space<vmem>>, vector<1x128xf32>,
    return
  }
  func.func @transform_0(%arg0: i32) -> (i32, i32) {
    %c0_i32 = arith.constant 0 : i32
    %c0_i32_0 = arith.constant 0 : i32
    return %arg0, %c0_i32 : i32, i32
  }
  func.func @transform_1(%arg0: i32) -> (i32, i32) {
    %c0_i32 = arith.constant 0 : i32
    %c0_i32_0 = arith.constant 0 : i32
    %c0_i32_1 = arith.constant 0 : i32
    return %c0_i32, %c0_i32_0 : i32, i32
  }
}

module attributes {stable_mosaic.version = 11 : i64} {
  func.func @kernel(%arg0: i32, %arg1: i32, %arg2: i32, %arg3: i32, %arg4: memref<1x512x128xbf16, #tpu.memory_space<vmem>>, %arg5: memref<1x128x128xbf16, #tpu.memory_space<vmem>>, %arg6: memref<1x128xf32, #tpu.memory_space<vmem>>, %arg7: memref<1x128xf32, #tpu.memory_space<vmem>>, %arg8: memref<1x128xf32, #tpu.memory_space<vmem>>, %arg9: memref<1x512x128xf32, #tpu.memory_space<vmem>>, %arg10: memref<512x128xf32, #tpu.memory_space<vmem>>) attributes {dimension_semantics = [#tpu.dimension_semantics<parallel>, #tpu.dimension_semantics<parallel>, #tpu.dimension_semantics<parallel>, #tpu.dimension_semantics<arbitrary>], iteration_bounds = array<i64: 4, 1, 1, 1>, scalar_prefetch = 0 : i64, scratch_operands = 1 : i64, tpu.core_type = #tpu.core_type<tc>, window_params = [{transform_indices = @transform_0, window_bounds = array<i64: 1, 512, 128>}, {transform_indices = @transform_1, window_bounds = array<i64: 1, 128, 128>}, {transform_indices = @transform_2, window_bounds = array<i64: 1, 128>}, {transform_indices = @transform_3, window_bounds = array<i64: 1, 128>}, {transform_indices = @transform_4, window_bounds = array<i64: 1, 128>}, {transform_indices = @transform_5, window_bounds = array<i64: 1, 512, 128>}]} {
    %c0_i32 = arith.constant 0 : i32
    %0 = arith.cmpi eq, %arg3, %c0_i32 : i32
    %1 = arith.extui %0 : i1 to i32
    %c0_i32_0 = arith.constant 0 : i32
    %2 = arith.cmpi ne, %1, %c0_i32_0 : i32
    scf.if %2 {
      %cst_17 = arith.constant 0.000000e+00 : f32
      %24 = vector.broadcast %cst_17 : f32 to vector<512x128xf32>
      %c0_18 = arith.constant 0 : index
      %c0_19 = arith.constant 0 : index
      %25 = vector.load %arg10[%c0_18, %c0_19] : memref<512x128xf32, #tpu.memory_space<vmem>>, vector<512x128xf32>
      tpu.vector_store %arg10[%c0_18, %c0_19], %24 {strides = array<i32>} : memref<512x128xf32, #tpu.memory_space<vmem>>, vector<512x128xf32>,
    } else {
    }
    %c0 = arith.constant 0 : index
    %c0_1 = arith.constant 0 : index
    %c0_2 = arith.constant 0 : index
    %3 = vector.load %arg4[%c0, %c0_1, %c0_2] : memref<1x512x128xbf16, #tpu.memory_space<vmem>>, vector<1x512x128xbf16>
    %4 = vector.shape_cast %3 : vector<1x512x128xbf16> to vector<512x128xbf16>
    %5 = arith.extf %4 : vector<512x128xbf16> to vector<512x128xf32>
    %c0_3 = arith.constant 0 : index
    %c0_4 = arith.constant 0 : index
    %6 = vector.load %arg6[%c0_3, %c0_4] : memref<1x128xf32, #tpu.memory_space<vmem>>, vector<1x128xf32>
    %7 = vector.broadcast %6 : vector<1x128xf32> to vector<512x128xf32>
    %8 = arith.mulf %5, %7 : vector<512x128xf32>
    %c0_5 = arith.constant 0 : index
    %c0_6 = arith.constant 0 : index
    %9 = vector.load %arg7[%c0_5, %c0_6] : memref<1x128xf32, #tpu.memory_space<vmem>>, vector<1x128xf32>
    %10 = vector.broadcast %9 : vector<1x128xf32> to vector<512x128xf32>
    %11 = arith.addf %8, %10 : vector<512x128xf32>
    %cst = arith.constant 0.000000e+00 : f32
    %12 = vector.broadcast %cst : f32 to vector<512x128xf32>
    %13 = arith.maximumf %11, %12 : vector<512x128xf32>
    %14 = arith.truncf %13 : vector<512x128xf32> to vector<512x128xbf16>
    %c0_7 = arith.constant 0 : index
    %c0_8 = arith.constant 0 : index
    %15 = vector.load %arg10[%c0_7, %c0_8] : memref<512x128xf32, #tpu.memory_space<vmem>>, vector<512x128xf32>
    %c0_9 = arith.constant 0 : index
    %c0_10 = arith.constant 0 : index
    %c0_11 = arith.constant 0 : index
    %16 = vector.load %arg5[%c0_9, %c0_10, %c0_11] : memref<1x128x128xbf16, #tpu.memory_space<vmem>>, vector<1x128x128xbf16>
    %17 = vector.shape_cast %16 : vector<1x128x128xbf16> to vector<128x128xbf16>
    %cst_12 = arith.constant dense<0.000000e+00> : vector<512x128xf32>
    %18 = tpu.matmul %14, %17, %cst_12 {dimension_numbers = #tpu.dot_dimension_numbers<[1], [0], [0], [1], [0, 0, 1, 1], [], []>} : vector<512x128xbf16>, vector<128x128xbf16>, vector<512x128xf32> -> vector<512x128xf32>
    %19 = arith.addf %15, %18 : vector<512x128xf32>
    %c0_13 = arith.constant 0 : index
    %c0_14 = arith.constant 0 : index
    %20 = vector.load %arg10[%c0_13, %c0_14] : memref<512x128xf32, #tpu.memory_space<vmem>>, vector<512x128xf32>
    tpu.vector_store %arg10[%c0_13, %c0_14], %19 {strides = array<i32>} : memref<512x128xf32, #tpu.memory_space<vmem>>, vector<512x128xf32>,
    %c0_i32_15 = arith.constant 0 : i32
    %21 = arith.cmpi eq, %arg3, %c0_i32_15 : i32
    %22 = arith.extui %21 : i1 to i32
    %c0_i32_16 = arith.constant 0 : i32
    %23 = arith.cmpi ne, %22, %c0_i32_16 : i32
    scf.if %23 {
      %c0_17 = arith.constant 0 : index
      %c0_18 = arith.constant 0 : index
      %24 = vector.load %arg10[%c0_17, %c0_18] : memref<512x128xf32, #tpu.memory_space<vmem>>, vector<512x128xf32>
      %c0_19 = arith.constant 0 : index
      %c0_20 = arith.constant 0 : index
      %25 = vector.load %arg8[%c0_19, %c0_20] : memref<1x128xf32, #tpu.memory_space<vmem>>, vector<1x128xf32>
      %26 = vector.broadcast %25 : vector<1x128xf32> to vector<512x128xf32>
      %27 = arith.addf %24, %26 : vector<512x128xf32>
      %28 = math.tanh %27 : vector<512x128xf32>
      %c0_21 = arith.constant 0 : index
      %c0_22 = arith.constant 0 : index
      %c0_23 = arith.constant 0 : index
      %29 = vector.load %arg9[%c0_21, %c0_22, %c0_23] : memref<1x512x128xf32, #tpu.memory_space<vmem>>, vector<1x512x128xf32>
      %30 = vector.shape_cast %29 : vector<1x512x128xf32> to vector<512x128xf32>
      %31 = vector.shape_cast %28 : vector<512x128xf32> to vector<1x512x128xf32>
      tpu.vector_store %arg9[%c0_21, %c0_22, %c0_23], %31 {strides = array<i32>} : memref<1x512x128xf32, #tpu.memory_space<vmem>>, vector<1x512x128xf32>,
    } else {
    }
    return
  }
  func.func @transform_0(%arg0: i32, %arg1: i32, %arg2: i32, %arg3: i32) -> (i32, i32, i32) {
    %c0_i32 = arith.constant 0 : i32
    return %arg0, %arg1, %arg3 : i32, i32, i32
  }
  func.func @transform_1(%arg0: i32, %arg1: i32, %arg2: i32, %arg3: i32) -> (i32, i32, i32) {
    %c0_i32 = arith.constant 0 : i32
    return %arg0, %arg3, %arg2 : i32, i32, i32
  }
  func.func @transform_2(%arg0: i32, %arg1: i32, %arg2: i32, %arg3: i32) -> (i32, i32) {
    %c0_i32 = arith.constant 0 : i32
    %c0_i32_0 = arith.constant 0 : i32
    return %c0_i32, %arg3 : i32, i32
  }
  func.func @transform_3(%arg0: i32, %arg1: i32, %arg2: i32, %arg3: i32) -> (i32, i32) {
    %c0_i32 = arith.constant 0 : i32
    %c0_i32_0 = arith.constant 0 : i32
    return %c0_i32, %arg3 : i32, i32
  }
  func.func @transform_4(%arg0: i32, %arg1: i32, %arg2: i32, %arg3: i32) -> (i32, i32) {
    %c0_i32 = arith.constant 0 : i32
    %c0_i32_0 = arith.constant 0 : i32
    return %c0_i32, %arg2 : i32, i32
  }
  func.func @transform_5(%arg0: i32, %arg1: i32, %arg2: i32, %arg3: i32) -> (i32, i32, i32) {
    %c0_i32 = arith.constant 0 : i32
    return %arg0, %arg1, %arg2 : i32, i32, i32
  }
}

</mosaic_0001>

<bundles_post_ra>
// kernel: _lambda_.17
= control target key start
LH: loop header
LB: loop body
LE: loop exit
PB: predicated region body
PF: predicated region fallthrough
CT: control target
= control target key end

     0   :  { %s2038_s1 = inlined_call_operand.vmem [shape: bf16[1,128,128], index: 1, kind: input, shape index: {}]   ;;  %s2039_s0 = inlined_call_operand.vmem [shape: bf16[1,512,128], index: 0, kind: input, shape index: {}]   ;;  %s2040_s2 = inlined_call_operand.vmem [shape: bf16[1,512,128], index: 2, kind: output, shape index: {}]  }
   0x1   :  { %v1767_v0 = vld [vmem:[%s2038_s1 + $0x38] sm:$0xff]   ;;  %v1768_v1 = vld [vmem:[%s2038_s1 + $0x30] sm:$0xff]   ;;  %v1769_v2 = vld [vmem:[%s2038_s1 + $0x28] sm:$0xff]  }
   0x2   :  { %1671 = vmatprep.subr.bf16.mxu0 %v1767_v0  ;;  %1751 = vmatprep.subr.bf16.mxu1 %v1767_v0  ;;  %v1770_v3 = vld [vmem:[%s2038_s1 + $0x20] sm:$0xff]   ;;  %v1771_v6 = vld [vmem:[%s2038_s1 + $0x18] sm:$0xff]   ;;  %v1772_v7 = vld [vmem:[%s2038_s1 + $0x10] sm:$0xff]  }
   0x3   :  { %1672 = vmatpush3.bf16.msra.mxu0 %v1767_v0  ;;  %1759 = vmatpush3.bf16.msra.mxu1 %v1767_v0  ;;  %v1775_v4 = vld [vmem:[%s2039_s0] sm:$0xff]   ;;  %v1773_v8 = vld [vmem:[%s2038_s1 + $0x8] sm:$0xff]   ;;  %v1779_v12 = vld [vmem:[%s2039_s0 + $0x10] sm:$0xff]  }
   0x4   :  { %1673 = vmatprep.subr.bf16.mxu0 %v1768_v1  ;;  %1752 = vmatprep.subr.bf16.mxu1 %v1768_v1  ;;  %v1776_v5 = vld [vmem:[%s2039_s0 + $0x80] sm:$0xff]   ;;  %v1777_v10 = vld [vmem:[%s2039_s0 + $0x8] sm:$0xff]   ;;  %v1780_v13 = vld [vmem:[%s2039_s0 + $0x90] sm:$0xff]  }
   0x5   :  { %1687 = vmatprep.mubr.bf16.mxu0 %v1775_v4  ;;  %1719 = vmatprep.mubr.bf16.mxu1 %v1776_v5  ;;  %v1774_v9 = vld [vmem:[%s2038_s1] sm:$0xff]   ;;  %v1778_v11 = vld [vmem:[%s2039_s0 + $0x88] sm:$0xff]   ;;  %v1781_v14 = vld [vmem:[%s2039_s0 + $0x18] sm:$0xff]  }
   0x6   :  { %v1782_v15 = vld [vmem:[%s2039_s0 + $0x98] sm:$0xff]   ;;  %v1783_v16 = vld [vmem:[%s2039_s0 + $0x20] sm:$0xff]   ;;  %v1785_v18 = vld [vmem:[%s2039_s0 + $0x28] sm:$0xff]  }
   0x7   :  { %1674 = vmatpush3.bf16.msra.mxu0 %v1768_v1  ;;  %1760 = vmatpush3.bf16.msra.mxu1 %v1768_v1  ;;  %v1784_v17 = vld [vmem:[%s2039_s0 + $0xa0] sm:$0xff]   ;;  %v1786_v19 = vld [vmem:[%s2039_s0 + $0xa8] sm:$0xff]   ;;  %v1787_v20 = vld [vmem:[%s2039_s0 + $0x30] sm:$0xff]  }
   0x8   :  { %1675 = vmatprep.subr.bf16.mxu0 %v1769_v2  ;;  %1753 = vmatprep.subr.bf16.mxu1 %v1769_v2  ;;  %v1788_v21 = vld [vmem:[%s2039_s0 + $0xb0] sm:$0xff]   ;;  %v1789_v22 = vld [vmem:[%s2039_s0 + $0x38] sm:$0xff]   ;;  %v1791_v24 = vld [vmem:[%s2039_s0 + $0x40] sm:$0xff]  }
   0x9   :  { %v1790_v23 = vld [vmem:[%s2039_s0 + $0xb8] sm:$0xff]   ;;  %v1792_v25 = vld [vmem:[%s2039_s0 + $0xc0] sm:$0xff]   ;;  %v1793_v26 = vld [vmem:[%s2039_s0 + $0x48] sm:$0xff]  }
   0xa   :  { %v1794_v27 = vld [vmem:[%s2039_s0 + $0xc8] sm:$0xff]   ;;  %v1795_v28 = vld [vmem:[%s2039_s0 + $0x50] sm:$0xff]   ;;  %v1797_v30 = vld [vmem:[%s2039_s0 + $0x58] sm:$0xff]  }
   0xb   :  { %1676 = vmatpush3.bf16.msra.mxu0 %v1769_v2  ;;  %1761 = vmatpush3.bf16.msra.mxu1 %v1769_v2  ;;  %v1796_v29 = vld [vmem:[%s2039_s0 + $0xd0] sm:$0xff]   ;;  %v1798_v31 = vld [vmem:[%s2039_s0 + $0xd8] sm:$0xff]   ;;  %v1799_v32 = vld [vmem:[%s2039_s0 + $0x60] sm:$0xff]  }
   0xc   :  { %1677 = vmatprep.subr.bf16.mxu0 %v1770_v3  ;;  %1754 = vmatprep.subr.bf16.mxu1 %v1770_v3  ;;  %v1800_v33 = vld [vmem:[%s2039_s0 + $0xe0] sm:$0xff]   ;;  %v1801_v34 = vld [vmem:[%s2039_s0 + $0x68] sm:$0xff]   ;;  %v1803_v36 = vld [vmem:[%s2039_s0 + $0x70] sm:$0xff]  }
   0xd   :  { %v1802_v35 = vld [vmem:[%s2039_s0 + $0xe8] sm:$0xff]   ;;  %v1804_v37 = vld [vmem:[%s2039_s0 + $0xf0] sm:$0xff]   ;;  %v1805_v38 = vld [vmem:[%s2039_s0 + $0x78] sm:$0xff]  }
   0xe   :  { %v1806_v39 = vld [vmem:[%s2039_s0 + $0xf8] sm:$0xff]  }
   0xf   :  { %1678 = vmatpush3.bf16.msra.mxu0 %v1770_v3  ;;  %1762 = vmatpush3.bf16.msra.mxu1 %v1770_v3 }
  0x10   :  { %1679 = vmatprep.subr.bf16.mxu0 %v1771_v6  ;;  %1755 = vmatprep.subr.bf16.mxu1 %v1771_v6 }
  0x13   :  { %1680 = vmatpush3.bf16.msra.mxu0 %v1771_v6  ;;  %1763 = vmatpush3.bf16.msra.mxu1 %v1771_v6 }
  0x14   :  { %1681 = vmatprep.subr.bf16.mxu0 %v1772_v7  ;;  %1756 = vmatprep.subr.bf16.mxu1 %v1772_v7 }
  0x17   :  { %1682 = vmatpush3.bf16.msra.mxu0 %v1772_v7  ;;  %1764 = vmatpush3.bf16.msra.mxu1 %v1772_v7 }
  0x18   :  { %1683 = vmatprep.subr.bf16.mxu0 %v1773_v8  ;;  %1757 = vmatprep.subr.bf16.mxu1 %v1773_v8 }
  0x1b   :  { %1684 = vmatpush3.bf16.msra.mxu0 %v1773_v8  ;;  %1765 = vmatpush3.bf16.msra.mxu1 %v1773_v8 }
  0x1c   :  { %1685 = vmatprep.subr.bf16.mxu0 %v1774_v9  ;;  %1758 = vmatprep.subr.bf16.mxu1 %v1774_v9 }
  0x1f   :  { %1686 = vmatpush3.bf16.msra.mxu0 %v1774_v9  ;;  %1766 = vmatpush3.bf16.msra.mxu1 %v1774_v9 }
  0x22   :  { %1688 = vmatmul.mubr.bf16.vlgmr.msra.gmra.mxu0 %v1777_v10  ;;  %1720 = vmatmul.mubr.bf16.vlgmr.msra.gmra.mxu1 %v1778_v11 }
  0x23   :  { %1691 = vmatprep.mubr.bf16.mxu0 %v1779_v12  ;;  %1723 = vmatprep.mubr.bf16.mxu1 %v1780_v13 }
  0x2a   :  { %1692 = vmatmul.mubr.bf16.gmra.mxu0 %v1781_v14  ;;  %1724 = vmatmul.mubr.bf16.gmra.mxu1 %v1782_v15 }
  0x2b   :  { %1695 = vmatprep.mubr.bf16.mxu0 %v1783_v16  ;;  %1727 = vmatprep.mubr.bf16.mxu1 %v1784_v17 }
  0x32   :  { %1696 = vmatmul.mubr.bf16.gmra.mxu0 %v1785_v18  ;;  %1728 = vmatmul.mubr.bf16.gmra.mxu1 %v1786_v19 }
  0x33   :  { %1699 = vmatprep.mubr.bf16.mxu0 %v1787_v20  ;;  %1731 = vmatprep.mubr.bf16.mxu1 %v1788_v21 }
  0x3a   :  { %1700 = vmatmul.mubr.bf16.gmra.mxu0 %v1789_v22  ;;  %1732 = vmatmul.mubr.bf16.gmra.mxu1 %v1790_v23 }
  0x3b   :  { %1703 = vmatprep.mubr.bf16.mxu0 %v1791_v24  ;;  %1735 = vmatprep.mubr.bf16.mxu1 %v1792_v25 }
  0x42   :  { %1704 = vmatmul.mubr.bf16.gmra.mxu0 %v1793_v26  ;;  %1736 = vmatmul.mubr.bf16.gmra.mxu1 %v1794_v27 }
  0x43   :  { %1707 = vmatprep.mubr.bf16.mxu0 %v1795_v28  ;;  %1739 = vmatprep.mubr.bf16.mxu1 %v1796_v29 }
  0x4a   :  { %1708 = vmatmul.mubr.bf16.gmra.mxu0 %v1797_v30  ;;  %1740 = vmatmul.mubr.bf16.gmra.mxu1 %v1798_v31 }
  0x4b   :  { %1711 = vmatprep.mubr.bf16.mxu0 %v1799_v32  ;;  %1743 = vmatprep.mubr.bf16.mxu1 %v1800_v33 }
  0x52   :  { %1712 = vmatmul.mubr.bf16.gmra.mxu0 %v1801_v34  ;;  %1744 = vmatmul.mubr.bf16.gmra.mxu1 %v1802_v35 }
  0x53   :  { %1715 = vmatprep.mubr.bf16.mxu0 %v1803_v36  ;;  %1747 = vmatprep.mubr.bf16.mxu1 %v1804_v37 }
  0x5a   :  { %1716 = vmatmul.mubr.bf16.gmra.mxu0 %v1805_v38  ;;  %1748 = vmatmul.mubr.bf16.gmra.mxu1 %v1806_v39 }
  0xe2   :  { %v1689_v40 = vpop.f32.mrf.mxu0  ;;  %v1721_v41 = vpop.f32.mrf.mxu1 }
  0xe4   :  { %v498_v42 = vpop.f32.mrf.mxu0  ;;  %v626_v43 = vpop.f32.mrf.mxu1 }
  0xe6   :  { %v1690_v44 = vpop.f32.mrf.mxu0  ;;  %v1722_v45 = vpop.f32.mrf.mxu1 }
  0xe7   :  { %v1448_v46 = vpack.c.bf16 %v1690_v44, %v1689_v40  ;;  %v1528_v47 = vpack.c.bf16 %v1722_v45, %v1721_v41 }
  0xe8   :  { %v501_v48 = vpop.f32.mrf.mxu0  ;;  %v629_v49 = vpop.f32.mrf.mxu1 }
  0xe9   :  { %1600 = vst [vmem:[%s2040_s2 + $0x8] sm:$0xff] %v1448_v46   ;;  %1616 = vst [vmem:[%s2040_s2 + $0x88] sm:$0xff] %v1528_v47   ;;  %v1443_v50 = vpack.c.bf16 %v501_v48, %v498_v42  ;;  %v1523_v51 = vpack.c.bf16 %v629_v49, %v626_v43 }
  0xea   :  { %v1693_v52 = vpop.f32.mrf.mxu0  ;;  %v1725_v53 = vpop.f32.mrf.mxu1 }
  0xeb   :  { %1444 = vst [vmem:[%s2040_s2] sm:$0xff] %v1443_v50   ;;  %1615 = vst [vmem:[%s2040_s2 + $0x80] sm:$0xff] %v1523_v51  }
  0xec   :  { %v514_v54 = vpop.f32.mrf.mxu0  ;;  %v642_v55 = vpop.f32.mrf.mxu1 }
  0xee   :  { %v1694_v56 = vpop.f32.mrf.mxu0  ;;  %v1726_v57 = vpop.f32.mrf.mxu1 }
  0xef   :  { %v1458_v58 = vpack.c.bf16 %v1694_v56, %v1693_v52  ;;  %v1538_v59 = vpack.c.bf16 %v1726_v57, %v1725_v53 }
  0xf0   :  { %v517_v60 = vpop.f32.mrf.mxu0  ;;  %v645_v61 = vpop.f32.mrf.mxu1 }
  0xf1   :  { %1602 = vst [vmem:[%s2040_s2 + $0x18] sm:$0xff] %v1458_v58   ;;  %1618 = vst [vmem:[%s2040_s2 + $0x98] sm:$0xff] %v1538_v59   ;;  %v1453_v62 = vpack.c.bf16 %v517_v60, %v514_v54  ;;  %v1533_v63 = vpack.c.bf16 %v645_v61, %v642_v55 }
  0xf2   :  { %v1697_v0 = vpop.f32.mrf.mxu0  ;;  %v1729_v1 = vpop.f32.mrf.mxu1 }
  0xf3   :  { %1601 = vst [vmem:[%s2040_s2 + $0x10] sm:$0xff] %v1453_v62   ;;  %1617 = vst [vmem:[%s2040_s2 + $0x90] sm:$0xff] %v1533_v63  }
  0xf4   :  { %v530_v2 = vpop.f32.mrf.mxu0  ;;  %v658_v3 = vpop.f32.mrf.mxu1 }
  0xf6   :  { %v1698_v4 = vpop.f32.mrf.mxu0  ;;  %v1730_v5 = vpop.f32.mrf.mxu1 }
  0xf7   :  { %v1468_v6 = vpack.c.bf16 %v1698_v4, %v1697_v0  ;;  %v1548_v7 = vpack.c.bf16 %v1730_v5, %v1729_v1 }
  0xf8   :  { %v533_v8 = vpop.f32.mrf.mxu0  ;;  %v661_v9 = vpop.f32.mrf.mxu1 }
  0xf9   :  { %1604 = vst [vmem:[%s2040_s2 + $0x28] sm:$0xff] %v1468_v6   ;;  %1620 = vst [vmem:[%s2040_s2 + $0xa8] sm:$0xff] %v1548_v7   ;;  %v1463_v10 = vpack.c.bf16 %v533_v8, %v530_v2  ;;  %v1543_v11 = vpack.c.bf16 %v661_v9, %v658_v3 }
  0xfa   :  { %v1701_v12 = vpop.f32.mrf.mxu0  ;;  %v1733_v13 = vpop.f32.mrf.mxu1 }
  0xfb   :  { %1603 = vst [vmem:[%s2040_s2 + $0x20] sm:$0xff] %v1463_v10   ;;  %1619 = vst [vmem:[%s2040_s2 + $0xa0] sm:$0xff] %v1543_v11  }
  0xfc   :  { %v546_v14 = vpop.f32.mrf.mxu0  ;;  %v674_v15 = vpop.f32.mrf.mxu1 }
  0xfe   :  { %v1702_v16 = vpop.f32.mrf.mxu0  ;;  %v1734_v17 = vpop.f32.mrf.mxu1 }
  0xff   :  { %v1478_v18 = vpack.c.bf16 %v1702_v16, %v1701_v12  ;;  %v1558_v19 = vpack.c.bf16 %v1734_v17, %v1733_v13 }
 0x100   :  { %v549_v20 = vpop.f32.mrf.mxu0  ;;  %v677_v21 = vpop.f32.mrf.mxu1 }
 0x101   :  { %1606 = vst [vmem:[%s2040_s2 + $0x38] sm:$0xff] %v1478_v18   ;;  %1622 = vst [vmem:[%s2040_s2 + $0xb8] sm:$0xff] %v1558_v19   ;;  %v1473_v22 = vpack.c.bf16 %v549_v20, %v546_v14  ;;  %v1553_v23 = vpack.c.bf16 %v677_v21, %v674_v15 }
 0x102   :  { %v1705_v24 = vpop.f32.mrf.mxu0  ;;  %v1737_v25 = vpop.f32.mrf.mxu1 }
 0x103   :  { %1605 = vst [vmem:[%s2040_s2 + $0x30] sm:$0xff] %v1473_v22   ;;  %1621 = vst [vmem:[%s2040_s2 + $0xb0] sm:$0xff] %v1553_v23  }
 0x104   :  { %v562_v26 = vpop.f32.mrf.mxu0  ;;  %v690_v27 = vpop.f32.mrf.mxu1 }
 0x106   :  { %v1706_v28 = vpop.f32.mrf.mxu0  ;;  %v1738_v29 = vpop.f32.mrf.mxu1 }
 0x107   :  { %v1488_v30 = vpack.c.bf16 %v1706_v28, %v1705_v24  ;;  %v1568_v31 = vpack.c.bf16 %v1738_v29, %v1737_v25 }
 0x108   :  { %v565_v32 = vpop.f32.mrf.mxu0  ;;  %v693_v33 = vpop.f32.mrf.mxu1 }
 0x109   :  { %1608 = vst [vmem:[%s2040_s2 + $0x48] sm:$0xff] %v1488_v30   ;;  %1624 = vst [vmem:[%s2040_s2 + $0xc8] sm:$0xff] %v1568_v31   ;;  %v1483_v34 = vpack.c.bf16 %v565_v32, %v562_v26  ;;  %v1563_v35 = vpack.c.bf16 %v693_v33, %v690_v27 }
 0x10a   :  { %v1709_v36 = vpop.f32.mrf.mxu0  ;;  %v1741_v37 = vpop.f32.mrf.mxu1 }
 0x10b   :  { %1607 = vst [vmem:[%s2040_s2 + $0x40] sm:$0xff] %v1483_v34   ;;  %1623 = vst [vmem:[%s2040_s2 + $0xc0] sm:$0xff] %v1563_v35  }
 0x10c   :  { %v578_v38 = vpop.f32.mrf.mxu0  ;;  %v706_v39 = vpop.f32.mrf.mxu1 }
 0x10e   :  { %v1710_v40 = vpop.f32.mrf.mxu0  ;;  %v1742_v41 = vpop.f32.mrf.mxu1 }
 0x10f   :  { %v1498_v42 = vpack.c.bf16 %v1710_v40, %v1709_v36  ;;  %v1578_v43 = vpack.c.bf16 %v1742_v41, %v1741_v37 }
 0x110   :  { %v581_v44 = vpop.f32.mrf.mxu0  ;;  %v709_v45 = vpop.f32.mrf.mxu1 }
 0x111   :  { %1610 = vst [vmem:[%s2040_s2 + $0x58] sm:$0xff] %v1498_v42   ;;  %1626 = vst [vmem:[%s2040_s2 + $0xd8] sm:$0xff] %v1578_v43   ;;  %v1493_v46 = vpack.c.bf16 %v581_v44, %v578_v38  ;;  %v1573_v47 = vpack.c.bf16 %v709_v45, %v706_v39 }
 0x112   :  { %v1713_v48 = vpop.f32.mrf.mxu0  ;;  %v1745_v49 = vpop.f32.mrf.mxu1 }
 0x113   :  { %1609 = vst [vmem:[%s2040_s2 + $0x50] sm:$0xff] %v1493_v46   ;;  %1625 = vst [vmem:[%s2040_s2 + $0xd0] sm:$0xff] %v1573_v47  }
 0x114   :  { %v594_v50 = vpop.f32.mrf.mxu0  ;;  %v722_v51 = vpop.f32.mrf.mxu1 }
 0x116   :  { %v1714_v52 = vpop.f32.mrf.mxu0  ;;  %v1746_v53 = vpop.f32.mrf.mxu1 }
 0x117   :  { %v1508_v54 = vpack.c.bf16 %v1714_v52, %v1713_v48  ;;  %v1588_v55 = vpack.c.bf16 %v1746_v53, %v1745_v49 }
 0x118   :  { %v597_v56 = vpop.f32.mrf.mxu0  ;;  %v725_v57 = vpop.f32.mrf.mxu1 }
 0x119   :  { %1612 = vst [vmem:[%s2040_s2 + $0x68] sm:$0xff] %v1508_v54   ;;  %1628 = vst [vmem:[%s2040_s2 + $0xe8] sm:$0xff] %v1588_v55   ;;  %v1503_v58 = vpack.c.bf16 %v597_v56, %v594_v50  ;;  %v1583_v59 = vpack.c.bf16 %v725_v57, %v722_v51 }
 0x11a   :  { %v1717_v60 = vpop.f32.mrf.mxu0  ;;  %v1749_v61 = vpop.f32.mrf.mxu1 }
 0x11b   :  { %1611 = vst [vmem:[%s2040_s2 + $0x60] sm:$0xff] %v1503_v58   ;;  %1627 = vst [vmem:[%s2040_s2 + $0xe0] sm:$0xff] %v1583_v59  }
 0x11c   :  { %v610_v62 = vpop.f32.mrf.mxu0  ;;  %v738_v63 = vpop.f32.mrf.mxu1 }
 0x11e   :  { %v1718_v0 = vpop.f32.mrf.mxu0  ;;  %v1750_v1 = vpop.f32.mrf.mxu1 }
 0x11f   :  { %v1518_v2 = vpack.c.bf16 %v1718_v0, %v1717_v60  ;;  %v1598_v3 = vpack.c.bf16 %v1750_v1, %v1749_v61 }
 0x120   :  { %v613_v4 = vpop.f32.mrf.mxu0  ;;  %v741_v5 = vpop.f32.mrf.mxu1 }
 0x121   :  { %1614 = vst [vmem:[%s2040_s2 + $0x78] sm:$0xff] %v1518_v2   ;;  %1630 = vst [vmem:[%s2040_s2 + $0xf8] sm:$0xff] %v1598_v3   ;;  %v1513_v6 = vpack.c.bf16 %v613_v4, %v610_v62  ;;  %v1593_v7 = vpack.c.bf16 %v741_v5, %v738_v63 }
 0x123   :  { %1613 = vst [vmem:[%s2040_s2 + $0x70] sm:$0xff] %v1513_v6   ;;  %1629 = vst [vmem:[%s2040_s2 + $0xf0] sm:$0xff] %v1593_v7  }

// kernel: _lambda_.19
= control target key start
LH: loop header
LB: loop body
LE: loop exit
PB: predicated region body
PF: predicated region fallthrough
CT: control target
= control target key end

     0   :  { %v48_v0 = vmov 0.0   ;;  %s77_s1 = inlined_call_operand.vmem [shape: f32[8,128], index: 1, kind: output, shape index: {}]   ;;  %s78_s0 = inlined_call_operand.vmem [shape: bf16[16,128], index: 0, kind: input, shape index: {}]  }
   0x1   :  { %12 = vst [vmem:[%s77_s1] sm:$0xff] %v48_v0  ;;  %v44_v1 = vld [vmem:[%s78_s0] sm:$0xff]  }
   0x2   :  { %v45_v2 = vunpack.c.l.bf16 %v44_v1  ;;  %v46_v3 = vunpack.c.h.bf16 %v44_v1 }
   0x4   :  { %v18_v4 = vadd.f32 %v46_v3, %v45_v2  ;;  %v28_v5 = vmul.f32 %v45_v2, %v45_v2  ;;  %v29_v6 = vmul.f32 %v46_v3, %v46_v3 }
   0x6   :  { %v19_v7 = vrot.slane %v18_v4, 4  ;;  %v30_v8 = vadd.f32 %v29_v6, %v28_v5 }
   0x8   :  { %v20_v9 = vadd.f32 %v19_v7, %v18_v4  ;;  %v31_v10 = vrot.slane %v30_v8, 4  ;;  %v17_v17 = vld [vmem:[%s77_s1] sm:$0x1]  ;;  %v27_v20 = vld [vmem:[%s77_s1 + $0x1] sm:$0x1] }
   0xa   :  { %v21_v11 = vrot.slane %v20_v9, 2  ;;  %v32_v12 = vadd.f32 %v31_v10, %v30_v8 }
   0xc   :  { %v22_v13 = vadd.f32 %v21_v11, %v20_v9  ;;  %v33_v14 = vrot.slane %v32_v12, 2 }
   0xe   :  { %v23_v15 = vrot.slane %v22_v13, 1  ;;  %v34_v16 = vadd.f32 %v33_v14, %v32_v12 }
  0x10   :  { %v24_v18 = vadd.f32 %v23_v15, %v22_v13  ;;  %v35_v19 = vrot.slane %v34_v16, 1 }
  0x12   :  { %v25_v21 = vadd.f32 %v24_v18, %v17_v17  ;;  %v36_v22 = vadd.f32 %v35_v19, %v34_v16 }
  0x14   :  { %26 = vst [vmem:[%s77_s1] sm:$0x1] %v25_v21  ;;  %v37_v23 = vadd.f32 %v36_v22, %v27_v20 }
  0x16   :  { %38 = vst [vmem:[%s77_s1 + $0x1] sm:$0x1] %v37_v23 }

// kernel: tile.73
= control target key start
LH: loop header
LB: loop body
LE: loop exit
PB: predicated region body
PF: predicated region fallthrough
CT: control target
= control target key end

     0   :  { %s28_s0 = inlined_call_operand.vmem [shape: f32[16], index: 0, kind: input, shape index: {}]   ;;  %s29_s1 = inlined_call_operand.vmem [shape: f32[16,16], index: 1, kind: output, shape index: {}]  }
   0x1   :  { %v4_v0 = vld [vmem:[%s28_s0] ss:$0 sm:$0xff] }
   0x2   :  { %5 = vst [vmem:[%s29_s1] sm:$0xff] %v4_v0  ;;  %8 = vst [vmem:[%s29_s1 + $0x8] sm:$0xff] %v4_v0 }

// kernel: tile.78
= control target key start
LH: loop header
LB: loop body
LE: loop exit
PB: predicated region body
PF: predicated region fallthrough
CT: control target
= control target key end

     0   :  { %s7_s6 = smov 3  ;;  %s21_s9 = smov 3  ;;  %vm4_vm0 = vcmask 130048   ;;  %vm11_vm1 = vcmask 1048448   ;;  %vm18_vm2 = vcmask 917248   ;;  %vm25_vm3 = vcmask 786048   ;;  %s131_s0 = inlined_call_operand.vmem [shape: f32[16,16], index: 0, kind: input, shape index: {}]   ;;  %s132_s1 = inlined_call_operand.vmem [shape: f32[1,256], index: 1, kind: output, shape index: {}]  }
   0x1   :  { %v69_v0 = vld [vmem:[%s131_s0 + $0x7] ss:$8 sm:%s7_s6]   ;;  %s84_s10 = smov 112   ;;  %v71_v1 = vld [vmem:[%s131_s0 + $0x5] ss:$8 sm:%s21_s9]   ;;  %s14_s13 = smov 3 }
   0x2   :  { %9 = vrot.lane.b32.xlu0 %v69_v0, %s84_s10  ;;  %s85_s14 = smov 80   ;;  %v70_v2 = vld [vmem:[%s131_s0 + $0x6] ss:$8 sm:%s14_s13]   ;;  %s28_s17 = smov 3  ;;  %vm32_vm4 = vcmask 654848   ;;  %vm39_vm5 = vcmask 523648  }
   0x3   :  { %23 = vrot.lane.b32.xlu1 %v71_v1, %s85_s14  ;;  %v72_v3 = vld [vmem:[%s131_s0 + $0x4] ss:$8 sm:%s28_s17]   ;;  %s35_s20 = smov 3  ;;  %s42_s21 = smov 3  ;;  %vm46_vm6 = vcmask 392448   ;;  %vm53_vm7 = vcmask 261248  }
   0x4   :  { %s86_s22 = smov 96   ;;  %s87_s23 = smov 64   ;;  %v73_v4 = vld [vmem:[%s131_s0 + $0x3] ss:$8 sm:%s35_s20]   ;;  %v74_v5 = vld [vmem:[%s131_s0 + $0x2] ss:$8 sm:%s42_s21]  }
   0x5   :  { %s2_s26 = smov 3  ;;  %s49_s29 = smov 3 }
   0x6   :  { %16 = vrot.lane.b32.xlu0 %v70_v2, %s86_s22  ;;  %v3_v6 = vld [vmem:[%s131_s0] ss:$8 sm:%s2_s26]   ;;  %s88_s3 = smov 48   ;;  %s89_s4 = smov 32  }
   0x7   :  { %30 = vrot.lane.b32.xlu1 %v72_v3, %s87_s23  ;;  %5 = vst.msk [vmem:[#allocation0] ss:$8 sm:$0x3] %vm4_vm0, %v3_v6   ;;  %v75_v7 = vld [vmem:[%s131_s0 + $0x1] ss:$8 sm:%s49_s29]   ;;  %s90_s0 = smov 16  }
   0xa   :  { %37 = vrot.lane.b32.xlu0 %v73_v4, %s88_s3 }
   0xb   :  { %44 = vrot.lane.b32.xlu1 %v74_v5, %s89_s4 }
   0xe   :  { %51 = vrot.lane.b32.xlu0 %v75_v7, %s90_s0 }
  0x74   :  { %v10_v8 = vpop.permute.xlu0 %9  }
  0x75   :  { %12 = vst.msk [vmem:[#allocation0] ss:$8 sm:$0x3] %vm11_vm1, %v10_v8   ;;  %v24_v9 = vpop.permute.xlu1 %23  }
  0x78   :  { %v17_v10 = vpop.permute.xlu0 %16  }
  0x79   :  { %19 = vst.msk [vmem:[#allocation0] ss:$8 sm:$0x3] %vm18_vm2, %v17_v10   ;;  %v31_v11 = vpop.permute.xlu1 %30  }
  0x7a   :  { %26 = vst.msk [vmem:[#allocation0] ss:$8 sm:$0x3] %vm25_vm3, %v24_v9  }
  0x7b   :  { %33 = vst.msk [vmem:[#allocation0] ss:$8 sm:$0x3] %vm32_vm4, %v31_v11  }
  0x7c   :  { %v38_v12 = vpop.permute.xlu0 %37  }
  0x7d   :  { %40 = vst.msk [vmem:[#allocation0] ss:$8 sm:$0x3] %vm39_vm5, %v38_v12   ;;  %v45_v13 = vpop.permute.xlu1 %44  }
  0x7e   :  { %47 = vst.msk [vmem:[#allocation0] ss:$8 sm:$0x3] %vm46_vm6, %v45_v13  }
  0x80   :  { %v52_v14 = vpop.permute.xlu0 %51  }
  0x81   :  { %54 = vst.msk [vmem:[#allocation0] ss:$8 sm:$0x3] %vm53_vm7, %v52_v14  }
  0x88   :  { %v59_v15 = vld [vmem:[#allocation0] sm:$0x1]  ;;  %v64_v16 = vld [vmem:[#allocation0 + $0x8] sm:$0x1] }
  0x89   :  { %62 = vst [vmem:[%s132_s1] sm:$0x1] %v59_v15  ;;  %76 = vst [vmem:[%s132_s1 + $0x1] sm:$0x1] %v64_v16 }

// kernel: _lambda_.18
= control target key start
LH: loop header
LB: loop body
LE: loop exit
PB: predicated region body
PF: predicated region fallthrough
CT: control target
= control target key end

     0   :  { %s739_s1 = inlined_call_operand.vmem [shape: bf16[1,128,128], index: 1, kind: input, shape index: {}]   ;;  %s740_s0 = inlined_call_operand.vmem [shape: bf16[1,128,128], index: 0, kind: input, shape index: {}]   ;;  %s741_s2 = inlined_call_operand.vmem [shape: bf16[1,128,128], index: 2, kind: output, shape index: {}]  }
   0x1   :  { %v616_v0 = vld [vmem:[%s739_s1 + $0x38] sm:$0xff]   ;;  %v617_v1 = vld [vmem:[%s739_s1 + $0x30] sm:$0xff]   ;;  %v618_v2 = vld [vmem:[%s739_s1 + $0x28] sm:$0xff]  }
   0x2   :  { %568 = vmatprep.subr.bf16.mxu0 %v616_v0  ;;  %600 = vmatprep.subr.bf16.mxu1 %v616_v0  ;;  %v619_v3 = vld [vmem:[%s739_s1 + $0x20] sm:$0xff]   ;;  %v620_v14 = vld [vmem:[%s739_s1 + $0x18] sm:$0xff]   ;;  %v621_v19 = vld [vmem:[%s739_s1 + $0x10] sm:$0xff]  }
   0x3   :  { %569 = vmatpush3.bf16.msra.mxu0 %v616_v0  ;;  %608 = vmatpush3.bf16.msra.mxu1 %v616_v0  ;;  %v33_v4 = vld [vmem:[%s740_s0] sm:$0xf]  ;;  %v34_v5 = vld [vmem:[%s740_s0 + $0x4] sm:$0xf]  ;;  %v35_v20 = vld [vmem:[%s740_s0 + $0x8] sm:$0xf] }
   0x4   :  { %570 = vmatprep.subr.bf16.mxu0 %v617_v1  ;;  %601 = vmatprep.subr.bf16.mxu1 %v617_v1  ;;  %v41_v6 = vld [vmem:[%s740_s0 + $0x20] sm:$0xf]  ;;  %vm49_vm0 = vcmp.gt.bf16.partialorder %v33_v4, 0  ;;  %vm50_vm1 = vcmp.gt.bf16.partialorder %v34_v5, 0  ;;  %v65_v7 = vmul.bf16 1045249613, %v33_v4 }
   0x5   :  { %v66_v8 = vmul.bf16 1045249613, %v34_v5  ;;  %v42_v9 = vld [vmem:[%s740_s0 + $0x24] sm:$0xf]  ;;  %vm57_vm2 = vcmp.gt.bf16.partialorder %v41_v6, 0  ;;  %v622_v22 = vld [vmem:[%s739_s1 + $0x8] sm:$0xff]  }
   0x6   :  { %v73_v10 = vmul.bf16 1045249613, %v41_v6  ;;  %v81_v11 = vsel %vm49_vm0, %v33_v4, %v65_v7  ;;  %vm58_vm3 = vcmp.gt.bf16.partialorder %v42_v9, 0  ;;  %v74_v13 = vmul.bf16 1045249613, %v42_v9  ;;  %v623_v30 = vld [vmem:[%s739_s1] sm:$0xff]  }
   0x7   :  { %571 = vmatpush3.bf16.msra.mxu0 %v617_v1  ;;  %609 = vmatpush3.bf16.msra.mxu1 %v617_v1  ;;  %v82_v12 = vsel %vm50_vm1, %v34_v5, %v66_v8  ;;  %v36_v21 = vld [vmem:[%s740_s0 + $0xc] sm:$0xf]  ;;  %v43_v23 = vld [vmem:[%s740_s0 + $0x28] sm:$0xf]  ;;  %v67_v25 = vmul.bf16 1045249613, %v35_v20 }
   0x8   :  { %572 = vmatprep.subr.bf16.mxu0 %v618_v2  ;;  %602 = vmatprep.subr.bf16.mxu1 %v618_v2  ;;  %v457_v15 = vcombine.low %v81_v11, %v82_v12  ;;  %v89_v16 = vsel %vm57_vm2, %v41_v6, %v73_v10  ;;  %v90_v17 = vsel %vm58_vm3, %v42_v9, %v74_v13  ;;  %v44_v24 = vld [vmem:[%s740_s0 + $0x2c] sm:$0xf]  ;;  %v37_v26 = vld [vmem:[%s740_s0 + $0x10] sm:$0xf]  ;;  %v38_v27 = vld [vmem:[%s740_s0 + $0x14] sm:$0xf] }
   0x9   :  { %v461_v18 = vcombine.low %v89_v16, %v90_v17  ;;  %vm51_vm4 = vcmp.gt.bf16.partialorder %v35_v20, 0  ;;  %vm52_vm5 = vcmp.gt.bf16.partialorder %v36_v21, 0  ;;  %v45_v28 = vld [vmem:[%s740_s0 + $0x30] sm:$0xf]  ;;  %v46_v29 = vld [vmem:[%s740_s0 + $0x34] sm:$0xf] }
   0xa   :  { %584 = vmatprep.mubr.bf16.mxu0 %v457_v15  ;;  %v68_v31 = vmul.bf16 1045249613, %v36_v21  ;;  %vm59_vm6 = vcmp.gt.bf16.partialorder %v43_v23, 0  ;;  %vm60_vm7 = vcmp.gt.bf16.partialorder %v44_v24, 0  ;;  %v75_v32 = vmul.bf16 1045249613, %v43_v23 }
   0xb   :  { %573 = vmatpush3.bf16.msra.mxu0 %v618_v2  ;;  %610 = vmatpush3.bf16.msra.mxu1 %v618_v2  ;;  %v76_v33 = vmul.bf16 1045249613, %v44_v24  ;;  %v69_v34 = vmul.bf16 1045249613, %v37_v26  ;;  %v70_v35 = vmul.bf16 1045249613, %v38_v27  ;;  %v83_v38 = vsel %vm51_vm4, %v35_v20, %v67_v25 }
   0xc   :  { %574 = vmatprep.subr.bf16.mxu0 %v619_v3  ;;  %603 = vmatprep.subr.bf16.mxu1 %v619_v3  ;;  %vm53_vm8 = vcmp.gt.bf16.partialorder %v37_v26, 0  ;;  %vm54_vm9 = vcmp.gt.bf16.partialorder %v38_v27, 0  ;;  %v77_v36 = vmul.bf16 1045249613, %v45_v28  ;;  %v78_v37 = vmul.bf16 1045249613, %v46_v29 }
   0xd   :  { %592 = vmatprep.mubr.bf16.mxu1 %v461_v18  ;;  %vm61_vm10 = vcmp.gt.bf16.partialorder %v45_v28, 0  ;;  %vm62_vm11 = vcmp.gt.bf16.partialorder %v46_v29, 0  ;;  %v84_v39 = vsel %vm52_vm5, %v36_v21, %v68_v31  ;;  %v91_v40 = vsel %vm59_vm6, %v43_v23, %v75_v32  ;;  %v39_v44 = vld [vmem:[%s740_s0 + $0x18] sm:$0xf]  ;;  %v40_v47 = vld [vmem:[%s740_s0 + $0x1c] sm:$0xf] }
   0xe   :  { %v92_v41 = vsel %vm60_vm7, %v44_v24, %v76_v33  ;;  %v85_v42 = vsel %vm53_vm8, %v37_v26, %v69_v34  ;;  %v86_v43 = vsel %vm54_vm9, %v38_v27, %v70_v35  ;;  %v93_v45 = vsel %vm61_vm10, %v45_v28, %v77_v36  ;;  %v47_v48 = vld [vmem:[%s740_s0 + $0x38] sm:$0xf]  ;;  %v48_v49 = vld [vmem:[%s740_s0 + $0x3c] sm:$0xf] }
   0xf   :  { %575 = vmatpush3.bf16.msra.mxu0 %v619_v3  ;;  %611 = vmatpush3.bf16.msra.mxu1 %v619_v3  ;;  %v94_v46 = vsel %vm62_vm11, %v46_v29, %v78_v37  ;;  %v458_v50 = vcombine.low %v83_v38, %v84_v39  ;;  %v462_v51 = vcombine.low %v91_v40, %v92_v41  ;;  %vm55_vm12 = vcmp.gt.bf16.partialorder %v39_v44, 0 }
  0x10   :  { %576 = vmatprep.subr.bf16.mxu0 %v620_v14  ;;  %604 = vmatprep.subr.bf16.mxu1 %v620_v14  ;;  %v459_v52 = vcombine.low %v85_v42, %v86_v43  ;;  %v71_v53 = vmul.bf16 1045249613, %v39_v44  ;;  %v463_v54 = vcombine.low %v93_v45, %v94_v46  ;;  %v72_v55 = vmul.bf16 1045249613, %v40_v47 }
  0x11   :  { %v79_v56 = vmul.bf16 1045249613, %v47_v48  ;;  %v80_v57 = vmul.bf16 1045249613, %v48_v49  ;;  %vm56_vm13 = vcmp.gt.bf16.partialorder %v40_v47, 0  ;;  %vm63_vm14 = vcmp.gt.bf16.partialorder %v47_v48, 0 }
  0x12   :  { %vm64_vm15 = vcmp.gt.bf16.partialorder %v48_v49, 0  ;;  %v87_v58 = vsel %vm55_vm12, %v39_v44, %v71_v53  ;;  %v88_v59 = vsel %vm56_vm13, %v40_v47, %v72_v55 }
  0x13   :  { %577 = vmatpush3.bf16.msra.mxu0 %v620_v14  ;;  %612 = vmatpush3.bf16.msra.mxu1 %v620_v14  ;;  %v95_v60 = vsel %vm63_vm14, %v47_v48, %v79_v56  ;;  %v96_v61 = vsel %vm64_vm15, %v48_v49, %v80_v57  ;;  %v460_v62 = vcombine.low %v87_v58, %v88_v59 }
  0x14   :  { %578 = vmatprep.subr.bf16.mxu0 %v621_v19  ;;  %605 = vmatprep.subr.bf16.mxu1 %v621_v19  ;;  %v464_v63 = vcombine.low %v95_v60, %v96_v61 }
  0x17   :  { %579 = vmatpush3.bf16.msra.mxu0 %v621_v19  ;;  %613 = vmatpush3.bf16.msra.mxu1 %v621_v19 }
  0x18   :  { %580 = vmatprep.subr.bf16.mxu0 %v622_v22  ;;  %606 = vmatprep.subr.bf16.mxu1 %v622_v22 }
  0x1b   :  { %581 = vmatpush3.bf16.msra.mxu0 %v622_v22  ;;  %614 = vmatpush3.bf16.msra.mxu1 %v622_v22 }
  0x1c   :  { %582 = vmatprep.subr.bf16.mxu0 %v623_v30  ;;  %607 = vmatprep.subr.bf16.mxu1 %v623_v30 }
  0x1f   :  { %583 = vmatpush3.bf16.msra.mxu0 %v623_v30  ;;  %615 = vmatpush3.bf16.msra.mxu1 %v623_v30 }
  0x22   :  { %585 = vmatmul.mubr.bf16.vlgmr.msra.gmra.mxu0 %v458_v50  ;;  %593 = vmatmul.mubr.bf16.vlgmr.msra.gmra.mxu1 %v462_v51 }
  0x23   :  { %588 = vmatprep.mubr.bf16.mxu0 %v459_v52  ;;  %596 = vmatprep.mubr.bf16.mxu1 %v463_v54 }
  0x2a   :  { %589 = vmatmul.mubr.bf16.gmra.mxu0 %v460_v62  ;;  %597 = vmatmul.mubr.bf16.gmra.mxu1 %v464_v63 }
  0xe2   :  { %v586_v0 = vpop.f32.mrf.mxu0  ;;  %v594_v1 = vpop.f32.mrf.mxu1 }
  0xe4   :  { %v259_v2 = vpop.f32.mrf.mxu0  ;;  %v291_v3 = vpop.f32.mrf.mxu1 }
  0xe6   :  { %v587_v4 = vpop.f32.mrf.mxu0  ;;  %v595_v5 = vpop.f32.mrf.mxu1 }
  0xe7   :  { %v513_v6 = vpack.c.bf16 %v587_v4, %v586_v0  ;;  %v533_v7 = vpack.c.bf16 %v595_v5, %v594_v1 }
  0xe8   :  { %v262_v8 = vpop.f32.mrf.mxu0  ;;  %v294_v9 = vpop.f32.mrf.mxu1 }
  0xe9   :  { %545 = vst [vmem:[%s741_s2 + $0x8] sm:$0xff] %v513_v6   ;;  %549 = vst [vmem:[%s741_s2 + $0x28] sm:$0xff] %v533_v7   ;;  %v508_v10 = vpack.c.bf16 %v262_v8, %v259_v2  ;;  %v528_v11 = vpack.c.bf16 %v294_v9, %v291_v3 }
  0xea   :  { %v590_v12 = vpop.f32.mrf.mxu0  ;;  %v598_v13 = vpop.f32.mrf.mxu1 }
  0xeb   :  { %509 = vst [vmem:[%s741_s2] sm:$0xff] %v508_v10   ;;  %548 = vst [vmem:[%s741_s2 + $0x20] sm:$0xff] %v528_v11  }
  0xec   :  { %v275_v14 = vpop.f32.mrf.mxu0  ;;  %v307_v15 = vpop.f32.mrf.mxu1 }
  0xee   :  { %v591_v16 = vpop.f32.mrf.mxu0  ;;  %v599_v17 = vpop.f32.mrf.mxu1 }
  0xef   :  { %v523_v18 = vpack.c.bf16 %v591_v16, %v590_v12  ;;  %v543_v19 = vpack.c.bf16 %v599_v17, %v598_v13 }
  0xf0   :  { %v278_v20 = vpop.f32.mrf.mxu0  ;;  %v310_v21 = vpop.f32.mrf.mxu1 }
  0xf1   :  { %547 = vst [vmem:[%s741_s2 + $0x18] sm:$0xff] %v523_v18   ;;  %551 = vst [vmem:[%s741_s2 + $0x38] sm:$0xff] %v543_v19   ;;  %v518_v22 = vpack.c.bf16 %v278_v20, %v275_v14  ;;  %v538_v23 = vpack.c.bf16 %v310_v21, %v307_v15 }
  0xf3   :  { %546 = vst [vmem:[%s741_s2 + $0x10] sm:$0xff] %v518_v22   ;;  %550 = vst [vmem:[%s741_s2 + $0x30] sm:$0xff] %v538_v23  }

// kernel: tile.83
= control target key start
LH: loop header
LB: loop body
LE: loop exit
PB: predicated region body
PF: predicated region fallthrough
CT: control target
= control target key end

     0   :  { %s28_s0 = inlined_call_operand.vmem [shape: f32[32], index: 0, kind: input, shape index: {}]   ;;  %s29_s1 = inlined_call_operand.vmem [shape: f32[16,32], index: 1, kind: output, shape index: {}]  }
   0x1   :  { %v4_v0 = vld [vmem:[%s28_s0] ss:$0 sm:$0xff] }
   0x2   :  { %5 = vst [vmem:[%s29_s1] sm:$0xff] %v4_v0  ;;  %8 = vst [vmem:[%s29_s1 + $0x8] sm:$0xff] %v4_v0 }

// kernel: tile.88
= control target key start
LH: loop header
LB: loop body
LE: loop exit
PB: predicated region body
PF: predicated region fallthrough
CT: control target
= control target key end

     0   :  { %s62_s8 = smov 96   ;;  %vm3_vm0 = vcmask 261120   ;;  %s64_s15 = smov 64   ;;  %vm9_vm1 = vcmask 1048320   ;;  %vm15_vm2 = vcmask 785920   ;;  %vm21_vm3 = vcmask 523520   ;;  %s99_s0 = inlined_call_operand.vmem [shape: f32[16,32], index: 0, kind: input, shape index: {}]   ;;  %s100_s1 = inlined_call_operand.vmem [shape: f32[1,512], index: 1, kind: output, shape index: {}]  }
   0x1   :  { %v53_v0 = vld [vmem:[%s99_s0 + $0x3] ss:$4 sm:$0xf]   ;;  %v54_v1 = vld [vmem:[%s99_s0 + $0x2] ss:$4 sm:$0xf]  }
   0x2   :  { %7 = vrot.lane.b32.xlu0 %v53_v0, %s62_s8  ;;  %v55_v2 = vld [vmem:[%s99_s0 + $0x1] ss:$4 sm:$0xf]   ;;  %v2_v3 = vld [vmem:[%s99_s0] ss:$4 sm:$0xf]  }
   0x3   :  { %s63_s0 = smov 32   ;;  %4 = vst.msk [vmem:[#allocation0] ss:$8 sm:$0xf] %vm3_vm0, %v2_v3  }
   0x4   :  { %19 = vrot.lane.b32.xlu1 %v55_v2, %s63_s0 }
   0x6   :  { %13 = vrot.lane.b32.xlu0 %v54_v1, %s64_s15 }
  0x74   :  { %v8_v4 = vpop.permute.xlu0 %7  }
  0x75   :  { %10 = vst.msk [vmem:[#allocation0] ss:$8 sm:$0xf] %vm9_vm1, %v8_v4  }
  0x76   :  { %v20_v5 = vpop.permute.xlu1 %19  }
  0x78   :  { %v14_v6 = vpop.permute.xlu0 %13  }
  0x79   :  { %16 = vst.msk [vmem:[#allocation0] ss:$8 sm:$0xf] %vm15_vm2, %v14_v6  }
  0x7a   :  { %22 = vst.msk [vmem:[#allocation0] ss:$8 sm:$0xf] %vm21_vm3, %v20_v5  }
  0x81   :  { %v27_v7 = vld [vmem:[#allocation0] sm:$0x1]  ;;  %v32_v8 = vld [vmem:[#allocation0 + $0x8] sm:$0x1]  ;;  %v38_v9 = vld [vmem:[#allocation0 + $0x10] sm:$0x1] }
  0x82   :  { %30 = vst [vmem:[%s100_s1] sm:$0x1] %v27_v7  ;;  %56 = vst [vmem:[%s100_s1 + $0x1] sm:$0x1] %v32_v8  ;;  %v45_v10 = vld [vmem:[#allocation0 + $0x18] sm:$0x1] }
  0x83   :  { %57 = vst [vmem:[%s100_s1 + $0x2] sm:$0x1] %v38_v9  ;;  %58 = vst [vmem:[%s100_s1 + $0x3] sm:$0x1] %v45_v10 }

// kernel: _lambda_.20
= control target key start
LH: loop header
LB: loop body
LE: loop exit
PB: predicated region body
PF: predicated region fallthrough
CT: control target
= control target key end

     0   :  { %v40_v5 = vlaneseq  ;;  %s520_s1 = inlined_call_operand.vmem [shape: bf16[1,256,128], index: 1, kind: input, shape index: {}]   ;;  %s521_s0 = inlined_call_operand.vmem [shape: bf16[1,32,256], index: 0, kind: input, shape index: {}]   ;;  %s522_s2 = inlined_call_operand.vmem [shape: f32[1,256], index: 2, kind: input, shape index: {}]   ;;  %s523_s3 = inlined_call_operand.vmem [shape: f32[1,256], index: 3, kind: input, shape index: {}]   ;;  %s524_s4 = inlined_call_operand.vmem [shape: bf16[1,32,128], index: 4, kind: output, shape index: {}]  }
   0x1   :  { %v405_v0 = vld [vmem:[%s520_s1 + $0x78] sm:$0xff]   ;;  %v407_v2 = vld [vmem:[%s520_s1 + $0x70] sm:$0xff]   ;;  %v409_v4 = vld [vmem:[%s520_s1 + $0x68] sm:$0xff]  }
   0x2   :  { %v406_v1 = vld [vmem:[%s520_s1 + $0x38] sm:$0xff]   ;;  %361 = vmatprep.subr.bf16.mxu0 %v405_v0  ;;  %389 = vmatprep.subr.bf16.mxu1 %v405_v0  ;;  %v408_v3 = vld [vmem:[%s520_s1 + $0x30] sm:$0xff]   ;;  %v410_v6 = vld [vmem:[%s520_s1 + $0x28] sm:$0xff]   ;;  %v41_v8 = vshrl.u32 %v40_v5, 7 }
   0x3   :  { %362 = vmatpush3.bf16.msra.mxu0 %v406_v1  ;;  %397 = vmatpush3.bf16.msra.mxu1 %v406_v1  ;;  %v411_v7 = vld [vmem:[%s520_s1 + $0x60] sm:$0xff]   ;;  %v413_v10 = vld [vmem:[%s520_s1 + $0x58] sm:$0xff]   ;;  %v415_v14 = vld [vmem:[%s520_s1 + $0x50] sm:$0xff]  }
   0x4   :  { %363 = vmatprep.subr.bf16.mxu0 %v407_v2  ;;  %390 = vmatprep.subr.bf16.mxu1 %v407_v2  ;;  %v412_v9 = vld [vmem:[%s520_s1 + $0x20] sm:$0xff]   ;;  %v42_v11 = vsub.s32 0, %v41_v8  ;;  %v414_v12 = vld [vmem:[%s520_s1 + $0x18] sm:$0xff]   ;;  %v46_v13 = vsub.s32 1, %v41_v8  ;;  %v27_v16 = vld [vmem:[%s521_s0 + $0x8] sm:$0xff] }
   0x5   :  { %v26_v15 = vld [vmem:[%s521_s0] sm:$0xff]  ;;  %v32_v20 = vunpack.c.l.bf16 %v27_v16  ;;  %v33_v21 = vunpack.c.h.bf16 %v27_v16  ;;  %v28_v23 = vld [vmem:[%s521_s0 + $0x10] sm:$0xff]  ;;  %v29_v24 = vld [vmem:[%s521_s0 + $0x18] sm:$0xff] }
   0x6   :  { %v38_v17 = vld [vmem:[%s522_s2] sm:$0x3]  ;;  %v30_v18 = vunpack.c.l.bf16 %v26_v15  ;;  %v31_v19 = vunpack.c.h.bf16 %v26_v15  ;;  %v416_v29 = vld [vmem:[%s520_s1 + $0x10] sm:$0xff]   ;;  %v34_v30 = vunpack.c.l.bf16 %v28_v23  ;;  %v35_v31 = vunpack.c.h.bf16 %v28_v23  ;;  %v417_v34 = vld [vmem:[%s520_s1 + $0x48] sm:$0xff]  }
   0x7   :  { %364 = vmatpush3.bf16.msra.mxu0 %v408_v3  ;;  %398 = vmatpush3.bf16.msra.mxu1 %v408_v3  ;;  %v58_v22 = vld [vmem:[%s523_s3] sm:$0x3]  ;;  %v43_v25 = vrot.slane %v38_v17, %v42_v11  ;;  %v47_v26 = vrot.slane %v38_v17, %v46_v13  ;;  %v36_v32 = vunpack.c.l.bf16 %v29_v24  ;;  %v37_v33 = vunpack.c.h.bf16 %v29_v24  ;;  %v418_v46 = vld [vmem:[%s520_s1 + $0x8] sm:$0xff]  }
   0x8   :  { %365 = vmatprep.subr.bf16.mxu0 %v409_v4  ;;  %391 = vmatprep.subr.bf16.mxu1 %v409_v4  ;;  %v63_v27 = vrot.slane %v58_v22, %v42_v11  ;;  %v67_v28 = vrot.slane %v58_v22, %v46_v13  ;;  %v419_v47 = vld [vmem:[%s520_s1 + $0x40] sm:$0xff]  }
   0x9   :  { %v51_v35 = vmul.f32 %v47_v26, %v31_v19  ;;  %v53_v36 = vmul.f32 %v47_v26, %v33_v21  ;;  %v50_v37 = vmul.f32 %v43_v25, %v30_v18  ;;  %v55_v38 = vmul.f32 %v47_v26, %v35_v31  ;;  %v420_v57 = vld [vmem:[%s520_s1] sm:$0xff]  }
   0xa   :  { %v57_v39 = vmul.f32 %v47_v26, %v37_v33  ;;  %v52_v40 = vmul.f32 %v43_v25, %v32_v20  ;;  %v54_v41 = vmul.f32 %v43_v25, %v34_v30  ;;  %v56_v45 = vmul.f32 %v43_v25, %v36_v32 }
   0xb   :  { %366 = vmatpush3.bf16.msra.mxu0 %v410_v6  ;;  %399 = vmatpush3.bf16.msra.mxu1 %v410_v6  ;;  %v71_v42 = vadd.f32 %v67_v28, %v51_v35  ;;  %v73_v43 = vadd.f32 %v67_v28, %v53_v36  ;;  %v70_v44 = vadd.f32 %v63_v27, %v50_v37 }
   0xc   :  { %367 = vmatprep.subr.bf16.mxu0 %v411_v7  ;;  %392 = vmatprep.subr.bf16.mxu1 %v411_v7  ;;  %v75_v48 = vadd.f32 %v67_v28, %v55_v38  ;;  %v77_v49 = vadd.f32 %v67_v28, %v57_v39  ;;  %v72_v50 = vadd.f32 %v63_v27, %v52_v40 }
   0xd   :  { %vm79_vm0 = vcmp.gt.f32.partialorder %v71_v42, 0.0  ;;  %vm81_vm1 = vcmp.gt.f32.partialorder %v73_v43, 0.0  ;;  %v87_v51 = vmul.f32 0.2, %v71_v42  ;;  %v89_v52 = vmul.f32 0.2, %v73_v43 }
   0xe   :  { %vm83_vm2 = vcmp.gt.f32.partialorder %v75_v48, 0.0  ;;  %vm85_vm3 = vcmp.gt.f32.partialorder %v77_v49, 0.0  ;;  %v91_v53 = vmul.f32 0.2, %v75_v48  ;;  %v93_v54 = vmul.f32 0.2, %v77_v49 }
   0xf   :  { %368 = vmatpush3.bf16.msra.mxu0 %v412_v9  ;;  %400 = vmatpush3.bf16.msra.mxu1 %v412_v9  ;;  %v95_v55 = vsel %vm79_vm0, %v71_v42, %v87_v51  ;;  %v97_v56 = vsel %vm81_vm1, %v73_v43, %v89_v52  ;;  %vm78_vm4 = vcmp.gt.f32.partialorder %v70_v44, 0.0  ;;  %vm80_vm5 = vcmp.gt.f32.partialorder %v72_v50, 0.0 }
  0x10   :  { %369 = vmatprep.subr.bf16.mxu0 %v413_v10  ;;  %393 = vmatprep.subr.bf16.mxu1 %v413_v10  ;;  %v103_v58 = vpack.c.bf16 %v97_v56, %v95_v55  ;;  %v99_v59 = vsel %vm83_vm2, %v75_v48, %v91_v53  ;;  %v101_v60 = vsel %vm85_vm3, %v77_v49, %v93_v54  ;;  %v86_v61 = vmul.f32 0.2, %v70_v44 }
  0x11   :  { %v105_v62 = vpack.c.bf16 %v101_v60, %v99_v59  ;;  %v88_v63 = vmul.f32 0.2, %v72_v50  ;;  %v74_v0 = vadd.f32 %v63_v27, %v54_v41  ;;  %v76_v1 = vadd.f32 %v63_v27, %v56_v45 }
  0x12   :  { %270 = vmatprep.mubr.bf16.mxu0 %v103_v58  ;;  %v94_v2 = vsel %vm78_vm4, %v70_v44, %v86_v61 }
  0x13   :  { %370 = vmatpush3.bf16.msra.mxu0 %v414_v12  ;;  %401 = vmatpush3.bf16.msra.mxu1 %v414_v12  ;;  %v96_v3 = vsel %vm80_vm5, %v72_v50, %v88_v63  ;;  %vm82_vm6 = vcmp.gt.f32.partialorder %v74_v0, 0.0  ;;  %vm84_vm7 = vcmp.gt.f32.partialorder %v76_v1, 0.0  ;;  %v90_v4 = vmul.f32 0.2, %v74_v0 }
  0x14   :  { %371 = vmatprep.subr.bf16.mxu0 %v415_v14  ;;  %394 = vmatprep.subr.bf16.mxu1 %v415_v14  ;;  %v102_v5 = vpack.c.bf16 %v96_v3, %v94_v2  ;;  %v92_v6 = vmul.f32 0.2, %v76_v1 }
  0x15   :  { %278 = vmatprep.mubr.bf16.mxu1 %v105_v62  ;;  %v98_v7 = vsel %vm82_vm6, %v74_v0, %v90_v4 }
  0x16   :  { %v100_v8 = vsel %vm84_vm7, %v76_v1, %v92_v6 }
  0x17   :  { %372 = vmatpush3.bf16.msra.mxu0 %v416_v29  ;;  %402 = vmatpush3.bf16.msra.mxu1 %v416_v29  ;;  %v104_v9 = vpack.c.bf16 %v100_v8, %v98_v7 }
  0x18   :  { %373 = vmatprep.subr.bf16.mxu0 %v417_v34  ;;  %395 = vmatprep.subr.bf16.mxu1 %v417_v34 }
  0x1b   :  { %374 = vmatpush3.bf16.msra.mxu0 %v418_v46  ;;  %403 = vmatpush3.bf16.msra.mxu1 %v418_v46 }
  0x1c   :  { %375 = vmatprep.subr.bf16.mxu0 %v419_v47  ;;  %396 = vmatprep.subr.bf16.mxu1 %v419_v47 }
  0x1f   :  { %376 = vmatpush3.bf16.msra.mxu0 %v420_v57  ;;  %404 = vmatpush3.bf16.msra.mxu1 %v420_v57 }
  0x22   :  { %271 = vmatmul.mubr.bf16.vlgmr.msra.gmra.mxu0 %v102_v5  ;;  %279 = vmatmul.mubr.bf16.vlgmr.msra.gmra.mxu1 %v104_v9 }
  0xe2   :  { %v377_v10 = vpop.f32.mrf.mxu0  ;;  %v383_v11 = vpop.f32.mrf.mxu1 }
  0xe4   :  { %v378_v12 = vpop.f32.mrf.mxu0  ;;  %v384_v13 = vpop.f32.mrf.mxu1 }
  0xe5   :  { %v379_v17 = vadd.f32 %v378_v12, %v377_v10  ;;  %v385_v20 = vadd.f32 %v384_v13, %v383_v11 }
  0xe6   :  { %v380_v14 = vpop.f32.mrf.mxu0  ;;  %v386_v15 = vpop.f32.mrf.mxu1 }
  0xe8   :  { %v381_v16 = vpop.f32.mrf.mxu0  ;;  %v387_v19 = vpop.f32.mrf.mxu1 }
  0xe9   :  { %v382_v18 = vadd.f32 %v381_v16, %v380_v14  ;;  %v388_v22 = vadd.f32 %v387_v19, %v386_v15 }
  0xeb   :  { %v353_v21 = vpack.c.bf16 %v382_v18, %v379_v17  ;;  %v358_v23 = vpack.c.bf16 %v388_v22, %v385_v20 }
  0xed   :  { %354 = vst [vmem:[%s524_s4] sm:$0xff] %v353_v21   ;;  %360 = vst [vmem:[%s524_s4 + $0x8] sm:$0xff] %v358_v23  }

// kernel: tile.93
= control target key start
LH: loop header
LB: loop body
LE: loop exit
PB: predicated region body
PF: predicated region fallthrough
CT: control target
= control target key end

     0   :  { %s28_s0 = inlined_call_operand.vmem [shape: f32[64], index: 0, kind: input, shape index: {}]   ;;  %s29_s1 = inlined_call_operand.vmem [shape: f32[16,64], index: 1, kind: output, shape index: {}]  }
   0x1   :  { %v4_v0 = vld [vmem:[%s28_s0] ss:$0 sm:$0xff] }
   0x2   :  { %5 = vst [vmem:[%s29_s1] sm:$0xff] %v4_v0  ;;  %8 = vst [vmem:[%s29_s1 + $0x8] sm:$0xff] %v4_v0 }

// kernel: tile.98
= control target key start
LH: loop header
LB: loop body
LE: loop exit
PB: predicated region body
PF: predicated region fallthrough
CT: control target
= control target key end

     0   :  { %vm3_vm0 = vcmask 523264   ;;  %vm10_vm1 = vcmask 1048064   ;;  %s125_s0 = inlined_call_operand.vmem [shape: f32[16,64], index: 0, kind: input, shape index: {}]   ;;  %s126_s1 = inlined_call_operand.vmem [shape: f32[1,1024], index: 1, kind: output, shape index: {}]  }
   0x1   :  { %v75_v0 = vld [vmem:[%s125_s0 + $0x1] ss:$2 sm:$0xff]   ;;  %v2_v1 = vld [vmem:[%s125_s0] ss:$2 sm:$0xff]   ;;  %s84_s0 = smov 64  }
   0x2   :  { %8 = vrot.lane.b32.xlu0 %v75_v0, %s84_s0  ;;  %4 = vst.msk [vmem:[#allocation0] ss:$8 sm:$0xf] %vm3_vm0, %v2_v1   ;;  %5 = vst.msk [vmem:[#allocation0] ss:$8 sm:$0xf0] %vm3_vm0, %v2_v1  }
  0x74   :  { %v9_v2 = vpop.permute.xlu0 %8  }
  0x75   :  { %11 = vst.msk [vmem:[#allocation0] ss:$8 sm:$0xf] %vm10_vm1, %v9_v2   ;;  %12 = vst.msk [vmem:[#allocation0] ss:$8 sm:$0xf0] %vm10_vm1, %v9_v2  }
  0x7c   :  { %v17_v3 = vld [vmem:[#allocation0] sm:$0x1]  ;;  %v22_v4 = vld [vmem:[#allocation0 + $0x8] sm:$0x1]  ;;  %v28_v5 = vld [vmem:[#allocation0 + $0x10] sm:$0x1] }
  0x7d   :  { %20 = vst [vmem:[%s126_s1] sm:$0x1] %v17_v3  ;;  %76 = vst [vmem:[%s126_s1 + $0x1] sm:$0x1] %v22_v4  ;;  %v35_v6 = vld [vmem:[#allocation0 + $0x18] sm:$0x1] }
  0x7e   :  { %77 = vst [vmem:[%s126_s1 + $0x2] sm:$0x1] %v28_v5  ;;  %v42_v7 = vld [vmem:[#allocation0 + $0x20] sm:$0x1]  ;;  %v49_v8 = vld [vmem:[#allocation0 + $0x28] sm:$0x1] }
  0x7f   :  { %78 = vst [vmem:[%s126_s1 + $0x3] sm:$0x1] %v35_v6  ;;  %79 = vst [vmem:[%s126_s1 + $0x4] sm:$0x1] %v42_v7  ;;  %v56_v9 = vld [vmem:[#allocation0 + $0x30] sm:$0x1] }
  0x80   :  { %80 = vst [vmem:[%s126_s1 + $0x5] sm:$0x1] %v49_v8  ;;  %v63_v10 = vld [vmem:[#allocation0 + $0x38] sm:$0x1]  ;;  %81 = vst [vmem:[%s126_s1 + $0x6] sm:$0x1] %v56_v9 }
  0x81   :  { %82 = vst [vmem:[%s126_s1 + $0x7] sm:$0x1] %v63_v10 }

// kernel: _lambda_.22
= control target key start
LH: loop header
LB: loop body
LE: loop exit
PB: predicated region body
PF: predicated region fallthrough
CT: control target
= control target key end

     0   :  { %v38_v23 = vlaneseq  ;;  %s746_s1 = inlined_call_operand.vmem [shape: bf16[1,512,128], index: 1, kind: input, shape index: {}]   ;;  %s747_s0 = inlined_call_operand.vmem [shape: bf16[1,16,512], index: 0, kind: input, shape index: {}]   ;;  %s748_s2 = inlined_call_operand.vmem [shape: f32[1,512], index: 2, kind: input, shape index: {}]   ;;  %s749_s3 = inlined_call_operand.vmem [shape: f32[1,512], index: 3, kind: input, shape index: {}]   ;;  %s750_s4 = inlined_call_operand.vmem [shape: bf16[1,16,128], index: 4, kind: output, shape index: {}]  }
   0x1   :  { %v572_v0 = vld [vmem:[%s746_s1 + $0x78] sm:$0xff]   ;;  %v576_v4 = vld [vmem:[%s746_s1 + $0x70] sm:$0xff]   ;;  %v580_v8 = vld [vmem:[%s746_s1 + $0x68] sm:$0xff]  }
   0x2   :  { %v573_v1 = vld [vmem:[%s746_s1 + $0xf8] sm:$0xff]   ;;  %528 = vmatprep.subr.bf16.mxu0 %v572_v0  ;;  %v577_v5 = vld [vmem:[%s746_s1 + $0xf0] sm:$0xff]   ;;  %v581_v9 = vld [vmem:[%s746_s1 + $0xe8] sm:$0xff]   ;;  %v39_v28 = vshrl.u32 %v38_v23, 7 }
   0x3   :  { %v574_v2 = vld [vmem:[%s746_s1 + $0x38] sm:$0xff]   ;;  %550 = vmatprep.subr.bf16.mxu1 %v573_v1  ;;  %v578_v6 = vld [vmem:[%s746_s1 + $0x30] sm:$0xff]   ;;  %v582_v10 = vld [vmem:[%s746_s1 + $0x28] sm:$0xff]  }
   0x4   :  { %v575_v3 = vld [vmem:[%s746_s1 + $0xb8] sm:$0xff]   ;;  %529 = vmatpush3.bf16.msra.mxu0 %v574_v2  ;;  %v579_v7 = vld [vmem:[%s746_s1 + $0xb0] sm:$0xff]   ;;  %v583_v11 = vld [vmem:[%s746_s1 + $0xa8] sm:$0xff]   ;;  %v44_v33 = vsub.s32 1, %v39_v28  ;;  %v52_v35 = vsub.s32 3, %v39_v28  ;;  %v40_v39 = vsub.s32 0, %v39_v28 }
   0x5   :  { %551 = vmatpush3.bf16.msra.mxu1 %v575_v3  ;;  %530 = vmatprep.subr.bf16.mxu0 %v576_v4  ;;  %v584_v12 = vld [vmem:[%s746_s1 + $0x60] sm:$0xff]   ;;  %v588_v16 = vld [vmem:[%s746_s1 + $0x58] sm:$0xff]   ;;  %v592_v20 = vld [vmem:[%s746_s1 + $0x50] sm:$0xff]   ;;  %v48_v40 = vsub.s32 2, %v39_v28 }
   0x6   :  { %552 = vmatprep.subr.bf16.mxu1 %v577_v5  ;;  %v585_v13 = vld [vmem:[%s746_s1 + $0xe0] sm:$0xff]   ;;  %v589_v17 = vld [vmem:[%s746_s1 + $0xd8] sm:$0xff]   ;;  %v593_v21 = vld [vmem:[%s746_s1 + $0xd0] sm:$0xff]  }
   0x7   :  { %v586_v14 = vld [vmem:[%s746_s1 + $0x20] sm:$0xff]   ;;  %v590_v18 = vld [vmem:[%s746_s1 + $0x18] sm:$0xff]   ;;  %v594_v22 = vld [vmem:[%s746_s1 + $0x10] sm:$0xff]  }
   0x8   :  { %531 = vmatpush3.bf16.msra.mxu0 %v578_v6  ;;  %v587_v15 = vld [vmem:[%s746_s1 + $0xa0] sm:$0xff]   ;;  %v591_v19 = vld [vmem:[%s746_s1 + $0x98] sm:$0xff]   ;;  %v595_v24 = vld [vmem:[%s746_s1 + $0x90] sm:$0xff]  }
   0x9   :  { %553 = vmatpush3.bf16.msra.mxu1 %v579_v7  ;;  %532 = vmatprep.subr.bf16.mxu0 %v580_v8  ;;  %v596_v25 = vld [vmem:[%s746_s1 + $0x48] sm:$0xff]   ;;  %v600_v30 = vld [vmem:[%s746_s1 + $0x40] sm:$0xff]   ;;  %v26_v37 = vld [vmem:[%s747_s0 + $0x10] sm:$0xff] }
   0xa   :  { %554 = vmatprep.subr.bf16.mxu1 %v581_v9  ;;  %v597_v26 = vld [vmem:[%s746_s1 + $0xc8] sm:$0xff]   ;;  %v601_v31 = vld [vmem:[%s746_s1 + $0xc0] sm:$0xff]   ;;  %v32_v43 = vunpack.c.l.bf16 %v26_v37  ;;  %v33_v44 = vunpack.c.h.bf16 %v26_v37  ;;  %v27_v47 = vld [vmem:[%s747_s0 + $0x18] sm:$0xff] }
   0xb   :  { %v598_v27 = vld [vmem:[%s746_s1 + $0x8] sm:$0xff]   ;;  %v602_v32 = vld [vmem:[%s746_s1] sm:$0xff]   ;;  %v34_v52 = vunpack.c.l.bf16 %v27_v47  ;;  %v35_v53 = vunpack.c.h.bf16 %v27_v47 }
   0xc   :  { %533 = vmatpush3.bf16.msra.mxu0 %v582_v10  ;;  %v599_v29 = vld [vmem:[%s746_s1 + $0x88] sm:$0xff]   ;;  %v603_v34 = vld [vmem:[%s746_s1 + $0x80] sm:$0xff]  }
   0xd   :  { %555 = vmatpush3.bf16.msra.mxu1 %v583_v11  ;;  %534 = vmatprep.subr.bf16.mxu0 %v584_v12  ;;  %v24_v36 = vld [vmem:[%s747_s0] sm:$0xff]  ;;  %v25_v46 = vld [vmem:[%s747_s0 + $0x8] sm:$0xff] }
   0xe   :  { %556 = vmatprep.subr.bf16.mxu1 %v585_v13  ;;  %v36_v38 = vld [vmem:[%s748_s2] sm:$0xf]  ;;  %v28_v41 = vunpack.c.l.bf16 %v24_v36  ;;  %v29_v42 = vunpack.c.h.bf16 %v24_v36  ;;  %v30_v50 = vunpack.c.l.bf16 %v25_v46  ;;  %v31_v51 = vunpack.c.h.bf16 %v25_v46 }
   0xf   :  { %v66_v45 = vld [vmem:[%s749_s3] sm:$0xf]  ;;  %v45_v48 = vrot.slane %v36_v38, %v44_v33  ;;  %v53_v54 = vrot.slane %v36_v38, %v52_v35  ;;  %v41_v58 = vrot.slane %v36_v38, %v40_v39  ;;  %v49_v62 = vrot.slane %v36_v38, %v48_v40 }
  0x10   :  { %535 = vmatpush3.bf16.msra.mxu0 %v586_v14  ;;  %v75_v49 = vrot.slane %v66_v45, %v44_v33  ;;  %v83_v55 = vrot.slane %v66_v45, %v52_v35  ;;  %v71_v59 = vrot.slane %v66_v45, %v40_v39  ;;  %v79_v63 = vrot.slane %v66_v45, %v48_v40 }
  0x11   :  { %557 = vmatpush3.bf16.msra.mxu1 %v587_v15  ;;  %536 = vmatprep.subr.bf16.mxu0 %v588_v16  ;;  %v59_v56 = vmul.f32 %v45_v48, %v29_v42  ;;  %v63_v57 = vmul.f32 %v45_v48, %v33_v44  ;;  %v61_v60 = vmul.f32 %v53_v54, %v31_v51 }
  0x12   :  { %558 = vmatprep.subr.bf16.mxu1 %v589_v17  ;;  %v65_v61 = vmul.f32 %v53_v54, %v35_v53  ;;  %v58_v2 = vmul.f32 %v41_v58, %v28_v41  ;;  %v62_v3 = vmul.f32 %v41_v58, %v32_v43  ;;  %v60_v6 = vmul.f32 %v49_v62, %v30_v50 }
  0x13   :  { %v89_v0 = vadd.f32 %v75_v49, %v59_v56  ;;  %v93_v1 = vadd.f32 %v75_v49, %v63_v57  ;;  %v91_v4 = vadd.f32 %v83_v55, %v61_v60  ;;  %v64_v7 = vmul.f32 %v49_v62, %v34_v52 }
  0x14   :  { %537 = vmatpush3.bf16.msra.mxu0 %v590_v18  ;;  %v95_v5 = vadd.f32 %v83_v55, %v65_v61  ;;  %v88_v14 = vadd.f32 %v71_v59, %v58_v2  ;;  %v92_v15 = vadd.f32 %v71_v59, %v62_v3 }
  0x15   :  { %559 = vmatpush3.bf16.msra.mxu1 %v591_v19  ;;  %538 = vmatprep.subr.bf16.mxu0 %v592_v20  ;;  %vm97_vm0 = vcmp.gt.f32.partialorder %v89_v0, 0.0  ;;  %vm101_vm1 = vcmp.gt.f32.partialorder %v93_v1, 0.0  ;;  %v105_v8 = vmul.f32 0.2, %v89_v0  ;;  %v109_v9 = vmul.f32 0.2, %v93_v1 }
  0x16   :  { %560 = vmatprep.subr.bf16.mxu1 %v593_v21  ;;  %vm99_vm2 = vcmp.gt.f32.partialorder %v91_v4, 0.0  ;;  %vm103_vm3 = vcmp.gt.f32.partialorder %v95_v5, 0.0  ;;  %v107_v10 = vmul.f32 0.2, %v91_v4  ;;  %v111_v11 = vmul.f32 0.2, %v95_v5 }
  0x17   :  { %v113_v12 = vsel %vm97_vm0, %v89_v0, %v105_v8  ;;  %v117_v13 = vsel %vm101_vm1, %v93_v1, %v109_v9  ;;  %v90_v19 = vadd.f32 %v79_v63, %v60_v6  ;;  %vm96_vm4 = vcmp.gt.f32.partialorder %v88_v14, 0.0 }
  0x18   :  { %539 = vmatpush3.bf16.msra.mxu0 %v594_v22  ;;  %v121_v16 = vpack.c.bf16 %v117_v13, %v113_v12  ;;  %v115_v17 = vsel %vm99_vm2, %v91_v4, %v107_v10  ;;  %v119_v18 = vsel %vm103_vm3, %v95_v5, %v111_v11  ;;  %vm100_vm5 = vcmp.gt.f32.partialorder %v92_v15, 0.0 }
  0x19   :  { %561 = vmatpush3.bf16.msra.mxu1 %v595_v24  ;;  %540 = vmatprep.subr.bf16.mxu0 %v596_v25  ;;  %v123_v20 = vpack.c.bf16 %v119_v18, %v115_v17  ;;  %v104_v21 = vmul.f32 0.2, %v88_v14  ;;  %v108_v22 = vmul.f32 0.2, %v92_v15  ;;  %v94_v23 = vadd.f32 %v79_v63, %v64_v7 }
  0x1a   :  { %562 = vmatprep.subr.bf16.mxu1 %v597_v26  ;;  %414 = vmatprep.mubr.bf16.mxu0 %v121_v16  ;;  %vm98_vm6 = vcmp.gt.f32.partialorder %v90_v19, 0.0  ;;  %v106_v24 = vmul.f32 0.2, %v90_v19 }
  0x1b   :  { %455 = vmatprep.mubr.bf16.mxu1 %v123_v20  ;;  %v112_v25 = vsel %vm96_vm4, %v88_v14, %v104_v21  ;;  %v116_v26 = vsel %vm100_vm5, %v92_v15, %v108_v22  ;;  %vm102_vm7 = vcmp.gt.f32.partialorder %v94_v23, 0.0 }
  0x1c   :  { %541 = vmatpush3.bf16.msra.mxu0 %v598_v27  ;;  %v110_v27 = vmul.f32 0.2, %v94_v23  ;;  %v114_v28 = vsel %vm98_vm6, %v90_v19, %v106_v24 }
  0x1d   :  { %563 = vmatpush3.bf16.msra.mxu1 %v599_v29  ;;  %542 = vmatprep.subr.bf16.mxu0 %v600_v30  ;;  %v120_v29 = vpack.c.bf16 %v116_v26, %v112_v25 }
  0x1e   :  { %564 = vmatprep.subr.bf16.mxu1 %v601_v31  ;;  %v118_v30 = vsel %vm102_vm7, %v94_v23, %v110_v27 }
  0x1f   :  { %v122_v31 = vpack.c.bf16 %v118_v30, %v114_v28 }
  0x20   :  { %543 = vmatpush3.bf16.msra.mxu0 %v602_v32 }
  0x21   :  { %565 = vmatpush3.bf16.msra.mxu1 %v603_v34 }
  0x23   :  { %415 = vmatmul.mubr.bf16.vlgmr.msra.gmra.mxu0 %v120_v29 }
  0x24   :  { %456 = vmatmul.mubr.bf16.vlgmr.msra.gmra.mxu1 %v122_v31 }
  0xe3   :  { %v544_v32 = vpop.f32.mrf.mxu0 }
  0xe4   :  { %v566_v33 = vpop.f32.mrf.mxu1 }
  0xe5   :  { %v545_v34 = vpop.f32.mrf.mxu0 }
  0xe6   :  { %v567_v35 = vpop.f32.mrf.mxu1  ;;  %v546_v39 = vadd.f32 %v545_v34, %v544_v32 }
  0xe7   :  { %v547_v36 = vpop.f32.mrf.mxu0  ;;  %v568_v40 = vadd.f32 %v567_v35, %v566_v33 }
  0xe8   :  { %v569_v37 = vpop.f32.mrf.mxu1 }
  0xe9   :  { %v548_v38 = vpop.f32.mrf.mxu0  ;;  %v458_v44 = vadd.f32 %v568_v40, %v546_v39 }
  0xea   :  { %v549_v41 = vadd.f32 %v548_v38, %v547_v36  ;;  %v570_v42 = vpop.f32.mrf.mxu1 }
  0xeb   :  { %v571_v43 = vadd.f32 %v570_v42, %v569_v37 }
  0xed   :  { %v461_v45 = vadd.f32 %v571_v43, %v549_v41 }
  0xef   :  { %v526_v46 = vpack.c.bf16 %v461_v45, %v458_v44 }
  0xf1   :  { %527 = vst [vmem:[%s750_s4] sm:$0xff] %v526_v46  }

// kernel: tile.103
= control target key start
LH: loop header
LB: loop body
LE: loop exit
PB: predicated region body
PF: predicated region fallthrough
CT: control target
= control target key end

     0   :  { %s22_s0 = inlined_call_operand.vmem [shape: f32[128], index: 0, kind: input, shape index: {}]   ;;  %s23_s1 = inlined_call_operand.vmem [shape: f32[4,128], index: 1, kind: output, shape index: {}]  }
   0x1   :  { %v4_v0 = vld [vmem:[%s22_s0] ss:$0 sm:$0xff] }
   0x2   :  { %5 = vst [vmem:[%s23_s1] sm:$0xf] %v4_v0 }

// kernel: _lambda_.24
= control target key start
LH: loop header
LB: loop body
LE: loop exit
PB: predicated region body
PF: predicated region fallthrough
CT: control target
= control target key end

     0   :  { %v50_v23 = vlaneseq  ;;  %s1429_s1 = inlined_call_operand.vmem [shape: bf16[1,1024,128], index: 1, kind: input, shape index: {}]   ;;  %s1430_s0 = inlined_call_operand.vmem [shape: bf16[1,16,1024], index: 0, kind: input, shape index: {}]   ;;  %s1431_s2 = inlined_call_operand.vmem [shape: f32[1,1024], index: 2, kind: input, shape index: {}]   ;;  %s1432_s3 = inlined_call_operand.vmem [shape: f32[1,1024], index: 3, kind: input, shape index: {}]   ;;  %s1433_s4 = inlined_call_operand.vmem [shape: bf16[1,16,128], index: 4, kind: output, shape index: {}]  }
   0x1   :  { %v1084_v0 = vld [vmem:[%s1429_s1 + $0x78] sm:$0xff]   ;;  %v1088_v4 = vld [vmem:[%s1429_s1 + $0x70] sm:$0xff]   ;;  %v1092_v8 = vld [vmem:[%s1429_s1 + $0x68] sm:$0xff]  }
   0x2   :  { %v1085_v1 = vld [vmem:[%s1429_s1 + $0xf8] sm:$0xff]   ;;  %996 = vmatprep.subr.bf16.mxu0 %v1084_v0  ;;  %v1089_v5 = vld [vmem:[%s1429_s1 + $0xf0] sm:$0xff]   ;;  %v1093_v9 = vld [vmem:[%s1429_s1 + $0xe8] sm:$0xff]   ;;  %v1254_v28 = vshrl.u32 %v50_v23, 7 }
   0x3   :  { %v1086_v2 = vld [vmem:[%s1429_s1 + $0x38] sm:$0xff]   ;;  %1018 = vmatprep.subr.bf16.mxu1 %v1085_v1  ;;  %v1090_v6 = vld [vmem:[%s1429_s1 + $0x30] sm:$0xff]   ;;  %v1094_v10 = vld [vmem:[%s1429_s1 + $0x28] sm:$0xff]  }
   0x4   :  { %v1087_v3 = vld [vmem:[%s1429_s1 + $0xb8] sm:$0xff]   ;;  %997 = vmatpush3.bf16.msra.mxu0 %v1086_v2  ;;  %v1091_v7 = vld [vmem:[%s1429_s1 + $0xb0] sm:$0xff]   ;;  %v1095_v11 = vld [vmem:[%s1429_s1 + $0xa8] sm:$0xff]   ;;  %v56_v33 = vsub.s32 1, %v1254_v28  ;;  %v64_v35 = vsub.s32 3, %v1254_v28  ;;  %v52_v39 = vsub.s32 0, %v1254_v28 }
   0x5   :  { %1019 = vmatpush3.bf16.msra.mxu1 %v1087_v3  ;;  %998 = vmatprep.subr.bf16.mxu0 %v1088_v4  ;;  %v1096_v12 = vld [vmem:[%s1429_s1 + $0x60] sm:$0xff]   ;;  %v1100_v16 = vld [vmem:[%s1429_s1 + $0x58] sm:$0xff]   ;;  %v1104_v20 = vld [vmem:[%s1429_s1 + $0x50] sm:$0xff]   ;;  %v60_v40 = vsub.s32 2, %v1254_v28 }
   0x6   :  { %1020 = vmatprep.subr.bf16.mxu1 %v1089_v5  ;;  %v1097_v13 = vld [vmem:[%s1429_s1 + $0xe0] sm:$0xff]   ;;  %v1101_v17 = vld [vmem:[%s1429_s1 + $0xd8] sm:$0xff]   ;;  %v1105_v21 = vld [vmem:[%s1429_s1 + $0xd0] sm:$0xff]  }
   0x7   :  { %v1098_v14 = vld [vmem:[%s1429_s1 + $0x20] sm:$0xff]   ;;  %v1102_v18 = vld [vmem:[%s1429_s1 + $0x18] sm:$0xff]   ;;  %v1106_v22 = vld [vmem:[%s1429_s1 + $0x10] sm:$0xff]  }
   0x8   :  { %999 = vmatpush3.bf16.msra.mxu0 %v1090_v6  ;;  %v1099_v15 = vld [vmem:[%s1429_s1 + $0xa0] sm:$0xff]   ;;  %v1103_v19 = vld [vmem:[%s1429_s1 + $0x98] sm:$0xff]   ;;  %v1107_v24 = vld [vmem:[%s1429_s1 + $0x90] sm:$0xff]  }
   0x9   :  { %1021 = vmatpush3.bf16.msra.mxu1 %v1091_v7  ;;  %1000 = vmatprep.subr.bf16.mxu0 %v1092_v8  ;;  %v1108_v25 = vld [vmem:[%s1429_s1 + $0x48] sm:$0xff]   ;;  %v1112_v30 = vld [vmem:[%s1429_s1 + $0x40] sm:$0xff]   ;;  %v1116_v52 = vld [vmem:[%s1429_s1 + $0x178] sm:$0xff]  }
   0xa   :  { %1022 = vmatprep.subr.bf16.mxu1 %v1093_v9  ;;  %v1109_v26 = vld [vmem:[%s1429_s1 + $0xc8] sm:$0xff]   ;;  %v1113_v31 = vld [vmem:[%s1429_s1 + $0xc0] sm:$0xff]   ;;  %v1117_v57 = vld [vmem:[%s1429_s1 + $0x1f8] sm:$0xff]  }
   0xb   :  { %v1110_v27 = vld [vmem:[%s1429_s1 + $0x8] sm:$0xff]   ;;  %v1114_v32 = vld [vmem:[%s1429_s1] sm:$0xff]  }
   0xc   :  { %1001 = vmatpush3.bf16.msra.mxu0 %v1094_v10  ;;  %v1111_v29 = vld [vmem:[%s1429_s1 + $0x88] sm:$0xff]   ;;  %v1115_v34 = vld [vmem:[%s1429_s1 + $0x80] sm:$0xff]  }
   0xd   :  { %1023 = vmatpush3.bf16.msra.mxu1 %v1095_v11  ;;  %1002 = vmatprep.subr.bf16.mxu0 %v1096_v12  ;;  %v24_v36 = vld [vmem:[%s1430_s0] sm:$0xff]  ;;  %v25_v46 = vld [vmem:[%s1430_s0 + $0x8] sm:$0xff] }
   0xe   :  { %1024 = vmatprep.subr.bf16.mxu1 %v1097_v13  ;;  %v28_v37 = vld [vmem:[%s1430_s0 + $0x20] sm:$0xff]  ;;  %v32_v41 = vunpack.c.l.bf16 %v24_v36  ;;  %v33_v42 = vunpack.c.h.bf16 %v24_v36  ;;  %v29_v47 = vld [vmem:[%s1430_s0 + $0x28] sm:$0xff]  ;;  %v34_v50 = vunpack.c.l.bf16 %v25_v46  ;;  %v35_v51 = vunpack.c.h.bf16 %v25_v46 }
   0xf   :  { %v1282_v38 = vld [vmem:[%s1431_s2] sm:$0xff]  ;;  %v40_v43 = vunpack.c.l.bf16 %v28_v37  ;;  %v41_v44 = vunpack.c.h.bf16 %v28_v37  ;;  %v42_v53 = vunpack.c.l.bf16 %v29_v47  ;;  %v43_v54 = vunpack.c.h.bf16 %v29_v47  ;;  %v1121_v37 = vld [vmem:[%s1429_s1 + $0x1f0] sm:$0xff]   ;;  %v1127_v46 = vld [vmem:[%s1429_s1 + $0x1a8] sm:$0xff]  }
  0x10   :  { %1003 = vmatpush3.bf16.msra.mxu0 %v1098_v14  ;;  %v1289_v45 = vld [vmem:[%s1432_s3] sm:$0xff]  ;;  %v57_v48 = vrot.slane %v1282_v38, %v56_v33  ;;  %v65_v55 = vrot.slane %v1282_v38, %v64_v35  ;;  %v53_v60 = vrot.slane %v1282_v38, %v52_v39  ;;  %v61_v0 = vrot.slane %v1282_v38, %v60_v40 }
  0x11   :  { %1025 = vmatpush3.bf16.msra.mxu1 %v1099_v15  ;;  %1004 = vmatprep.subr.bf16.mxu0 %v1100_v16  ;;  %v115_v49 = vrot.slane %v1289_v45, %v56_v33  ;;  %v123_v56 = vrot.slane %v1289_v45, %v64_v35  ;;  %v111_v61 = vrot.slane %v1289_v45, %v52_v39  ;;  %v1119_v33 = vld [vmem:[%s1429_s1 + $0x1b8] sm:$0xff]   ;;  %v1120_v35 = vld [vmem:[%s1429_s1 + $0x170] sm:$0xff]   ;;  %v1128_v47 = vld [vmem:[%s1429_s1 + $0x160] sm:$0xff]  }
  0x12   :  { %1026 = vmatprep.subr.bf16.mxu1 %v1101_v17  ;;  %v91_v58 = vmul.f32 %v57_v48, %v33_v42  ;;  %v99_v59 = vmul.f32 %v57_v48, %v41_v44  ;;  %v93_v62 = vmul.f32 %v65_v55, %v35_v51  ;;  %v101_v63 = vmul.f32 %v65_v55, %v43_v54  ;;  %v1124_v42 = vld [vmem:[%s1429_s1 + $0x168] sm:$0xff]   ;;  %v1129_v48 = vld [vmem:[%s1429_s1 + $0x1e0] sm:$0xff]   ;;  %v1132_v51 = vld [vmem:[%s1429_s1 + $0x158] sm:$0xff]  }
  0x13   :  { %v119_v1 = vrot.slane %v1289_v45, %v60_v40  ;;  %v90_v4 = vmul.f32 %v53_v60, %v32_v41  ;;  %v98_v5 = vmul.f32 %v53_v60, %v40_v43  ;;  %v92_v8 = vmul.f32 %v61_v0, %v34_v50  ;;  %v1122_v40 = vld [vmem:[%s1429_s1 + $0x130] sm:$0xff]   ;;  %v1125_v43 = vld [vmem:[%s1429_s1 + $0x1e8] sm:$0xff]   ;;  %v1131_v50 = vld [vmem:[%s1429_s1 + $0x1a0] sm:$0xff]  }
  0x14   :  { %1005 = vmatpush3.bf16.msra.mxu0 %v1102_v18  ;;  %v149_v2 = vadd.f32 %v115_v49, %v91_v58  ;;  %v157_v3 = vadd.f32 %v115_v49, %v99_v59  ;;  %v151_v6 = vadd.f32 %v123_v56, %v93_v62  ;;  %v159_v7 = vadd.f32 %v123_v56, %v101_v63  ;;  %v1123_v41 = vld [vmem:[%s1429_s1 + $0x1b0] sm:$0xff]   ;;  %v1126_v44 = vld [vmem:[%s1429_s1 + $0x128] sm:$0xff]   ;;  %v1130_v49 = vld [vmem:[%s1429_s1 + $0x120] sm:$0xff]  }
  0x15   :  { %1027 = vmatpush3.bf16.msra.mxu1 %v1103_v19  ;;  %1006 = vmatprep.subr.bf16.mxu0 %v1104_v20  ;;  %v100_v9 = vmul.f32 %v61_v0, %v42_v53  ;;  %v148_v16 = vadd.f32 %v111_v61, %v90_v4  ;;  %v156_v17 = vadd.f32 %v111_v61, %v98_v5  ;;  %v1134_v53 = vld [vmem:[%s1429_s1 + $0x118] sm:$0xff]   ;;  %v72_v54 = vsub.s32 5, %v1254_v28  ;;  %v1137_v59 = vld [vmem:[%s1429_s1 + $0x1d0] sm:$0xff]   ;;  %v1140_v63 = vld [vmem:[%s1429_s1 + $0x148] sm:$0xff]  }
  0x16   :  { %1028 = vmatprep.subr.bf16.mxu1 %v1105_v21  ;;  %vm165_vm0 = vcmp.gt.f32.partialorder %v149_v2, 0.0  ;;  %vm173_vm1 = vcmp.gt.f32.partialorder %v157_v3, 0.0  ;;  %v181_v10 = vmul.f32 0.2, %v149_v2  ;;  %v189_v11 = vmul.f32 0.2, %v157_v3 }
  0x17   :  { %vm167_vm2 = vcmp.gt.f32.partialorder %v151_v6, 0.0  ;;  %vm175_vm3 = vcmp.gt.f32.partialorder %v159_v7, 0.0  ;;  %v183_v12 = vmul.f32 0.2, %v151_v6  ;;  %v191_v13 = vmul.f32 0.2, %v159_v7 }
  0x18   :  { %1007 = vmatpush3.bf16.msra.mxu0 %v1106_v22  ;;  %v197_v14 = vsel %vm165_vm0, %v149_v2, %v181_v10  ;;  %v205_v15 = vsel %vm173_vm1, %v157_v3, %v189_v11  ;;  %v150_v21 = vadd.f32 %v119_v1, %v92_v8  ;;  %vm164_vm4 = vcmp.gt.f32.partialorder %v148_v16, 0.0  ;;  %v1135_v55 = vld [vmem:[%s1429_s1 + $0x198] sm:$0xff]   ;;  %v1138_v61 = vld [vmem:[%s1429_s1 + $0x110] sm:$0xff]  }
  0x19   :  { %1029 = vmatpush3.bf16.msra.mxu1 %v1107_v24  ;;  %1008 = vmatprep.subr.bf16.mxu0 %v1108_v25  ;;  %v213_v18 = vpack.c.bf16 %v205_v15, %v197_v14  ;;  %v199_v19 = vsel %vm167_vm2, %v151_v6, %v183_v12  ;;  %v207_v20 = vsel %vm175_vm3, %v159_v7, %v191_v13  ;;  %vm172_vm5 = vcmp.gt.f32.partialorder %v156_v17, 0.0  ;;  %v1139_v62 = vld [vmem:[%s1429_s1 + $0x190] sm:$0xff]   ;;  %v27_v10 = vld [vmem:[%s1430_s0 + $0x18] sm:$0xff] }
  0x1a   :  { %1030 = vmatprep.subr.bf16.mxu1 %v1109_v26  ;;  %v215_v22 = vpack.c.bf16 %v207_v20, %v199_v19  ;;  %v180_v23 = vmul.f32 0.2, %v148_v16  ;;  %v188_v24 = vmul.f32 0.2, %v156_v17  ;;  %v158_v25 = vadd.f32 %v119_v1, %v100_v9  ;;  %v26_v2 = vld [vmem:[%s1430_s0 + $0x10] sm:$0xff]  ;;  %v31_v11 = vld [vmem:[%s1430_s0 + $0x38] sm:$0xff] }
  0x1b   :  { %766 = vmatprep.mubr.bf16.mxu0 %v213_v18  ;;  %vm166_vm6 = vcmp.gt.f32.partialorder %v150_v21, 0.0  ;;  %v182_v26 = vmul.f32 0.2, %v150_v21  ;;  %v80_v56 = vsub.s32 7, %v1254_v28  ;;  %v68_v58 = vsub.s32 4, %v1254_v28  ;;  %v30_v7 = vld [vmem:[%s1430_s0 + $0x30] sm:$0xff] }
  0x1c   :  { %1009 = vmatpush3.bf16.msra.mxu0 %v1110_v27  ;;  %v1118_v27 = vld [vmem:[%s1429_s1 + $0x138] sm:$0xff]   ;;  %807 = vmatprep.mubr.bf16.mxu1 %v215_v22  ;;  %vm174_vm7 = vcmp.gt.f32.partialorder %v158_v25, 0.0  ;;  %v76_v60 = vsub.s32 6, %v1254_v28  ;;  %v73_v0 = vrot.slane %v1282_v38, %v72_v54  ;;  %v1141_v28 = vld [vmem:[%s1429_s1 + $0x1c8] sm:$0xff]   ;;  %v131_v3 = vrot.slane %v1289_v45, %v72_v54  ;;  %v1144_v18 = vld [vmem:[%s1429_s1 + $0x140] sm:$0xff]  }
  0x1d   :  { %1031 = vmatpush3.bf16.msra.mxu1 %v1111_v29  ;;  %1010 = vmatprep.subr.bf16.mxu0 %v1112_v30  ;;  %v196_v29 = vsel %vm164_vm4, %v148_v16, %v180_v23  ;;  %v204_v30 = vsel %vm172_vm5, %v156_v17, %v188_v24  ;;  %v69_v1 = vrot.slane %v1282_v38, %v68_v58  ;;  %v36_v8 = vunpack.c.l.bf16 %v26_v2 }
  0x1e   :  { %1032 = vmatprep.subr.bf16.mxu1 %v1113_v31  ;;  %v190_v31 = vmul.f32 0.2, %v158_v25  ;;  %v81_v4 = vrot.slane %v1282_v38, %v80_v56  ;;  %v139_v5 = vrot.slane %v1289_v45, %v80_v56  ;;  %v77_v6 = vrot.slane %v1282_v38, %v76_v60  ;;  %v1142_v38 = vld [vmem:[%s1429_s1 + $0x108] sm:$0xff]  }
  0x1f   :  { %v37_v9 = vunpack.c.h.bf16 %v26_v2  ;;  %v127_v12 = vrot.slane %v1289_v45, %v68_v58  ;;  %v135_v13 = vrot.slane %v1289_v45, %v76_v60  ;;  %v44_v14 = vunpack.c.l.bf16 %v30_v7  ;;  %v1143_v45 = vld [vmem:[%s1429_s1 + $0x188] sm:$0xff]  }
  0x20   :  { %1011 = vmatpush3.bf16.msra.mxu0 %v1114_v32  ;;  %v198_v32 = vsel %vm166_vm6, %v150_v21, %v182_v26  ;;  %v206_v36 = vsel %vm174_vm7, %v158_v25, %v190_v31  ;;  %v45_v15 = vunpack.c.h.bf16 %v30_v7  ;;  %v38_v16 = vunpack.c.l.bf16 %v27_v10 }
  0x21   :  { %1033 = vmatpush3.bf16.msra.mxu1 %v1115_v34  ;;  %1040 = vmatprep.subr.bf16.mxu0 %v1116_v52  ;;  %v212_v34 = vpack.c.bf16 %v204_v30, %v196_v29  ;;  %v214_v39 = vpack.c.bf16 %v206_v36, %v198_v32  ;;  %v1133_v52 = vld [vmem:[%s1429_s1 + $0x1d8] sm:$0xff]   ;;  %v39_v17 = vunpack.c.h.bf16 %v27_v10  ;;  %v95_v19 = vmul.f32 %v73_v0, %v37_v9 }
  0x22   :  { %1062 = vmatprep.subr.bf16.mxu1 %v1117_v57  ;;  %v1136_v57 = vld [vmem:[%s1429_s1 + $0x150] sm:$0xff]   ;;  %v46_v20 = vunpack.c.l.bf16 %v31_v11  ;;  %v47_v21 = vunpack.c.h.bf16 %v31_v11  ;;  %v94_v22 = vmul.f32 %v69_v1, %v36_v8  ;;  %v103_v23 = vmul.f32 %v73_v0, %v45_v15 }
  0x23   :  { %767 = vmatmul.mubr.bf16.vlgmr.msra.gmra.mxu0 %v212_v34  ;;  %v97_v24 = vmul.f32 %v81_v4, %v39_v17  ;;  %v102_v25 = vmul.f32 %v69_v1, %v44_v14  ;;  %v96_v26 = vmul.f32 %v77_v6, %v38_v16  ;;  %v153_v29 = vadd.f32 %v131_v3, %v95_v19 }
  0x24   :  { %1041 = vmatpush3.bf16.msra.mxu0 %v1118_v27  ;;  %808 = vmatmul.mubr.bf16.vlgmr.msra.gmra.mxu1 %v214_v39  ;;  %v1145_v27 = vld [vmem:[%s1429_s1 + $0x1c0] sm:$0xff]   ;;  %v105_v30 = vmul.f32 %v81_v4, %v47_v21  ;;  %v152_v31 = vadd.f32 %v127_v12, %v94_v22  ;;  %v104_v32 = vmul.f32 %v77_v6, %v46_v20 }
  0x25   :  { %1042 = vmatprep.subr.bf16.mxu0 %v1120_v35  ;;  %1063 = vmatpush3.bf16.msra.mxu1 %v1119_v33  ;;  %v1146_v33 = vld [vmem:[%s1429_s1 + $0x100] sm:$0xff]   ;;  %v161_v34 = vadd.f32 %v131_v3, %v103_v23  ;;  %v155_v35 = vadd.f32 %v139_v5, %v97_v24  ;;  %v160_v36 = vadd.f32 %v127_v12, %v102_v25  ;;  %vm169_vm8 = vcmp.gt.f32.partialorder %v153_v29, 0.0 }
  0x26   :  { %1064 = vmatprep.subr.bf16.mxu1 %v1121_v37  ;;  %v154_v37 = vadd.f32 %v135_v13, %v96_v26  ;;  %v1147_v39 = vld [vmem:[%s1429_s1 + $0x180] sm:$0xff]   ;;  %vm168_vm9 = vcmp.gt.f32.partialorder %v152_v31, 0.0 }
  0x27   :  { %vm177_vm10 = vcmp.gt.f32.partialorder %v161_v34, 0.0  ;;  %vm171_vm11 = vcmp.gt.f32.partialorder %v155_v35, 0.0  ;;  %vm176_vm13 = vcmp.gt.f32.partialorder %v160_v36, 0.0 }
  0x28   :  { %1043 = vmatpush3.bf16.msra.mxu0 %v1122_v40  ;;  %v185_v40 = vmul.f32 0.2, %v153_v29  ;;  %vm170_vm14 = vcmp.gt.f32.partialorder %v154_v37, 0.0 }
  0x29   :  { %1044 = vmatprep.subr.bf16.mxu0 %v1124_v42  ;;  %1065 = vmatpush3.bf16.msra.mxu1 %v1123_v41  ;;  %v163_v41 = vadd.f32 %v139_v5, %v105_v30  ;;  %v193_v42 = vmul.f32 0.2, %v161_v34 }
  0x2a   :  { %1066 = vmatprep.subr.bf16.mxu1 %v1125_v43  ;;  %v187_v43 = vmul.f32 0.2, %v155_v35 }
  0x2b   :  { %vm179_vm12 = vcmp.gt.f32.partialorder %v163_v41, 0.0 }
  0x2c   :  { %1045 = vmatpush3.bf16.msra.mxu0 %v1126_v44  ;;  %v201_v44 = vsel %vm169_vm8, %v153_v29, %v185_v40 }
  0x2d   :  { %1046 = vmatprep.subr.bf16.mxu0 %v1128_v47  ;;  %1067 = vmatpush3.bf16.msra.mxu1 %v1127_v46  ;;  %v195_v46 = vmul.f32 0.2, %v163_v41  ;;  %v209_v47 = vsel %vm177_vm10, %v161_v34, %v193_v42 }
  0x2e   :  { %1068 = vmatprep.subr.bf16.mxu1 %v1129_v48  ;;  %v203_v48 = vsel %vm171_vm11, %v155_v35, %v187_v43 }
  0x30   :  { %1047 = vmatpush3.bf16.msra.mxu0 %v1130_v49  ;;  %v184_v49 = vmul.f32 0.2, %v152_v31 }
  0x31   :  { %1048 = vmatprep.subr.bf16.mxu0 %v1132_v51  ;;  %1069 = vmatpush3.bf16.msra.mxu1 %v1131_v50  ;;  %v192_v50 = vmul.f32 0.2, %v160_v36  ;;  %v217_v51 = vpack.c.bf16 %v209_v47, %v201_v44 }
  0x32   :  { %1070 = vmatprep.subr.bf16.mxu1 %v1133_v52  ;;  %v211_v52 = vsel %vm179_vm12, %v163_v41, %v195_v46 }
  0x33   :  { %v219_v54 = vpack.c.bf16 %v211_v52, %v203_v48  ;;  %v208_v56 = vsel %vm176_vm13, %v160_v36, %v192_v50  ;;  %848 = vmatprep.mubr.bf16.mxu0 %v217_v51 }
  0x34   :  { %1049 = vmatpush3.bf16.msra.mxu0 %v1134_v53  ;;  %v162_v53 = vadd.f32 %v135_v13, %v104_v32 }
  0x35   :  { %1050 = vmatprep.subr.bf16.mxu0 %v1136_v57  ;;  %1071 = vmatpush3.bf16.msra.mxu1 %v1135_v55  ;;  %v200_v55 = vsel %vm168_vm9, %v152_v31, %v184_v49  ;;  %v186_v57 = vmul.f32 0.2, %v154_v37 }
  0x36   :  { %1072 = vmatprep.subr.bf16.mxu1 %v1137_v59  ;;  %v216_v58 = vpack.c.bf16 %v208_v56, %v200_v55  ;;  %vm178_vm15 = vcmp.gt.f32.partialorder %v162_v53, 0.0  ;;  %v194_v59 = vmul.f32 0.2, %v162_v53  ;;  %889 = vmatprep.mubr.bf16.mxu1 %v219_v54 }
  0x37   :  { %v202_v60 = vsel %vm170_vm14, %v154_v37, %v186_v57 }
  0x38   :  { %1051 = vmatpush3.bf16.msra.mxu0 %v1138_v61  ;;  %v210_v61 = vsel %vm178_vm15, %v162_v53, %v194_v59 }
  0x39   :  { %1052 = vmatprep.subr.bf16.mxu0 %v1140_v63  ;;  %1073 = vmatpush3.bf16.msra.mxu1 %v1139_v62  ;;  %v218_v62 = vpack.c.bf16 %v210_v61, %v202_v60 }
  0x3a   :  { %1074 = vmatprep.subr.bf16.mxu1 %v1141_v28 }
  0x3c   :  { %1053 = vmatpush3.bf16.msra.mxu0 %v1142_v38 }
  0x3d   :  { %1054 = vmatprep.subr.bf16.mxu0 %v1144_v18  ;;  %1075 = vmatpush3.bf16.msra.mxu1 %v1143_v45 }
  0x3e   :  { %1076 = vmatprep.subr.bf16.mxu1 %v1145_v27 }
  0x40   :  { %1055 = vmatpush3.bf16.msra.mxu0 %v1146_v33 }
  0x41   :  { %1077 = vmatpush3.bf16.msra.mxu1 %v1147_v39 }
  0x43   :  { %849 = vmatmul.mubr.bf16.vlgmr.msra.gmra.mxu0 %v216_v58 }
  0x44   :  { %890 = vmatmul.mubr.bf16.vlgmr.msra.gmra.mxu1 %v218_v62 }
  0xe3   :  { %v1012_v63 = vpop.f32.mrf.mxu0 }
  0xe4   :  { %v1034_v0 = vpop.f32.mrf.mxu1 }
  0xe5   :  { %v1013_v1 = vpop.f32.mrf.mxu0 }
  0xe6   :  { %v1035_v28 = vpop.f32.mrf.mxu1  ;;  %v1014_v5 = vadd.f32 %v1013_v1, %v1012_v63 }
  0xe7   :  { %v1015_v2 = vpop.f32.mrf.mxu0  ;;  %v1036_v6 = vadd.f32 %v1035_v28, %v1034_v0 }
  0xe8   :  { %v1037_v3 = vpop.f32.mrf.mxu1 }
  0xe9   :  { %v1016_v4 = vpop.f32.mrf.mxu0  ;;  %v810_v38 = vadd.f32 %v1036_v6, %v1014_v5 }
  0xea   :  { %v1038_v7 = vpop.f32.mrf.mxu1  ;;  %v1017_v10 = vadd.f32 %v1016_v4, %v1015_v2 }
  0xeb   :  { %v1039_v11 = vadd.f32 %v1038_v7, %v1037_v3 }
  0xed   :  { %v813_v18 = vadd.f32 %v1039_v11, %v1017_v10 }
 0x103   :  { %v1056_v8 = vpop.f32.mrf.mxu0 }
 0x104   :  { %v1078_v12 = vpop.f32.mrf.mxu1 }
 0x105   :  { %v1057_v9 = vpop.f32.mrf.mxu0 }
 0x106   :  { %v1058_v13 = vadd.f32 %v1057_v9, %v1056_v8  ;;  %v1079_v15 = vpop.f32.mrf.mxu1 }
 0x107   :  { %v1059_v14 = vpop.f32.mrf.mxu0  ;;  %v1080_v21 = vadd.f32 %v1079_v15, %v1078_v12 }
 0x108   :  { %v851_v16 = vadd.f32 %v1058_v13, %v810_v38  ;;  %v1081_v19 = vpop.f32.mrf.mxu1 }
 0x109   :  { %v1060_v17 = vpop.f32.mrf.mxu0 }
 0x10a   :  { %v1061_v20 = vadd.f32 %v1060_v17, %v1059_v14  ;;  %v1082_v45 = vpop.f32.mrf.mxu1  ;;  %v892_v23 = vadd.f32 %v1080_v21, %v851_v16 }
 0x10b   :  { %v1083_v24 = vadd.f32 %v1082_v45, %v1081_v19 }
 0x10c   :  { %v854_v22 = vadd.f32 %v1061_v20, %v813_v18  ;;  %v907_v26 = vmax.f32 %v892_v23, 0.0 }
 0x10e   :  { %v895_v25 = vadd.f32 %v1083_v24, %v854_v22 }
 0x110   :  { %v908_v27 = vmax.f32 %v895_v25, 0.0 }
 0x112   :  { %v994_v29 = vpack.c.bf16 %v908_v27, %v907_v26 }
 0x114   :  { %995 = vst [vmem:[%s1433_s4] sm:$0xff] %v994_v29  }

// kernel: _lambda_.25
= control target key start
LH: loop header
LB: loop body
LE: loop exit
PB: predicated region body
PF: predicated region fallthrough
CT: control target
= control target key end

     0   :  { %s757_s9 = smov 0   ;;  %s759_s10 = smov 0   ;;  %s816_s0 = inlined_call_operand.vmem [shape: bf16[4,16,256], index: 0, kind: input, shape index: {}]   ;;  %s817_s1 = inlined_call_operand.vmem [shape: bf16[4,256,128], index: 1, kind: input, shape index: {}]   ;;  %s818_s2 = inlined_call_operand.vmem [shape: bf16[4,16,128], index: 2, kind: output, shape index: {}]  }
   0x1   :  { %s761_s11 = smov 0  }
   0x2 LB: > { %s38_s12 = sadd.s32 1, %s736_s10  ;;  %p614_p0 = scmp.ge.s32.totalorder %s740_s11, 1  ;;  %s740_s11 = sphi %s761_s11, %s12_s11   ;;  %s736_s10 = sphi %s759_s10, %s820_s10   ;;  %s732_s9 = sphi %s757_s9, %s819_s9  }
   0x3   : > { %p40_p1 = scmp.ge.s32.totalorder %s38_s12, 4  ;;  %p179_p2 = scmp.lt.s32.totalorder %s740_s11, 5 }
   0x5   : > { %s822_s12 = smov (%p40_p1, %s38_s12), 0  ;;  %p180_p3 = pnand %p614_p0, %p179_p2 }
   0x6   : > { %p231_p4 = scmp.lt.s32.totalorder (!%p180_p3), %s732_s9, 3 }
   0x7   : > { %183 = sbr.rel (%p180_p3) target bundleno = 252 (0xfc), region = 28 }
   0xc   : > { %s824_s9 = smov (!%p231_p4, %s732_s9), 3 }
   0xd   : > { %s644_s13 = sshll.u32 %s824_s9, 7  ;;  %s643_s17 = sshll.u32 %s824_s9, 4 }
   0xe   : > { %s781_s16 = scalar_lea.vmem %s817_s1, %s644_s13  ;;  %s242_s20 = scalar_lea.vmem %s816_s0, %s643_s17 }
   0xf   : > { %v699_v0 = vld [vmem:[%s781_s16 + $0x78] sm:$0xff]   ;;  %v701_v2 = vld [vmem:[%s781_s16 + $0x70] sm:$0xff]   ;;  %v703_v4 = vld [vmem:[%s781_s16 + $0x68] sm:$0xff]   ;;  %s645_s21 = sshll.u32 %s824_s9, 3 }
  0x10   : > { %v700_v1 = vld [vmem:[%s781_s16 + $0x38] sm:$0xff]   ;;  %653 = vmatprep.subr.bf16.mxu0 %v699_v0  ;;  %v702_v3 = vld [vmem:[%s781_s16 + $0x30] sm:$0xff]   ;;  %v704_v5 = vld [vmem:[%s781_s16 + $0x28] sm:$0xff]   ;;  %s269_s24 = scalar_lea.vmem %s818_s2, %s645_s21 }
  0x11   : > { %654 = vmatpush3.bf16.msra.mxu0 %v700_v1  ;;  %v705_v6 = vld [vmem:[%s781_s16 + $0x60] sm:$0xff]   ;;  %v707_v8 = vld [vmem:[%s781_s16 + $0x58] sm:$0xff]   ;;  %v709_v10 = vld [vmem:[%s781_s16 + $0x50] sm:$0xff]  }
  0x12   : > { %655 = vmatprep.subr.bf16.mxu0 %v701_v2  ;;  %v706_v7 = vld [vmem:[%s781_s16 + $0x20] sm:$0xff]   ;;  %v708_v9 = vld [vmem:[%s781_s16 + $0x18] sm:$0xff]   ;;  %v710_v12 = vld [vmem:[%s781_s16 + $0x10] sm:$0xff]  }
  0x13   : > { %v717_v11 = vld [vmem:[%s242_s20 + $0x4] ss:$8 sps:$4 sm:$0xff]   ;;  %v715_v17 = vld [vmem:[%s242_s20] ss:$8 sps:$4 sm:$0xff]  }
  0x14   : > { %452 = vmatprep.mubr.bf16.mxu0 %v717_v11  ;;  %v711_v13 = vld [vmem:[%s781_s16 + $0x48] sm:$0xff]   ;;  %v713_v15 = vld [vmem:[%s781_s16 + $0x40] sm:$0xff]  }
  0x15   : > { %656 = vmatpush3.bf16.msra.mxu0 %v702_v3  ;;  %v712_v14 = vld [vmem:[%s781_s16 + $0x8] sm:$0xff]   ;;  %v714_v16 = vld [vmem:[%s781_s16] sm:$0xff]  }
  0x16   : > { %657 = vmatprep.subr.bf16.mxu0 %v703_v4 }
  0x19   : > { %658 = vmatpush3.bf16.msra.mxu0 %v704_v5 }
  0x1a   : > { %659 = vmatprep.subr.bf16.mxu0 %v705_v6 }
  0x1d   : > { %660 = vmatpush3.bf16.msra.mxu0 %v706_v7 }
  0x1e   : > { %661 = vmatprep.subr.bf16.mxu0 %v707_v8 }
  0x21   : > { %662 = vmatpush3.bf16.msra.mxu0 %v708_v9 }
  0x22   : > { %663 = vmatprep.subr.bf16.mxu0 %v709_v10 }
  0x25   : > { %664 = vmatpush3.bf16.msra.mxu0 %v710_v12 }
  0x26   : > { %665 = vmatprep.subr.bf16.mxu0 %v711_v13 }
  0x29   : > { %666 = vmatpush3.bf16.msra.mxu0 %v712_v14 }
  0x2a   : > { %667 = vmatprep.subr.bf16.mxu0 %v713_v15 }
  0x2d   : > { %668 = vmatpush3.bf16.msra.mxu0 %v714_v16 }
  0x30   : > { %453 = vmatmul.mubr.bf16.vlgmr.msra.gmra.mxu0 %v715_v17 }
  0xf0   : > { %v669_v18 = vpop.f32.mrf.mxu0 }
  0xf2   : > { %v670_v19 = vpop.f32.mrf.mxu0 }
  0xf3   : > { %v671_v22 = vadd.f32 %v670_v19, %v669_v18 }
  0xf4   : > { %v672_v20 = vpop.f32.mrf.mxu0 }
  0xf6   : > { %v673_v21 = vpop.f32.mrf.mxu0 }
  0xf7   : > { %v674_v23 = vadd.f32 %v673_v21, %v672_v20 }
  0xf9   : > { %v651_v24 = vpack.c.bf16 %v674_v23, %v671_v22 }
  0xfb   : > { %652 = vst [vmem:[%s269_s24] sm:$0xff] %v651_v24  }
  0xfc PF: > { %s12_s11 = sadd.s32 1, %s740_s11   ;;  %s819_s9 = smov %s736_s10 }
  0xfd   : > { %p9_p5 = scmp.ge.s32.totalorder %s12_s11, 6   ;;  %s820_s10 = smov %s822_s12 }
  0xff   :  { %11 = sbr.rel (!%p9_p5) target bundleno = 2 (0x2), region = 69 }

// kernel: tile.113
= control target key start
LH: loop header
LB: loop body
LE: loop exit
PB: predicated region body
PF: predicated region fallthrough
CT: control target
= control target key end

     0   :  { %s22_s0 = inlined_call_operand.vmem [shape: f32[64], index: 0, kind: input, shape index: {}]   ;;  %s23_s1 = inlined_call_operand.vmem [shape: f32[4,64], index: 1, kind: output, shape index: {}]  }
   0x1   :  { %v4_v0 = vld [vmem:[%s22_s0] ss:$0 sm:$0xff] }
   0x2   :  { %5 = vst [vmem:[%s23_s1] sm:$0xf] %v4_v0 }

// kernel: tile.118
= control target key start
LH: loop header
LB: loop body
LE: loop exit
PB: predicated region body
PF: predicated region fallthrough
CT: control target
= control target key end

     0   :  { %s7_s8 = smov 3  ;;  %vm9_vm0 = vcmask 523264   ;;  %s34_s9 = smov 64   ;;  %vm16_vm1 = vcmask 1048064   ;;  %s54_s0 = inlined_call_operand.vmem [shape: f32[4,64], index: 0, kind: input, shape index: {}]   ;;  %s55_s1 = inlined_call_operand.vmem [shape: f32[1,256], index: 1, kind: output, shape index: {}]  }
   0x1   :  { %v5_v0 = vld [vmem:[%s54_s0] sm:$0xf]  ;;  %s12_s0 = smov 3 }
   0x2   :  { %6 = vst [vmem:[#allocation1] sm:$0xf] %v5_v0 }
   0x9   :  { %v13_v1 = vld [vmem:[#allocation1 + $0x1] ss:$2 sm:%s12_s0]   ;;  %v8_v2 = vld [vmem:[#allocation1] ss:$2 sm:%s7_s8]  }
   0xa   :  { %14 = vrot.lane.b32.xlu0 %v13_v1, %s34_s9  ;;  %10 = vst.msk [vmem:[#allocation0] ss:$8 sm:$0x3] %vm9_vm0, %v8_v2  }
  0x7c   :  { %v15_v3 = vpop.permute.xlu0 %14  }
  0x7d   :  { %17 = vst.msk [vmem:[#allocation0] ss:$8 sm:$0x3] %vm16_vm1, %v15_v3  }
  0x84   :  { %v22_v4 = vld [vmem:[#allocation0] sm:$0x1]  ;;  %v27_v5 = vld [vmem:[#allocation0 + $0x8] sm:$0x1] }
  0x85   :  { %25 = vst [vmem:[%s55_s1] sm:$0x1] %v22_v4  ;;  %32 = vst [vmem:[%s55_s1 + $0x1] sm:$0x1] %v27_v5 }

// kernel: _lambda_.27
= control target key start
LH: loop header
LB: loop body
LE: loop exit
PB: predicated region body
PF: predicated region fallthrough
CT: control target
= control target key end

     0   :  { %s1175_s15 = smov 0   ;;  %s1177_s16 = smov 0   ;;  %s1256_s0 = inlined_call_operand.vmem [shape: bf16[4,16,512], index: 0, kind: input, shape index: {}]   ;;  %s1257_s1 = inlined_call_operand.vmem [shape: bf16[4,512,128], index: 1, kind: input, shape index: {}]   ;;  %s1258_s2 = inlined_call_operand.vmem [shape: f32[1,512], index: 2, kind: input, shape index: {}]   ;;  %s1259_s3 = inlined_call_operand.vmem [shape: f32[1,512], index: 3, kind: input, shape index: {}]   ;;  %s1260_s4 = inlined_call_operand.vmem [shape: bf16[4,16,128], index: 4, kind: output, shape index: {}]  }
   0x1   :  { %s1179_s17 = smov 0  }
   0x2 LB: > { %s40_s18 = sadd.s32 1, %s1144_s16  ;;  %p973_p0 = scmp.ge.s32.totalorder %s1148_s17, 1  ;;  %s1148_s17 = sphi %s1179_s17, %s14_s17   ;;  %s1144_s16 = sphi %s1177_s16, %s1262_s16   ;;  %s1140_s15 = sphi %s1175_s15, %s1261_s15  }
   0x3   : > { %p42_p1 = scmp.ge.s32.totalorder %s40_s18, 4  ;;  %p249_p2 = scmp.lt.s32.totalorder %s1148_s17, 5 }
   0x5   : > { %s1264_s18 = smov (%p42_p1, %s40_s18), 0  ;;  %p250_p3 = pnand %p973_p0, %p249_p2 }
   0x6   : > { %p313_p4 = scmp.lt.s32.totalorder (!%p250_p3), %s1140_s15, 3 }
   0x7   : > { %253 = sbr.rel (%p250_p3) target bundleno = 256 (0x100), region = 36 }
   0xc   : > { %s1266_s15 = smov (!%p313_p4, %s1140_s15), 3  ;;  %v384_v18 = vlaneseq  ;;  %v382_v30 = vld [vmem:[%s1258_s2] sm:$0xf] }
   0xd   : > { %s1017_s19 = sshll.u32 %s1266_s15, 8  ;;  %s1016_s23 = sshll.u32 %s1266_s15, 5  ;;  %v412_v31 = vld [vmem:[%s1259_s3] sm:$0xf] }
   0xe   : > { %s1199_s22 = scalar_lea.vmem %s1257_s1, %s1017_s19  ;;  %v385_v23 = vshrl.u32 %v384_v18, 7  ;;  %s324_s30 = scalar_lea.vmem %s1256_s0, %s1016_s23 }
   0xf   : > { %v1094_v0 = vld [vmem:[%s1199_s22 + $0x78] sm:$0xff]   ;;  %v1098_v4 = vld [vmem:[%s1199_s22 + $0x70] sm:$0xff]   ;;  %v1102_v8 = vld [vmem:[%s1199_s22 + $0x68] sm:$0xff]   ;;  %s1018_s5 = sshll.u32 %s1266_s15, 3 }
  0x10   : > { %v1095_v1 = vld [vmem:[%s1199_s22 + $0xf8] sm:$0xff]   ;;  %1026 = vmatprep.subr.bf16.mxu0 %v1094_v0  ;;  %v1099_v5 = vld [vmem:[%s1199_s22 + $0xf0] sm:$0xff]   ;;  %v1103_v9 = vld [vmem:[%s1199_s22 + $0xe8] sm:$0xff]   ;;  %v390_v28 = vsub.s32 1, %v385_v23  ;;  %v398_v32 = vsub.s32 3, %v385_v23  ;;  %v386_v34 = vsub.s32 0, %v385_v23  ;;  %s361_s8 = scalar_lea.vmem %s1260_s4, %s1018_s5 }
  0x11   : > { %v1096_v2 = vld [vmem:[%s1199_s22 + $0x38] sm:$0xff]   ;;  %1048 = vmatprep.subr.bf16.mxu1 %v1095_v1  ;;  %v1100_v6 = vld [vmem:[%s1199_s22 + $0x30] sm:$0xff]   ;;  %v1104_v10 = vld [vmem:[%s1199_s22 + $0x28] sm:$0xff]   ;;  %v394_v36 = vsub.s32 2, %v385_v23 }
  0x12   : > { %v1097_v3 = vld [vmem:[%s1199_s22 + $0xb8] sm:$0xff]   ;;  %1027 = vmatpush3.bf16.msra.mxu0 %v1096_v2  ;;  %v1101_v7 = vld [vmem:[%s1199_s22 + $0xb0] sm:$0xff]   ;;  %v1105_v11 = vld [vmem:[%s1199_s22 + $0xa8] sm:$0xff]   ;;  %v391_v40 = vrot.slane %v382_v30, %v390_v28  ;;  %v421_v41 = vrot.slane %v412_v31, %v390_v28  ;;  %v399_v42 = vrot.slane %v382_v30, %v398_v32  ;;  %v387_v43 = vrot.slane %v382_v30, %v386_v34 }
  0x13   : > { %1049 = vmatpush3.bf16.msra.mxu1 %v1097_v3  ;;  %1028 = vmatprep.subr.bf16.mxu0 %v1098_v4  ;;  %v1106_v12 = vld [vmem:[%s1199_s22 + $0x60] sm:$0xff]   ;;  %v1110_v16 = vld [vmem:[%s1199_s22 + $0x58] sm:$0xff]   ;;  %v1114_v21 = vld [vmem:[%s1199_s22 + $0x50] sm:$0xff]   ;;  %v429_v47 = vrot.slane %v412_v31, %v398_v32  ;;  %v417_v48 = vrot.slane %v412_v31, %v386_v34  ;;  %v395_v49 = vrot.slane %v382_v30, %v394_v36 }
  0x14   : > { %1050 = vmatprep.subr.bf16.mxu1 %v1099_v5  ;;  %v1107_v13 = vld [vmem:[%s1199_s22 + $0xe0] sm:$0xff]   ;;  %v1111_v17 = vld [vmem:[%s1199_s22 + $0xd8] sm:$0xff]   ;;  %v1115_v22 = vld [vmem:[%s1199_s22 + $0xd0] sm:$0xff]   ;;  %v425_v50 = vrot.slane %v412_v31, %v394_v36 }
  0x15   : > { %v1108_v14 = vld [vmem:[%s1199_s22 + $0x20] sm:$0xff]   ;;  %v1112_v19 = vld [vmem:[%s1199_s22 + $0x18] sm:$0xff]   ;;  %v1116_v24 = vld [vmem:[%s1199_s22 + $0x10] sm:$0xff]  }
  0x16   : > { %1029 = vmatpush3.bf16.msra.mxu0 %v1100_v6  ;;  %v1109_v15 = vld [vmem:[%s1199_s22 + $0xa0] sm:$0xff]   ;;  %v1113_v20 = vld [vmem:[%s1199_s22 + $0x98] sm:$0xff]   ;;  %v1117_v25 = vld [vmem:[%s1199_s22 + $0x90] sm:$0xff]  }
  0x17   : > { %1051 = vmatpush3.bf16.msra.mxu1 %v1101_v7  ;;  %1030 = vmatprep.subr.bf16.mxu0 %v1102_v8  ;;  %v1118_v26 = vld [vmem:[%s1199_s22 + $0x48] sm:$0xff]   ;;  %v1122_v35 = vld [vmem:[%s1199_s22 + $0x40] sm:$0xff]   ;;  %v372_v45 = vld [vmem:[%s324_s30 + $0x10] sm:$0xff] }
  0x18   : > { %1052 = vmatprep.subr.bf16.mxu1 %v1103_v9  ;;  %v1119_v27 = vld [vmem:[%s1199_s22 + $0xc8] sm:$0xff]   ;;  %v1123_v37 = vld [vmem:[%s1199_s22 + $0xc0] sm:$0xff]   ;;  %v378_v53 = vunpack.c.l.bf16 %v372_v45  ;;  %v379_v54 = vunpack.c.h.bf16 %v372_v45  ;;  %v373_v55 = vld [vmem:[%s324_s30 + $0x18] sm:$0xff] }
  0x19   : > { %v1120_v29 = vld [vmem:[%s1199_s22 + $0x8] sm:$0xff]   ;;  %v1124_v38 = vld [vmem:[%s1199_s22] sm:$0xff]   ;;  %v380_v58 = vunpack.c.l.bf16 %v373_v55  ;;  %v381_v59 = vunpack.c.h.bf16 %v373_v55 }
  0x1a   : > { %1031 = vmatpush3.bf16.msra.mxu0 %v1104_v10  ;;  %v1121_v33 = vld [vmem:[%s1199_s22 + $0x88] sm:$0xff]   ;;  %v1125_v39 = vld [vmem:[%s1199_s22 + $0x80] sm:$0xff]   ;;  %v409_v61 = vmul.f32 %v391_v40, %v379_v54  ;;  %v408_v63 = vmul.f32 %v387_v43, %v378_v53 }
  0x1b   : > { %1053 = vmatpush3.bf16.msra.mxu1 %v1105_v11  ;;  %1032 = vmatprep.subr.bf16.mxu0 %v1106_v12  ;;  %v370_v44 = vld [vmem:[%s324_s30] sm:$0xff]  ;;  %v371_v46 = vld [vmem:[%s324_s30 + $0x8] sm:$0xff]  ;;  %v411_v1 = vmul.f32 %v399_v42, %v381_v59  ;;  %v410_v3 = vmul.f32 %v395_v49, %v380_v58 }
  0x1c   : > { %1054 = vmatprep.subr.bf16.mxu1 %v1107_v13  ;;  %v374_v51 = vunpack.c.l.bf16 %v370_v44  ;;  %v375_v52 = vunpack.c.h.bf16 %v370_v44  ;;  %v376_v56 = vunpack.c.l.bf16 %v371_v46  ;;  %v377_v57 = vunpack.c.h.bf16 %v371_v46 }
  0x1d   : > { %v439_v5 = vadd.f32 %v421_v41, %v409_v61  ;;  %v438_v7 = vadd.f32 %v417_v48, %v408_v63  ;;  %v441_v9 = vadd.f32 %v429_v47, %v411_v1  ;;  %v440_v11 = vadd.f32 %v425_v50, %v410_v3 }
  0x1e   : > { %1033 = vmatpush3.bf16.msra.mxu0 %v1108_v14  ;;  %v405_v60 = vmul.f32 %v391_v40, %v375_v52  ;;  %v404_v62 = vmul.f32 %v387_v43, %v374_v51  ;;  %v407_v0 = vmul.f32 %v399_v42, %v377_v57  ;;  %v406_v2 = vmul.f32 %v395_v49, %v376_v56 }
  0x1f   : > { %1055 = vmatpush3.bf16.msra.mxu1 %v1109_v15  ;;  %1034 = vmatprep.subr.bf16.mxu0 %v1110_v16  ;;  %v447_v13 = vmax.f32 %v439_v5, 0.0  ;;  %v446_v15 = vmax.f32 %v438_v7, 0.0 }
  0x20   : > { %1056 = vmatprep.subr.bf16.mxu1 %v1111_v17  ;;  %v435_v4 = vadd.f32 %v421_v41, %v405_v60  ;;  %v434_v6 = vadd.f32 %v417_v48, %v404_v62  ;;  %v437_v8 = vadd.f32 %v429_v47, %v407_v0  ;;  %v436_v10 = vadd.f32 %v425_v50, %v406_v2 }
  0x21   : > { %v449_v17 = vmax.f32 %v441_v9, 0.0 }
  0x22   : > { %1035 = vmatpush3.bf16.msra.mxu0 %v1112_v19  ;;  %v443_v12 = vmax.f32 %v435_v4, 0.0  ;;  %v442_v14 = vmax.f32 %v434_v6, 0.0  ;;  %v445_v16 = vmax.f32 %v437_v8, 0.0  ;;  %v444_v18 = vmax.f32 %v436_v10, 0.0 }
  0x23   : > { %1057 = vmatpush3.bf16.msra.mxu1 %v1113_v20  ;;  %1036 = vmatprep.subr.bf16.mxu0 %v1114_v21  ;;  %v448_v19 = vmax.f32 %v440_v11, 0.0 }
  0x24   : > { %1058 = vmatprep.subr.bf16.mxu1 %v1115_v22  ;;  %v451_v20 = vpack.c.bf16 %v447_v13, %v443_v12  ;;  %v450_v21 = vpack.c.bf16 %v446_v15, %v442_v14  ;;  %v453_v22 = vpack.c.bf16 %v449_v17, %v445_v16 }
  0x25   : > { %v452_v23 = vpack.c.bf16 %v448_v19, %v444_v18 }
  0x26   : > { %1037 = vmatpush3.bf16.msra.mxu0 %v1116_v24  ;;  %744 = vmatprep.mubr.bf16.mxu0 %v451_v20 }
  0x27   : > { %1059 = vmatpush3.bf16.msra.mxu1 %v1117_v25  ;;  %1038 = vmatprep.subr.bf16.mxu0 %v1118_v26 }
  0x28   : > { %1060 = vmatprep.subr.bf16.mxu1 %v1119_v27  ;;  %785 = vmatprep.mubr.bf16.mxu1 %v453_v22 }
  0x2a   : > { %1039 = vmatpush3.bf16.msra.mxu0 %v1120_v29 }
  0x2b   : > { %1061 = vmatpush3.bf16.msra.mxu1 %v1121_v33  ;;  %1040 = vmatprep.subr.bf16.mxu0 %v1122_v35 }
  0x2c   : > { %1062 = vmatprep.subr.bf16.mxu1 %v1123_v37 }
  0x2e   : > { %1041 = vmatpush3.bf16.msra.mxu0 %v1124_v38 }
  0x2f   : > { %1063 = vmatpush3.bf16.msra.mxu1 %v1125_v39 }
  0x31   : > { %745 = vmatmul.mubr.bf16.vlgmr.msra.gmra.mxu0 %v450_v21 }
  0x32   : > { %786 = vmatmul.mubr.bf16.vlgmr.msra.gmra.mxu1 %v452_v23 }
  0xf1   : > { %v1042_v24 = vpop.f32.mrf.mxu0 }
  0xf2   : > { %v1064_v25 = vpop.f32.mrf.mxu1 }
  0xf3   : > { %v1043_v26 = vpop.f32.mrf.mxu0 }
  0xf4   : > { %v1065_v27 = vpop.f32.mrf.mxu1  ;;  %v1044_v30 = vadd.f32 %v1043_v26, %v1042_v24 }
  0xf5   : > { %v1045_v28 = vpop.f32.mrf.mxu0  ;;  %v1066_v31 = vadd.f32 %v1065_v27, %v1064_v25 }
  0xf6   : > { %v1067_v29 = vpop.f32.mrf.mxu1 }
  0xf7   : > { %v1046_v32 = vpop.f32.mrf.mxu0  ;;  %v788_v36 = vadd.f32 %v1066_v31, %v1044_v30 }
  0xf8   : > { %v1047_v33 = vadd.f32 %v1046_v32, %v1045_v28  ;;  %v1068_v34 = vpop.f32.mrf.mxu1 }
  0xf9   : > { %v1069_v35 = vadd.f32 %v1068_v34, %v1067_v29 }
  0xfb   : > { %v791_v37 = vadd.f32 %v1069_v35, %v1047_v33 }
  0xfd   : > { %v1024_v38 = vpack.c.bf16 %v791_v37, %v788_v36 }
  0xff   : > { %1025 = vst [vmem:[%s361_s8] sm:$0xff] %v1024_v38  }
 0x100 PF: > { %s14_s17 = sadd.s32 1, %s1148_s17   ;;  %s1261_s15 = smov %s1144_s16 }
 0x101   : > { %p11_p5 = scmp.ge.s32.totalorder %s14_s17, 6   ;;  %s1262_s16 = smov %s1264_s18 }
 0x103   :  { %13 = sbr.rel (!%p11_p5) target bundleno = 2 (0x2), region = 83 }

// kernel: tile.123
= control target key start
LH: loop header
LB: loop body
LE: loop exit
PB: predicated region body
PF: predicated region fallthrough
CT: control target
= control target key end

     0   :  { %s22_s0 = inlined_call_operand.vmem [shape: f32[32], index: 0, kind: input, shape index: {}]   ;;  %s23_s1 = inlined_call_operand.vmem [shape: f32[4,32], index: 1, kind: output, shape index: {}]  }
   0x1   :  { %v4_v0 = vld [vmem:[%s22_s0] ss:$0 sm:$0xff] }
   0x2   :  { %5 = vst [vmem:[%s23_s1] sm:$0xf] %v4_v0 }

// kernel: tile.128
= control target key start
LH: loop header
LB: loop body
LE: loop exit
PB: predicated region body
PF: predicated region fallthrough
CT: control target
= control target key end

     0   :  { %vm8_vm0 = vcmask 261120   ;;  %s40_s8 = smov 32   ;;  %s41_s9 = smov 64   ;;  %vm14_vm1 = vcmask 1048320   ;;  %vm20_vm2 = vcmask 785920   ;;  %vm26_vm3 = vcmask 523520   ;;  %s58_s0 = inlined_call_operand.vmem [shape: f32[4,32], index: 0, kind: input, shape index: {}]   ;;  %s59_s1 = inlined_call_operand.vmem [shape: f32[1,128], index: 1, kind: output, shape index: {}]  }
   0x1   :  { %v5_v0 = vld [vmem:[%s58_s0] sm:$0xf]  ;;  %s39_s0 = smov 96  }
   0x2   :  { %6 = vst [vmem:[#allocation1] sm:$0xf] %v5_v0 }
   0x9   :  { %v11_v1 = vld [vmem:[#allocation1 + $0x3] sm:$0x1]   ;;  %v23_v2 = vld [vmem:[#allocation1 + $0x1] sm:$0x1]   ;;  %v7_v3 = vld [vmem:[#allocation1] sm:$0x1]  }
   0xa   :  { %12 = vrot.lane.b32.xlu0 %v11_v1, %s39_s0  ;;  %24 = vrot.lane.b32.xlu1 %v23_v2, %s40_s8  ;;  %v17_v4 = vld [vmem:[#allocation1 + $0x2] sm:$0x1]   ;;  %9 = vst.msk [vmem:[#allocation0] sm:$0x1] %vm8_vm0, %v7_v3  }
   0xe   :  { %18 = vrot.lane.b32.xlu0 %v17_v4, %s41_s9 }
  0x7c   :  { %v13_v5 = vpop.permute.xlu0 %12   ;;  %v25_v6 = vpop.permute.xlu1 %24  }
  0x7d   :  { %15 = vst.msk [vmem:[#allocation0] sm:$0x1] %vm14_vm1, %v13_v5  }
  0x80   :  { %v19_v7 = vpop.permute.xlu0 %18  }
  0x81   :  { %21 = vst.msk [vmem:[#allocation0] sm:$0x1] %vm20_vm2, %v19_v7  }
  0x82   :  { %27 = vst.msk [vmem:[#allocation0] sm:$0x1] %vm26_vm3, %v25_v6  }
  0x89   :  { %v32_v8 = vld [vmem:[#allocation0] sm:$0x1] }
  0x8a   :  { %35 = vst [vmem:[%s59_s1] sm:$0x1] %v32_v8 }

// kernel: _lambda_.29
= control target key start
LH: loop header
LB: loop body
LE: loop exit
PB: predicated region body
PF: predicated region fallthrough
CT: control target
= control target key end

     0   :  { %s992_s15 = smov 0   ;;  %s994_s16 = smov 0   ;;  %s1057_s0 = inlined_call_operand.vmem [shape: bf16[4,32,256], index: 0, kind: input, shape index: {}]   ;;  %s1058_s1 = inlined_call_operand.vmem [shape: bf16[4,256,128], index: 1, kind: input, shape index: {}]   ;;  %s1059_s2 = inlined_call_operand.vmem [shape: f32[1,256], index: 2, kind: input, shape index: {}]   ;;  %s1060_s3 = inlined_call_operand.vmem [shape: f32[1,256], index: 3, kind: input, shape index: {}]   ;;  %s1061_s4 = inlined_call_operand.vmem [shape: bf16[4,32,128], index: 4, kind: output, shape index: {}]  }
   0x1   :  { %s996_s17 = smov 0  }
   0x2 LB: > { %s40_s18 = sadd.s32 1, %s961_s16  ;;  %p812_p0 = scmp.ge.s32.totalorder %s965_s17, 1  ;;  %s965_s17 = sphi %s996_s17, %s14_s17   ;;  %s961_s16 = sphi %s994_s16, %s1063_s16   ;;  %s957_s15 = sphi %s992_s15, %s1062_s15  }
   0x3   : > { %p42_p1 = scmp.ge.s32.totalorder %s40_s18, 4  ;;  %p249_p2 = scmp.lt.s32.totalorder %s965_s17, 5 }
   0x5   : > { %s1065_s18 = smov (%p42_p1, %s40_s18), 0  ;;  %p250_p3 = pnand %p812_p0, %p249_p2 }
   0x6   : > { %p313_p4 = scmp.lt.s32.totalorder (!%p250_p3), %s957_s15, 3 }
   0x7   : > { %253 = sbr.rel (%p250_p3) target bundleno = 252 (0xfc), region = 36 }
   0xc   : > { %s1067_s15 = smov (!%p313_p4, %s957_s15), 3  ;;  %v386_v3 = vlaneseq  ;;  %v384_v9 = vld [vmem:[%s1059_s2] sm:$0x3] }
   0xd   : > { %s842_s19 = sshll.u32 %s1067_s15, 7  ;;  %s841_s23 = sshll.u32 %s1067_s15, 5  ;;  %v404_v14 = vld [vmem:[%s1060_s3] sm:$0x3] }
   0xe   : > { %s1016_s22 = scalar_lea.vmem %s1058_s1, %s842_s19  ;;  %v387_v6 = vshrl.u32 %v386_v3, 7  ;;  %s324_s28 = scalar_lea.vmem %s1057_s0, %s841_s23 }
   0xf   : > { %v927_v0 = vld [vmem:[%s1016_s22 + $0x78] sm:$0xff]   ;;  %v929_v2 = vld [vmem:[%s1016_s22 + $0x70] sm:$0xff]   ;;  %v931_v5 = vld [vmem:[%s1016_s22 + $0x68] sm:$0xff]   ;;  %s843_s5 = sshll.u32 %s1067_s15, 4 }
  0x10   : > { %v928_v1 = vld [vmem:[%s1016_s22 + $0x38] sm:$0xff]   ;;  %859 = vmatprep.subr.bf16.mxu0 %v927_v0  ;;  %887 = vmatprep.subr.bf16.mxu1 %v927_v0  ;;  %v930_v4 = vld [vmem:[%s1016_s22 + $0x30] sm:$0xff]   ;;  %v932_v7 = vld [vmem:[%s1016_s22 + $0x28] sm:$0xff]   ;;  %v388_v10 = vsub.s32 0, %v387_v6  ;;  %v392_v12 = vsub.s32 1, %v387_v6  ;;  %s361_s8 = scalar_lea.vmem %s1061_s4, %s843_s5 }
  0x11   : > { %860 = vmatpush3.bf16.msra.mxu0 %v928_v1  ;;  %895 = vmatpush3.bf16.msra.mxu1 %v928_v1  ;;  %v933_v8 = vld [vmem:[%s1016_s22 + $0x60] sm:$0xff]   ;;  %v935_v13 = vld [vmem:[%s1016_s22 + $0x58] sm:$0xff]   ;;  %v937_v16 = vld [vmem:[%s1016_s22 + $0x50] sm:$0xff]  }
  0x12   : > { %861 = vmatprep.subr.bf16.mxu0 %v929_v2  ;;  %888 = vmatprep.subr.bf16.mxu1 %v929_v2  ;;  %v934_v11 = vld [vmem:[%s1016_s22 + $0x20] sm:$0xff]   ;;  %v936_v15 = vld [vmem:[%s1016_s22 + $0x18] sm:$0xff]   ;;  %v389_v17 = vrot.slane %v384_v9, %v388_v10  ;;  %v393_v18 = vrot.slane %v384_v9, %v392_v12  ;;  %v373_v20 = vld [vmem:[%s324_s28 + $0x8] sm:$0xff]  ;;  %v409_v21 = vrot.slane %v404_v14, %v388_v10 }
  0x13   : > { %v372_v19 = vld [vmem:[%s324_s28] sm:$0xff]  ;;  %v413_v22 = vrot.slane %v404_v14, %v392_v12  ;;  %v374_v23 = vld [vmem:[%s324_s28 + $0x10] sm:$0xff]  ;;  %v378_v26 = vunpack.c.l.bf16 %v373_v20  ;;  %v379_v27 = vunpack.c.h.bf16 %v373_v20  ;;  %v375_v28 = vld [vmem:[%s324_s28 + $0x18] sm:$0xff] }
  0x14   : > { %v376_v24 = vunpack.c.l.bf16 %v372_v19  ;;  %v377_v25 = vunpack.c.h.bf16 %v372_v19  ;;  %v380_v29 = vunpack.c.l.bf16 %v374_v23  ;;  %v381_v30 = vunpack.c.h.bf16 %v374_v23  ;;  %v938_v33 = vld [vmem:[%s1016_s22 + $0x10] sm:$0xff]   ;;  %v939_v37 = vld [vmem:[%s1016_s22 + $0x48] sm:$0xff]   ;;  %v941_v53 = vld [vmem:[%s1016_s22 + $0x40] sm:$0xff]  }
  0x15   : > { %862 = vmatpush3.bf16.msra.mxu0 %v930_v4  ;;  %896 = vmatpush3.bf16.msra.mxu1 %v930_v4  ;;  %v382_v31 = vunpack.c.l.bf16 %v375_v28  ;;  %v383_v32 = vunpack.c.h.bf16 %v375_v28  ;;  %v399_v35 = vmul.f32 %v393_v18, %v379_v27  ;;  %v398_v40 = vmul.f32 %v389_v17, %v378_v26  ;;  %v940_v49 = vld [vmem:[%s1016_s22 + $0x8] sm:$0xff]   ;;  %v942_v63 = vld [vmem:[%s1016_s22] sm:$0xff]  }
  0x16   : > { %863 = vmatprep.subr.bf16.mxu0 %v931_v5  ;;  %889 = vmatprep.subr.bf16.mxu1 %v931_v5  ;;  %v397_v34 = vmul.f32 %v393_v18, %v377_v25  ;;  %v396_v36 = vmul.f32 %v389_v17, %v376_v24  ;;  %v401_v38 = vmul.f32 %v393_v18, %v381_v30 }
  0x17   : > { %v403_v39 = vmul.f32 %v393_v18, %v383_v32  ;;  %v419_v42 = vadd.f32 %v413_v22, %v399_v35  ;;  %v400_v44 = vmul.f32 %v389_v17, %v380_v29  ;;  %v418_v47 = vadd.f32 %v409_v21, %v398_v40 }
  0x18   : > { %v417_v41 = vadd.f32 %v413_v22, %v397_v34  ;;  %v416_v43 = vadd.f32 %v409_v21, %v396_v36  ;;  %v421_v45 = vadd.f32 %v413_v22, %v401_v38  ;;  %v402_v48 = vmul.f32 %v389_v17, %v382_v31 }
  0x19   : > { %864 = vmatpush3.bf16.msra.mxu0 %v932_v7  ;;  %897 = vmatpush3.bf16.msra.mxu1 %v932_v7  ;;  %v423_v46 = vadd.f32 %v413_v22, %v403_v39  ;;  %v427_v51 = vmax.f32 %v419_v42, 0.0  ;;  %v420_v52 = vadd.f32 %v409_v21, %v400_v44  ;;  %v426_v60 = vmax.f32 %v418_v47, 0.0 }
  0x1a   : > { %865 = vmatprep.subr.bf16.mxu0 %v933_v8  ;;  %890 = vmatprep.subr.bf16.mxu1 %v933_v8  ;;  %v425_v50 = vmax.f32 %v417_v41, 0.0  ;;  %v429_v54 = vmax.f32 %v421_v45, 0.0  ;;  %v422_v56 = vadd.f32 %v409_v21, %v402_v48  ;;  %v424_v58 = vmax.f32 %v416_v43, 0.0 }
  0x1b   : > { %v431_v55 = vmax.f32 %v423_v46, 0.0  ;;  %v428_v61 = vmax.f32 %v420_v52, 0.0 }
  0x1c   : > { %v433_v57 = vpack.c.bf16 %v427_v51, %v425_v50  ;;  %v430_v62 = vmax.f32 %v422_v56, 0.0  ;;  %v432_v0 = vpack.c.bf16 %v426_v60, %v424_v58 }
  0x1d   : > { %866 = vmatpush3.bf16.msra.mxu0 %v934_v11  ;;  %898 = vmatpush3.bf16.msra.mxu1 %v934_v11  ;;  %v435_v59 = vpack.c.bf16 %v431_v55, %v429_v54 }
  0x1e   : > { %867 = vmatprep.subr.bf16.mxu0 %v935_v13  ;;  %891 = vmatprep.subr.bf16.mxu1 %v935_v13  ;;  %v434_v1 = vpack.c.bf16 %v430_v62, %v428_v61 }
  0x1f   : > { %600 = vmatprep.mubr.bf16.mxu0 %v433_v57  ;;  %608 = vmatprep.mubr.bf16.mxu1 %v435_v59 }
  0x21   : > { %868 = vmatpush3.bf16.msra.mxu0 %v936_v15  ;;  %899 = vmatpush3.bf16.msra.mxu1 %v936_v15 }
  0x22   : > { %869 = vmatprep.subr.bf16.mxu0 %v937_v16  ;;  %892 = vmatprep.subr.bf16.mxu1 %v937_v16 }
  0x25   : > { %870 = vmatpush3.bf16.msra.mxu0 %v938_v33  ;;  %900 = vmatpush3.bf16.msra.mxu1 %v938_v33 }
  0x26   : > { %871 = vmatprep.subr.bf16.mxu0 %v939_v37  ;;  %893 = vmatprep.subr.bf16.mxu1 %v939_v37 }
  0x29   : > { %872 = vmatpush3.bf16.msra.mxu0 %v940_v49  ;;  %901 = vmatpush3.bf16.msra.mxu1 %v940_v49 }
  0x2a   : > { %873 = vmatprep.subr.bf16.mxu0 %v941_v53  ;;  %894 = vmatprep.subr.bf16.mxu1 %v941_v53 }
  0x2d   : > { %874 = vmatpush3.bf16.msra.mxu0 %v942_v63  ;;  %902 = vmatpush3.bf16.msra.mxu1 %v942_v63 }
  0x30   : > { %601 = vmatmul.mubr.bf16.vlgmr.msra.gmra.mxu0 %v432_v0  ;;  %609 = vmatmul.mubr.bf16.vlgmr.msra.gmra.mxu1 %v434_v1 }
  0xf0   : > { %v875_v2 = vpop.f32.mrf.mxu0  ;;  %v881_v3 = vpop.f32.mrf.mxu1 }
  0xf2   : > { %v876_v4 = vpop.f32.mrf.mxu0  ;;  %v882_v5 = vpop.f32.mrf.mxu1 }
  0xf3   : > { %v877_v10 = vadd.f32 %v876_v4, %v875_v2  ;;  %v883_v11 = vadd.f32 %v882_v5, %v881_v3 }
  0xf4   : > { %v878_v6 = vpop.f32.mrf.mxu0  ;;  %v884_v7 = vpop.f32.mrf.mxu1 }
  0xf6   : > { %v879_v8 = vpop.f32.mrf.mxu0  ;;  %v885_v9 = vpop.f32.mrf.mxu1 }
  0xf7   : > { %v880_v12 = vadd.f32 %v879_v8, %v878_v6  ;;  %v886_v13 = vadd.f32 %v885_v9, %v884_v7 }
  0xf9   : > { %v851_v14 = vpack.c.bf16 %v880_v12, %v877_v10  ;;  %v856_v15 = vpack.c.bf16 %v886_v13, %v883_v11 }
  0xfb   : > { %852 = vst [vmem:[%s361_s8] sm:$0xff] %v851_v14   ;;  %858 = vst [vmem:[%s361_s8 + $0x8] sm:$0xff] %v856_v15  }
  0xfc PF: > { %s14_s17 = sadd.s32 1, %s965_s17   ;;  %s1062_s15 = smov %s961_s16 }
  0xfd   : > { %p11_p5 = scmp.ge.s32.totalorder %s14_s17, 6   ;;  %s1063_s16 = smov %s1065_s18 }
  0xff   :  { %13 = sbr.rel (!%p11_p5) target bundleno = 2 (0x2), region = 83 }

// kernel: _lambda_.31
= control target key start
LH: loop header
LB: loop body
LE: loop exit
PB: predicated region body
PF: predicated region fallthrough
CT: control target
= control target key end

     0   :  { %s1218_s15 = smov 0   ;;  %s1220_s16 = smov 0   ;;  %s1321_s0 = inlined_call_operand.vmem [shape: bf16[4,128,128], index: 0, kind: input, shape index: {}]   ;;  %s1322_s1 = inlined_call_operand.vmem [shape: bf16[4,128,128], index: 1, kind: input, shape index: {}]   ;;  %s1323_s2 = inlined_call_operand.vmem [shape: f32[1,128], index: 2, kind: input, shape index: {}]   ;;  %s1324_s3 = inlined_call_operand.vmem [shape: f32[1,128], index: 3, kind: input, shape index: {}]   ;;  %s1325_s4 = inlined_call_operand.vmem [shape: bf16[4,128,128], index: 4, kind: output, shape index: {}]  }
   0x1   :  { %s1222_s17 = smov 0  }
   0x2 LB: > { %s40_s18 = sadd.s32 1, %s1187_s16  ;;  %p933_p0 = scmp.ge.s32.totalorder %s1191_s17, 1  ;;  %s1191_s17 = sphi %s1222_s17, %s14_s17   ;;  %s1187_s16 = sphi %s1220_s16, %s1327_s16   ;;  %s1183_s15 = sphi %s1218_s15, %s1326_s15  }
   0x3   : > { %p42_p1 = scmp.ge.s32.totalorder %s40_s18, 4  ;;  %p242_p2 = scmp.lt.s32.totalorder %s1191_s17, 5 }
   0x5   : > { %s1329_s18 = smov (%p42_p1, %s40_s18), 0  ;;  %p243_p3 = pnand %p933_p0, %p242_p2 }
   0x6   : > { %p301_p4 = scmp.lt.s32.totalorder (!%p243_p3), %s1183_s15, 3 }
   0x7   : > { %246 = sbr.rel (%p243_p3) target bundleno = 258 (0x102), region = 36 }
   0xc   : > { %s1331_s15 = smov (!%p301_p4, %s1183_s15), 3  ;;  %v1256_v3 = vld [vmem:[%s1323_s2] ss:$0 sm:$0xff] }
   0xd   : > { %s1236_s19 = sshll.u32 %s1331_s15, 6  ;;  %v1266_v13 = vld [vmem:[%s1324_s3] ss:$0 sm:$0xff] }
   0xe   : > { %s1242_s22 = scalar_lea.vmem %s1322_s1, %s1236_s19  ;;  %s1251_s25 = scalar_lea.vmem %s1321_s0, %s1236_s19 }
   0xf   : > { %v1161_v0 = vld [vmem:[%s1242_s22 + $0x38] sm:$0xff]   ;;  %v1162_v1 = vld [vmem:[%s1242_s22 + $0x30] sm:$0xff]   ;;  %v1163_v2 = vld [vmem:[%s1242_s22 + $0x28] sm:$0xff]   ;;  %s343_s6 = scalar_lea.vmem %s1325_s4, %s1236_s19 }
  0x10   : > { %1089 = vmatprep.subr.bf16.mxu0 %v1161_v0  ;;  %1121 = vmatprep.subr.bf16.mxu1 %v1161_v0  ;;  %v1164_v4 = vld [vmem:[%s1242_s22 + $0x20] sm:$0xff]   ;;  %v1059_v7 = vld [vmem:[%s1251_s25 + $0x8] sm:$0xff]   ;;  %v1060_v15 = vld [vmem:[%s1251_s25 + $0x10] sm:$0xff]  }
  0x11   : > { %1090 = vmatpush3.bf16.msra.mxu0 %v1161_v0  ;;  %1129 = vmatpush3.bf16.msra.mxu1 %v1161_v0  ;;  %v988_v5 = vld [vmem:[%s1251_s25] sm:$0xff]   ;;  %v1063_v12 = vld [vmem:[%s1251_s25 + $0x28] sm:$0xff]   ;;  %v993_v14 = vunpack.c.l.bf16 %v1059_v7  ;;  %v1165_v19 = vld [vmem:[%s1242_s22 + $0x18] sm:$0xff]   ;;  %v994_v21 = vunpack.c.h.bf16 %v1059_v7  ;;  %v997_v27 = vunpack.c.l.bf16 %v1060_v15  ;;  %v998_v33 = vunpack.c.h.bf16 %v1060_v15 }
  0x12   : > { %1091 = vmatprep.subr.bf16.mxu0 %v1162_v1  ;;  %1122 = vmatprep.subr.bf16.mxu1 %v1162_v1  ;;  %v1062_v6 = vld [vmem:[%s1251_s25 + $0x20] sm:$0xff]   ;;  %v989_v8 = vunpack.c.l.bf16 %v988_v5  ;;  %v990_v9 = vunpack.c.h.bf16 %v988_v5  ;;  %v1009_v22 = vunpack.c.l.bf16 %v1063_v12  ;;  %v1010_v23 = vunpack.c.h.bf16 %v1063_v12  ;;  %v1064_v34 = vld [vmem:[%s1251_s25 + $0x30] sm:$0xff]   ;;  %v1061_v47 = vld [vmem:[%s1251_s25 + $0x18] sm:$0xff]  }
  0x13   : > { %v1005_v10 = vunpack.c.l.bf16 %v1062_v6  ;;  %v1006_v11 = vunpack.c.h.bf16 %v1062_v6  ;;  %v407_v29 = vmul.f32 %v993_v14, %v1256_v3  ;;  %v1166_v35 = vld [vmem:[%s1242_s22 + $0x10] sm:$0xff]   ;;  %v408_v37 = vmul.f32 %v994_v21, %v1256_v3  ;;  %v1065_v48 = vld [vmem:[%s1251_s25 + $0x38] sm:$0xff]   ;;  %v1167_v49 = vld [vmem:[%s1242_s22 + $0x8] sm:$0xff]  }
  0x14   : > { %v405_v16 = vmul.f32 %v989_v8, %v1256_v3  ;;  %v406_v17 = vmul.f32 %v990_v9, %v1256_v3  ;;  %v415_v38 = vmul.f32 %v1009_v22, %v1256_v3  ;;  %v416_v40 = vmul.f32 %v1010_v23, %v1256_v3  ;;  %v1168_v63 = vld [vmem:[%s1242_s22] sm:$0xff]  }
  0x15   : > { %1092 = vmatpush3.bf16.msra.mxu0 %v1162_v1  ;;  %1130 = vmatpush3.bf16.msra.mxu1 %v1162_v1  ;;  %v413_v18 = vmul.f32 %v1005_v10, %v1256_v3  ;;  %v414_v20 = vmul.f32 %v1006_v11, %v1256_v3  ;;  %v409_v41 = vmul.f32 %v997_v27, %v1256_v3  ;;  %v1013_v43 = vunpack.c.l.bf16 %v1064_v34 }
  0x16   : > { %1093 = vmatprep.subr.bf16.mxu0 %v1163_v2  ;;  %1123 = vmatprep.subr.bf16.mxu1 %v1163_v2  ;;  %v428_v24 = vadd.f32 %v1266_v13, %v405_v16  ;;  %v429_v25 = vadd.f32 %v1266_v13, %v406_v17  ;;  %v430_v44 = vadd.f32 %v1266_v13, %v407_v29  ;;  %v1014_v46 = vunpack.c.h.bf16 %v1064_v34 }
  0x17   : > { %v436_v26 = vadd.f32 %v1266_v13, %v413_v18  ;;  %v437_v28 = vadd.f32 %v1266_v13, %v414_v20  ;;  %v410_v45 = vmul.f32 %v998_v33, %v1256_v3  ;;  %v431_v50 = vadd.f32 %v1266_v13, %v408_v37 }
  0x18   : > { %v444_v30 = vmax.f32 %v428_v24, 0.0  ;;  %v445_v31 = vmax.f32 %v429_v25, 0.0  ;;  %v438_v51 = vadd.f32 %v1266_v13, %v415_v38  ;;  %v417_v52 = vmul.f32 %v1013_v43, %v1256_v3 }
  0x19   : > { %1094 = vmatpush3.bf16.msra.mxu0 %v1163_v2  ;;  %1131 = vmatpush3.bf16.msra.mxu1 %v1163_v2  ;;  %v452_v32 = vmax.f32 %v436_v26, 0.0  ;;  %v453_v36 = vmax.f32 %v437_v28, 0.0  ;;  %v439_v53 = vadd.f32 %v1266_v13, %v416_v40  ;;  %v432_v54 = vadd.f32 %v1266_v13, %v409_v41 }
  0x1a   : > { %1095 = vmatprep.subr.bf16.mxu0 %v1164_v4  ;;  %1124 = vmatprep.subr.bf16.mxu1 %v1164_v4  ;;  %v460_v39 = vpack.c.bf16 %v445_v31, %v444_v30  ;;  %v418_v55 = vmul.f32 %v1014_v46, %v1256_v3  ;;  %v1001_v56 = vunpack.c.l.bf16 %v1061_v47  ;;  %v1002_v57 = vunpack.c.h.bf16 %v1061_v47 }
  0x1b   : > { %v464_v42 = vpack.c.bf16 %v453_v36, %v452_v32  ;;  %v1017_v58 = vunpack.c.l.bf16 %v1065_v48  ;;  %v1018_v59 = vunpack.c.h.bf16 %v1065_v48  ;;  %v433_v60 = vadd.f32 %v1266_v13, %v410_v45 }
  0x1c   : > { %1105 = vmatprep.mubr.bf16.mxu0 %v460_v39  ;;  %v440_v61 = vadd.f32 %v1266_v13, %v417_v52  ;;  %v441_v62 = vadd.f32 %v1266_v13, %v418_v55  ;;  %v446_v0 = vmax.f32 %v430_v44, 0.0  ;;  %v447_v1 = vmax.f32 %v431_v50, 0.0 }
  0x1d   : > { %1096 = vmatpush3.bf16.msra.mxu0 %v1164_v4  ;;  %1132 = vmatpush3.bf16.msra.mxu1 %v1164_v4  ;;  %v454_v2 = vmax.f32 %v438_v51, 0.0  ;;  %v455_v4 = vmax.f32 %v439_v53, 0.0  ;;  %v411_v5 = vmul.f32 %v1001_v56, %v1256_v3  ;;  %v412_v6 = vmul.f32 %v1002_v57, %v1256_v3 }
  0x1e   : > { %1097 = vmatprep.subr.bf16.mxu0 %v1165_v19  ;;  %1125 = vmatprep.subr.bf16.mxu1 %v1165_v19  ;;  %v419_v7 = vmul.f32 %v1017_v58, %v1256_v3  ;;  %v420_v8 = vmul.f32 %v1018_v59, %v1256_v3  ;;  %v448_v9 = vmax.f32 %v432_v54, 0.0  ;;  %v449_v10 = vmax.f32 %v433_v60, 0.0 }
  0x1f   : > { %1113 = vmatprep.mubr.bf16.mxu1 %v464_v42  ;;  %v456_v11 = vmax.f32 %v440_v61, 0.0  ;;  %v457_v12 = vmax.f32 %v441_v62, 0.0  ;;  %v461_v14 = vpack.c.bf16 %v447_v1, %v446_v0  ;;  %v465_v15 = vpack.c.bf16 %v455_v4, %v454_v2 }
  0x20   : > { %v434_v16 = vadd.f32 %v1266_v13, %v411_v5  ;;  %v435_v17 = vadd.f32 %v1266_v13, %v412_v6  ;;  %v442_v18 = vadd.f32 %v1266_v13, %v419_v7  ;;  %v462_v3 = vpack.c.bf16 %v449_v10, %v448_v9 }
  0x21   : > { %1098 = vmatpush3.bf16.msra.mxu0 %v1165_v19  ;;  %1133 = vmatpush3.bf16.msra.mxu1 %v1165_v19  ;;  %v443_v19 = vadd.f32 %v1266_v13, %v420_v8  ;;  %v466_v20 = vpack.c.bf16 %v457_v12, %v456_v11 }
  0x22   : > { %1099 = vmatprep.subr.bf16.mxu0 %v1166_v35  ;;  %1126 = vmatprep.subr.bf16.mxu1 %v1166_v35  ;;  %v450_v21 = vmax.f32 %v434_v16, 0.0  ;;  %v451_v22 = vmax.f32 %v435_v17, 0.0  ;;  %v458_v23 = vmax.f32 %v442_v18, 0.0 }
  0x23   : > { %v459_v24 = vmax.f32 %v443_v19, 0.0 }
  0x24   : > { %v463_v25 = vpack.c.bf16 %v451_v22, %v450_v21 }
  0x25   : > { %1100 = vmatpush3.bf16.msra.mxu0 %v1166_v35  ;;  %1134 = vmatpush3.bf16.msra.mxu1 %v1166_v35  ;;  %v467_v26 = vpack.c.bf16 %v459_v24, %v458_v23 }
  0x26   : > { %1101 = vmatprep.subr.bf16.mxu0 %v1167_v49  ;;  %1127 = vmatprep.subr.bf16.mxu1 %v1167_v49 }
  0x29   : > { %1102 = vmatpush3.bf16.msra.mxu0 %v1167_v49  ;;  %1135 = vmatpush3.bf16.msra.mxu1 %v1167_v49 }
  0x2a   : > { %1103 = vmatprep.subr.bf16.mxu0 %v1168_v63  ;;  %1128 = vmatprep.subr.bf16.mxu1 %v1168_v63 }
  0x2d   : > { %1104 = vmatpush3.bf16.msra.mxu0 %v1168_v63  ;;  %1136 = vmatpush3.bf16.msra.mxu1 %v1168_v63 }
  0x30   : > { %1106 = vmatmul.mubr.bf16.vlgmr.msra.gmra.mxu0 %v461_v14  ;;  %1114 = vmatmul.mubr.bf16.vlgmr.msra.gmra.mxu1 %v465_v15 }
  0x31   : > { %1109 = vmatprep.mubr.bf16.mxu0 %v462_v3  ;;  %1117 = vmatprep.mubr.bf16.mxu1 %v466_v20 }
  0x38   : > { %1110 = vmatmul.mubr.bf16.gmra.mxu0 %v463_v25  ;;  %1118 = vmatmul.mubr.bf16.gmra.mxu1 %v467_v26 }
  0xf0   : > { %v1107_v27 = vpop.f32.mrf.mxu0  ;;  %v1115_v28 = vpop.f32.mrf.mxu1 }
  0xf2   : > { %v582_v13 = vpop.f32.mrf.mxu0  ;;  %v614_v29 = vpop.f32.mrf.mxu1 }
  0xf4   : > { %v1108_v30 = vpop.f32.mrf.mxu0  ;;  %v1116_v31 = vpop.f32.mrf.mxu1 }
  0xf5   : > { %v1027_v32 = vpack.c.bf16 %v1108_v30, %v1107_v27  ;;  %v1047_v33 = vpack.c.bf16 %v1116_v31, %v1115_v28 }
  0xf6   : > { %v585_v34 = vpop.f32.mrf.mxu0  ;;  %v617_v35 = vpop.f32.mrf.mxu1 }
  0xf7   : > { %1066 = vst [vmem:[%s343_s6 + $0x8] sm:$0xff] %v1027_v32   ;;  %1070 = vst [vmem:[%s343_s6 + $0x28] sm:$0xff] %v1047_v33   ;;  %v1022_v36 = vpack.c.bf16 %v585_v34, %v582_v13  ;;  %v1042_v37 = vpack.c.bf16 %v617_v35, %v614_v29 }
  0xf8   : > { %v1111_v38 = vpop.f32.mrf.mxu0  ;;  %v1119_v39 = vpop.f32.mrf.mxu1 }
  0xf9   : > { %1023 = vst [vmem:[%s343_s6] sm:$0xff] %v1022_v36   ;;  %1069 = vst [vmem:[%s343_s6 + $0x20] sm:$0xff] %v1042_v37  }
  0xfa   : > { %v598_v40 = vpop.f32.mrf.mxu0  ;;  %v630_v41 = vpop.f32.mrf.mxu1 }
  0xfc   : > { %v1112_v42 = vpop.f32.mrf.mxu0  ;;  %v1120_v43 = vpop.f32.mrf.mxu1 }
  0xfd   : > { %v1037_v44 = vpack.c.bf16 %v1112_v42, %v1111_v38  ;;  %v1057_v45 = vpack.c.bf16 %v1120_v43, %v1119_v39 }
  0xfe   : > { %v601_v46 = vpop.f32.mrf.mxu0  ;;  %v633_v47 = vpop.f32.mrf.mxu1 }
  0xff   : > { %1068 = vst [vmem:[%s343_s6 + $0x18] sm:$0xff] %v1037_v44   ;;  %1072 = vst [vmem:[%s343_s6 + $0x38] sm:$0xff] %v1057_v45   ;;  %v1032_v48 = vpack.c.bf16 %v601_v46, %v598_v40  ;;  %v1052_v49 = vpack.c.bf16 %v633_v47, %v630_v41 }
 0x101   : > { %1067 = vst [vmem:[%s343_s6 + $0x10] sm:$0xff] %v1032_v48   ;;  %1071 = vst [vmem:[%s343_s6 + $0x30] sm:$0xff] %v1052_v49  }
 0x102 PF: > { %s14_s17 = sadd.s32 1, %s1191_s17   ;;  %s1326_s15 = smov %s1187_s16 }
 0x103   : > { %p11_p5 = scmp.ge.s32.totalorder %s14_s17, 6   ;;  %s1327_s16 = smov %s1329_s18 }
 0x105   :  { %13 = sbr.rel (!%p11_p5) target bundleno = 2 (0x2), region = 83 }

// kernel: tile.133
= control target key start
LH: loop header
LB: loop body
LE: loop exit
PB: predicated region body
PF: predicated region fallthrough
CT: control target
= control target key end

     0   :  { %s22_s0 = inlined_call_operand.vmem [shape: f32[16], index: 0, kind: input, shape index: {}]   ;;  %s23_s1 = inlined_call_operand.vmem [shape: f32[4,16], index: 1, kind: output, shape index: {}]  }
   0x1   :  { %v4_v0 = vld [vmem:[%s22_s0] ss:$0 sm:$0xff] }
   0x2   :  { %5 = vst [vmem:[%s23_s1] sm:$0xf] %v4_v0 }

// kernel: tile.138
= control target key start
LH: loop header
LB: loop body
LE: loop exit
PB: predicated region body
PF: predicated region fallthrough
CT: control target
= control target key end

     0   :  { %vm8_vm0 = vcmask 130048   ;;  %s40_s8 = smov 16   ;;  %s41_s9 = smov 32   ;;  %vm14_vm1 = vcmask 523648   ;;  %vm20_vm2 = vcmask 392448   ;;  %vm26_vm3 = vcmask 261248   ;;  %s58_s0 = inlined_call_operand.vmem [shape: f32[4,16], index: 0, kind: input, shape index: {}]   ;;  %s59_s1 = inlined_call_operand.vmem [shape: f32[1,64], index: 1, kind: output, shape index: {}]  }
   0x1   :  { %v5_v0 = vld [vmem:[%s58_s0] sm:$0xf]  ;;  %s39_s0 = smov 48  }
   0x2   :  { %6 = vst [vmem:[#allocation1] sm:$0xf] %v5_v0 }
   0x9   :  { %v11_v1 = vld [vmem:[#allocation1 + $0x3] sm:$0x1]   ;;  %v23_v2 = vld [vmem:[#allocation1 + $0x1] sm:$0x1]   ;;  %v7_v3 = vld [vmem:[#allocation1] sm:$0x1]  }
   0xa   :  { %12 = vrot.lane.b32.xlu0 %v11_v1, %s39_s0  ;;  %24 = vrot.lane.b32.xlu1 %v23_v2, %s40_s8  ;;  %v17_v4 = vld [vmem:[#allocation1 + $0x2] sm:$0x1]   ;;  %9 = vst.msk [vmem:[#allocation0] sm:$0x1] %vm8_vm0, %v7_v3  }
   0xe   :  { %18 = vrot.lane.b32.xlu0 %v17_v4, %s41_s9 }
  0x7c   :  { %v13_v5 = vpop.permute.xlu0 %12   ;;  %v25_v6 = vpop.permute.xlu1 %24  }
  0x7d   :  { %15 = vst.msk [vmem:[#allocation0] sm:$0x1] %vm14_vm1, %v13_v5  }
  0x80   :  { %v19_v7 = vpop.permute.xlu0 %18  }
  0x81   :  { %21 = vst.msk [vmem:[#allocation0] sm:$0x1] %vm20_vm2, %v19_v7  }
  0x82   :  { %27 = vst.msk [vmem:[#allocation0] sm:$0x1] %vm26_vm3, %v25_v6  }
  0x89   :  { %v32_v8 = vld [vmem:[#allocation0] sm:$0x1] }
  0x8a   :  { %35 = vst [vmem:[%s59_s1] sm:$0x1] %v32_v8 }

// kernel: _lambda_.32
= control target key start
LH: loop header
LB: loop body
LE: loop exit
PB: predicated region body
PF: predicated region fallthrough
CT: control target
= control target key end

     0   :  { %v63_v0 = vmov 0.0   ;;  %s95_s1 = inlined_call_operand.vmem [shape: f32[8,128], index: 1, kind: output, shape index: {}]   ;;  %s96_s0 = inlined_call_operand.vmem [shape: bf16[32,128], index: 0, kind: input, shape index: {}]  }
   0x1   :  { %12 = vst [vmem:[%s95_s1] sm:$0xff] %v63_v0  ;;  %v54_v1 = vld [vmem:[%s96_s0] sm:$0xff]   ;;  %v61_v2 = vld [vmem:[%s96_s0 + $0x8] sm:$0xff]  }
   0x2   :  { %v55_v3 = vunpack.c.l.bf16 %v54_v1  ;;  %v56_v4 = vunpack.c.h.bf16 %v54_v1  ;;  %v59_v5 = vunpack.c.l.bf16 %v61_v2  ;;  %v60_v6 = vunpack.c.h.bf16 %v61_v2 }
   0x4   :  { %v22_v7 = vadd.f32 %v56_v4, %v55_v3  ;;  %v34_v8 = vmul.f32 %v55_v3, %v55_v3  ;;  %v35_v9 = vmul.f32 %v56_v4, %v56_v4  ;;  %v36_v10 = vmul.f32 %v59_v5, %v59_v5 }
   0x5   :  { %v37_v12 = vmul.f32 %v60_v6, %v60_v6 }
   0x6   :  { %v23_v11 = vadd.f32 %v59_v5, %v22_v7  ;;  %v38_v13 = vadd.f32 %v35_v9, %v34_v8 }
   0x8   :  { %v24_v14 = vadd.f32 %v60_v6, %v23_v11  ;;  %v39_v15 = vadd.f32 %v38_v13, %v36_v10  ;;  %v21_v26 = vld [vmem:[%s95_s1] sm:$0x1]  ;;  %v33_v29 = vld [vmem:[%s95_s1 + $0x1] sm:$0x1] }
   0xa   :  { %v25_v16 = vrot.slane %v24_v14, 4  ;;  %v40_v17 = vadd.f32 %v39_v15, %v37_v12 }
   0xc   :  { %v26_v18 = vadd.f32 %v25_v16, %v24_v14  ;;  %v41_v19 = vrot.slane %v40_v17, 4 }
   0xe   :  { %v27_v20 = vrot.slane %v26_v18, 2  ;;  %v42_v21 = vadd.f32 %v41_v19, %v40_v17 }
  0x10   :  { %v28_v22 = vadd.f32 %v27_v20, %v26_v18  ;;  %v43_v23 = vrot.slane %v42_v21, 2 }
  0x12   :  { %v29_v24 = vrot.slane %v28_v22, 1  ;;  %v44_v25 = vadd.f32 %v43_v23, %v42_v21 }
  0x14   :  { %v30_v27 = vadd.f32 %v29_v24, %v28_v22  ;;  %v45_v28 = vrot.slane %v44_v25, 1 }
  0x16   :  { %v31_v30 = vadd.f32 %v30_v27, %v21_v26  ;;  %v46_v31 = vadd.f32 %v45_v28, %v44_v25 }
  0x18   :  { %32 = vst [vmem:[%s95_s1] sm:$0x1] %v31_v30  ;;  %v47_v32 = vadd.f32 %v46_v31, %v33_v29 }
  0x1a   :  { %48 = vst [vmem:[%s95_s1 + $0x1] sm:$0x1] %v47_v32 }

// kernel: _lambda_.33
= control target key start
LH: loop header
LB: loop body
LE: loop exit
PB: predicated region body
PF: predicated region fallthrough
CT: control target
= control target key end

     0   :  { %s2334_s18 = smov 0   ;;  %s2336_s19 = smov 0   ;;  %s2698_s0 = inlined_call_operand.vmem [shape: bf16[4,512,128], index: 0, kind: input, shape index: {}]   ;;  %s2699_s1 = inlined_call_operand.vmem [shape: bf16[4,128,128], index: 1, kind: input, shape index: {}]   ;;  %s2700_s2 = inlined_call_operand.vmem [shape: f32[1,128], index: 2, kind: input, shape index: {}]   ;;  %s2701_s3 = inlined_call_operand.vmem [shape: f32[1,128], index: 3, kind: input, shape index: {}]   ;;  %s2702_s4 = inlined_call_operand.vmem [shape: f32[1,128], index: 4, kind: input, shape index: {}]   ;;  %s2703_s5 = inlined_call_operand.vmem [shape: f32[4,512,128], index: 5, kind: output, shape index: {}]  }
   0x1   :  { %s2338_s20 = smov 0  }
   0x2 LB: > { %s41_s21 = sadd.s32 1, %s2298_s19  ;;  %p1802_p0 = scmp.ge.s32.totalorder %s2302_s20, 1  ;;  %s2302_s20 = sphi %s2338_s20, %s15_s20   ;;  %s2298_s19 = sphi %s2336_s19, %s2705_s19   ;;  %s2294_s18 = sphi %s2334_s18, %s2704_s18  }
   0x3   : > { %p43_p1 = scmp.ge.s32.totalorder %s41_s21, 4  ;;  %p275_p2 = scmp.lt.s32.totalorder %s2302_s20, 5 }
   0x5   : > { %s2707_s21 = smov (%p43_p1, %s41_s21), 0  ;;  %p276_p3 = pnand %p1802_p0, %p275_p2 }
   0x6   : > { %p339_p4 = scmp.lt.s32.totalorder (!%p276_p3), %s2294_s18, 3 }
   0x7   : > { %279 = sbr.rel (%p276_p3) target bundleno = 321 (0x141), region = 40 }
   0xc   : > { %s2709_s18 = smov (!%p339_p4, %s2294_s18), 3  ;;  %v2372_v3 = vld [vmem:[%s2700_s2] ss:$0 sm:$0xff] }
   0xd   : > { %s1823_s22 = sshll.u32 %s2709_s18, 6  ;;  %s1822_s26 = sshll.u32 %s2709_s18, 8  ;;  %v2383_v14 = vld [vmem:[%s2701_s3] ss:$0 sm:$0xff] }
   0xe   : > { %s2358_s25 = scalar_lea.vmem %s2699_s1, %s1823_s22  ;;  %s2367_s29 = scalar_lea.vmem %s2698_s0, %s1822_s26 }
   0xf   : > { %v2144_v0 = vld [vmem:[%s2358_s25 + $0x38] sm:$0xff]   ;;  %v2145_v1 = vld [vmem:[%s2358_s25 + $0x30] sm:$0xff]   ;;  %v2146_v2 = vld [vmem:[%s2358_s25 + $0x28] sm:$0xff]   ;;  %s1824_s11 = sshll.u32 %s2709_s18, 9 }
  0x10   : > { %2024 = vmatprep.subr.bf16.mxu0 %v2144_v0  ;;  %2104 = vmatprep.subr.bf16.mxu1 %v2144_v0  ;;  %v2147_v4 = vld [vmem:[%s2358_s25 + $0x20] sm:$0xff]   ;;  %v1953_v7 = vld [vmem:[%s2367_s29 + $0x8] sm:$0xff]   ;;  %v1954_v13 = vld [vmem:[%s2367_s29 + $0x10] sm:$0xff]   ;;  %s2573_s14 = scalar_lea.vmem %s2703_s5, %s1824_s11 }
  0x11   : > { %2025 = vmatpush3.bf16.msra.mxu0 %v2144_v0  ;;  %2112 = vmatpush3.bf16.msra.mxu1 %v2144_v0  ;;  %v1826_v5 = vld [vmem:[%s2367_s29] sm:$0xff]   ;;  %v1969_v12 = vld [vmem:[%s2367_s29 + $0x88] sm:$0xff]   ;;  %v1831_v15 = vunpack.c.l.bf16 %v1953_v7  ;;  %v1832_v16 = vunpack.c.h.bf16 %v1953_v7  ;;  %v1835_v22 = vunpack.c.l.bf16 %v1954_v13  ;;  %v2148_v23 = vld [vmem:[%s2358_s25 + $0x18] sm:$0xff]   ;;  %v1836_v27 = vunpack.c.h.bf16 %v1954_v13 }
  0x12   : > { %2026 = vmatprep.subr.bf16.mxu0 %v2145_v1  ;;  %2105 = vmatprep.subr.bf16.mxu1 %v2145_v1  ;;  %v1968_v6 = vld [vmem:[%s2367_s29 + $0x80] sm:$0xff]   ;;  %v1827_v8 = vunpack.c.l.bf16 %v1826_v5  ;;  %v1828_v9 = vunpack.c.h.bf16 %v1826_v5  ;;  %v1895_v17 = vunpack.c.l.bf16 %v1969_v12  ;;  %v1896_v18 = vunpack.c.h.bf16 %v1969_v12  ;;  %v1970_v40 = vld [vmem:[%s2367_s29 + $0x90] sm:$0xff]   ;;  %v1955_v46 = vld [vmem:[%s2367_s29 + $0x18] sm:$0xff]  }
  0x13   : > { %v1891_v10 = vunpack.c.l.bf16 %v1968_v6  ;;  %v1892_v11 = vunpack.c.h.bf16 %v1968_v6  ;;  %v592_v25 = vmul.f32 %v1831_v15, %v2372_v3  ;;  %v593_v26 = vmul.f32 %v1832_v16, %v2372_v3  ;;  %v2149_v41 = vld [vmem:[%s2358_s25 + $0x10] sm:$0xff]   ;;  %v1971_v50 = vld [vmem:[%s2367_s29 + $0x98] sm:$0xff]   ;;  %v2150_v59 = vld [vmem:[%s2358_s25 + $0x8] sm:$0xff]  }
  0x14   : > { %v590_v19 = vmul.f32 %v1827_v8, %v2372_v3  ;;  %v591_v20 = vmul.f32 %v1828_v9, %v2372_v3  ;;  %v624_v31 = vmul.f32 %v1895_v17, %v2372_v3  ;;  %v625_v35 = vmul.f32 %v1896_v18, %v2372_v3  ;;  %v1956_v0 = vld [vmem:[%s2367_s29 + $0x20] sm:$0xff]  }
  0x15   : > { %2027 = vmatpush3.bf16.msra.mxu0 %v2145_v1  ;;  %2113 = vmatpush3.bf16.msra.mxu1 %v2145_v1  ;;  %v622_v21 = vmul.f32 %v1891_v10, %v2372_v3  ;;  %v623_v24 = vmul.f32 %v1892_v11, %v2372_v3  ;;  %v663_v33 = vadd.f32 %v2383_v14, %v592_v25  ;;  %v1899_v54 = vunpack.c.l.bf16 %v1970_v40  ;;  %v1972_v15 = vld [vmem:[%s2367_s29 + $0xa0] sm:$0xff]   ;;  %v1957_v25 = vld [vmem:[%s2367_s29 + $0x28] sm:$0xff]  }
  0x16   : > { %2028 = vmatprep.subr.bf16.mxu0 %v2146_v2  ;;  %2106 = vmatprep.subr.bf16.mxu1 %v2146_v2  ;;  %v661_v28 = vadd.f32 %v2383_v14, %v590_v19  ;;  %v662_v29 = vadd.f32 %v2383_v14, %v591_v20  ;;  %v664_v34 = vadd.f32 %v2383_v14, %v593_v26  ;;  %v1900_v57 = vunpack.c.h.bf16 %v1970_v40  ;;  %v2151_v16 = vld [vmem:[%s2358_s25] sm:$0xff]  }
  0x17   : > { %v693_v30 = vadd.f32 %v2383_v14, %v622_v21  ;;  %v694_v32 = vadd.f32 %v2383_v14, %v623_v24  ;;  %v695_v39 = vadd.f32 %v2383_v14, %v624_v31  ;;  %v727_v43 = vmax.f32 %v663_v33, 0.0 }
  0x18   : > { %v725_v36 = vmax.f32 %v661_v28, 0.0  ;;  %v726_v37 = vmax.f32 %v662_v29, 0.0  ;;  %v728_v44 = vmax.f32 %v664_v34, 0.0  ;;  %v696_v45 = vadd.f32 %v2383_v14, %v625_v35  ;;  %v1973_v34 = vld [vmem:[%s2367_s29 + $0xa8] sm:$0xff]  }
  0x19   : > { %2029 = vmatpush3.bf16.msra.mxu0 %v2146_v2  ;;  %2114 = vmatpush3.bf16.msra.mxu1 %v2146_v2  ;;  %v757_v38 = vmax.f32 %v693_v30, 0.0  ;;  %v758_v42 = vmax.f32 %v694_v32, 0.0  ;;  %v594_v48 = vmul.f32 %v1835_v22, %v2372_v3  ;;  %v595_v49 = vmul.f32 %v1836_v27, %v2372_v3 }
  0x1a   : > { %2030 = vmatprep.subr.bf16.mxu0 %v2147_v4  ;;  %2107 = vmatprep.subr.bf16.mxu1 %v2147_v4  ;;  %v789_v47 = vpack.c.bf16 %v726_v37, %v725_v36  ;;  %v759_v52 = vmax.f32 %v695_v39, 0.0  ;;  %v760_v53 = vmax.f32 %v696_v45, 0.0  ;;  %v1839_v58 = vunpack.c.l.bf16 %v1955_v46 }
  0x1b   : > { %v805_v51 = vpack.c.bf16 %v758_v42, %v757_v38  ;;  %v665_v55 = vadd.f32 %v2383_v14, %v594_v48  ;;  %v666_v56 = vadd.f32 %v2383_v14, %v595_v49  ;;  %v2411_v60 = vpack.c.bf16 %v728_v44, %v727_v43  ;;  %v1958_v43 = vld [vmem:[%s2367_s29 + $0x30] sm:$0xff]  }
  0x1c   : > { %v626_v61 = vmul.f32 %v1899_v54, %v2372_v3  ;;  %v1840_v62 = vunpack.c.h.bf16 %v1955_v46  ;;  %v1903_v63 = vunpack.c.l.bf16 %v1971_v50  ;;  %2040 = vmatprep.mubr.bf16.mxu0 %v789_v47  ;;  %v596_v5 = vmul.f32 %v1839_v58, %v2372_v3 }
  0x1d   : > { %2031 = vmatpush3.bf16.msra.mxu0 %v2147_v4  ;;  %2115 = vmatpush3.bf16.msra.mxu1 %v2147_v4  ;;  %v729_v1 = vmax.f32 %v665_v55, 0.0  ;;  %v730_v2 = vmax.f32 %v666_v56, 0.0  ;;  %v627_v4 = vmul.f32 %v1900_v57, %v2372_v3  ;;  %v1904_v8 = vunpack.c.h.bf16 %v1971_v50  ;;  %v1974_v56 = vld [vmem:[%s2367_s29 + $0xb0] sm:$0xff]  }
  0x1e   : > { %2032 = vmatprep.subr.bf16.mxu0 %v2148_v23  ;;  %2108 = vmatprep.subr.bf16.mxu1 %v2148_v23  ;;  %v697_v6 = vadd.f32 %v2383_v14, %v626_v61  ;;  %v597_v7 = vmul.f32 %v1840_v62, %v2372_v3  ;;  %v628_v9 = vmul.f32 %v1903_v63, %v2372_v3  ;;  %v1843_v13 = vunpack.c.l.bf16 %v1956_v0 }
  0x1f   : > { %2072 = vmatprep.mubr.bf16.mxu1 %v805_v51  ;;  %v806_v10 = vpack.c.bf16 %v760_v53, %v759_v52  ;;  %v698_v11 = vadd.f32 %v2383_v14, %v627_v4  ;;  %v667_v12 = vadd.f32 %v2383_v14, %v596_v5  ;;  %v629_v19 = vmul.f32 %v1904_v8, %v2372_v3 }
  0x20   : > { %v761_v17 = vmax.f32 %v697_v6, 0.0  ;;  %v668_v18 = vadd.f32 %v2383_v14, %v597_v7  ;;  %v699_v20 = vadd.f32 %v2383_v14, %v628_v9  ;;  %v598_v24 = vmul.f32 %v1843_v13, %v2372_v3 }
  0x21   : > { %2033 = vmatpush3.bf16.msra.mxu0 %v2148_v23  ;;  %2116 = vmatpush3.bf16.msra.mxu1 %v2148_v23  ;;  %v762_v21 = vmax.f32 %v698_v11, 0.0  ;;  %v731_v22 = vmax.f32 %v667_v12, 0.0  ;;  %v1844_v23 = vunpack.c.h.bf16 %v1956_v0  ;;  %v791_v26 = vpack.c.bf16 %v730_v2, %v729_v1  ;;  %v1959_v2 = vld [vmem:[%s2367_s29 + $0x38] sm:$0xff]  }
  0x22   : > { %2034 = vmatprep.subr.bf16.mxu0 %v2149_v41  ;;  %2109 = vmatprep.subr.bf16.mxu1 %v2149_v41  ;;  %v732_v27 = vmax.f32 %v668_v18, 0.0  ;;  %v700_v28 = vadd.f32 %v2383_v14, %v629_v19  ;;  %v1907_v29 = vunpack.c.l.bf16 %v1972_v15  ;;  %v763_v30 = vmax.f32 %v699_v20, 0.0  ;;  %v1975_v11 = vld [vmem:[%s2367_s29 + $0xb8] sm:$0xff]  }
  0x23   : > { %v599_v31 = vmul.f32 %v1844_v23, %v2372_v3  ;;  %v669_v32 = vadd.f32 %v2383_v14, %v598_v24  ;;  %v1908_v33 = vunpack.c.h.bf16 %v1972_v15  ;;  %v807_v35 = vpack.c.bf16 %v762_v21, %v761_v17  ;;  %v1960_v21 = vld [vmem:[%s2367_s29 + $0x40] sm:$0xff]  }
  0x24   : > { %v2433_v36 = vpack.c.bf16 %v732_v27, %v731_v22  ;;  %v630_v37 = vmul.f32 %v1907_v29, %v2372_v3  ;;  %v1847_v38 = vunpack.c.l.bf16 %v1957_v25  ;;  %v764_v39 = vmax.f32 %v700_v28, 0.0 }
  0x25   : > { %2035 = vmatpush3.bf16.msra.mxu0 %v2149_v41  ;;  %2117 = vmatpush3.bf16.msra.mxu1 %v2149_v41  ;;  %v670_v40 = vadd.f32 %v2383_v14, %v599_v31  ;;  %v631_v41 = vmul.f32 %v1908_v33, %v2372_v3  ;;  %v1848_v42 = vunpack.c.h.bf16 %v1957_v25  ;;  %v733_v44 = vmax.f32 %v669_v32, 0.0 }
  0x26   : > { %2036 = vmatprep.subr.bf16.mxu0 %v2150_v59  ;;  %2110 = vmatprep.subr.bf16.mxu1 %v2150_v59  ;;  %v701_v45 = vadd.f32 %v2383_v14, %v630_v37  ;;  %v600_v46 = vmul.f32 %v1847_v38, %v2372_v3  ;;  %v1911_v47 = vunpack.c.l.bf16 %v1973_v34  ;;  %v1912_v51 = vunpack.c.h.bf16 %v1973_v34  ;;  %v1976_v34 = vld [vmem:[%s2367_s29 + $0xc0] sm:$0xff]  }
  0x27   : > { %v734_v48 = vmax.f32 %v670_v40, 0.0  ;;  %v702_v49 = vadd.f32 %v2383_v14, %v631_v41  ;;  %v601_v50 = vmul.f32 %v1848_v42, %v2372_v3  ;;  %v1851_v55 = vunpack.c.l.bf16 %v1958_v43 }
  0x28   : > { %v765_v52 = vmax.f32 %v701_v45, 0.0  ;;  %v671_v53 = vadd.f32 %v2383_v14, %v600_v46  ;;  %v632_v54 = vmul.f32 %v1911_v47, %v2372_v3  ;;  %v808_v57 = vpack.c.bf16 %v764_v39, %v763_v30 }
  0x29   : > { %2037 = vmatpush3.bf16.msra.mxu0 %v2150_v59  ;;  %2118 = vmatpush3.bf16.msra.mxu1 %v2150_v59  ;;  %v766_v58 = vmax.f32 %v702_v49, 0.0  ;;  %v672_v59 = vadd.f32 %v2383_v14, %v601_v50  ;;  %v633_v61 = vmul.f32 %v1912_v51, %v2372_v3  ;;  %v1852_v0 = vunpack.c.h.bf16 %v1958_v43 }
  0x2a   : > { %2038 = vmatprep.subr.bf16.mxu0 %v2151_v16  ;;  %2111 = vmatprep.subr.bf16.mxu1 %v2151_v16  ;;  %v735_v62 = vmax.f32 %v671_v53, 0.0  ;;  %v703_v63 = vadd.f32 %v2383_v14, %v632_v54  ;;  %v602_v1 = vmul.f32 %v1851_v55, %v2372_v3  ;;  %v793_v4 = vpack.c.bf16 %v734_v48, %v733_v44  ;;  %v1961_v44 = vld [vmem:[%s2367_s29 + $0x48] sm:$0xff]  }
  0x2b   : > { %v736_v5 = vmax.f32 %v672_v59, 0.0  ;;  %v704_v6 = vadd.f32 %v2383_v14, %v633_v61  ;;  %v1915_v7 = vunpack.c.l.bf16 %v1974_v56  ;;  %v809_v8 = vpack.c.bf16 %v766_v58, %v765_v52  ;;  %v1977_v52 = vld [vmem:[%s2367_s29 + $0xc8] sm:$0xff]  }
  0x2c   : > { %v673_v9 = vadd.f32 %v2383_v14, %v602_v1  ;;  %v767_v13 = vmax.f32 %v703_v63, 0.0  ;;  %v1856_v20 = vunpack.c.h.bf16 %v1959_v2  ;;  %v1919_v25 = vunpack.c.l.bf16 %v1975_v11 }
  0x2d   : > { %2039 = vmatpush3.bf16.msra.mxu0 %v2151_v16  ;;  %2119 = vmatpush3.bf16.msra.mxu1 %v2151_v16  ;;  %v794_v12 = vpack.c.bf16 %v736_v5, %v735_v62  ;;  %v634_v15 = vmul.f32 %v1915_v7, %v2372_v3  ;;  %v1855_v16 = vunpack.c.l.bf16 %v1959_v2  ;;  %v768_v17 = vmax.f32 %v704_v6, 0.0  ;;  %v1962_v62 = vld [vmem:[%s2367_s29 + $0x50] sm:$0xff]  }
  0x2e   : > { %v737_v22 = vmax.f32 %v673_v9, 0.0  ;;  %v605_v28 = vmul.f32 %v1856_v20, %v2372_v3  ;;  %v1920_v29 = vunpack.c.h.bf16 %v1975_v11  ;;  %v636_v32 = vmul.f32 %v1919_v25, %v2372_v3  ;;  %v1978_v11 = vld [vmem:[%s2367_s29 + $0xd0] sm:$0xff]  }
  0x2f   : > { %v705_v23 = vadd.f32 %v2383_v14, %v634_v15  ;;  %v604_v24 = vmul.f32 %v1855_v16, %v2372_v3  ;;  %v1859_v33 = vunpack.c.l.bf16 %v1960_v21  ;;  %v1860_v42 = vunpack.c.h.bf16 %v1960_v21  ;;  %v1963_v21 = vld [vmem:[%s2367_s29 + $0x58] sm:$0xff]  }
  0x30   : > { %2041 = vmatmul.mubr.bf16.vlgmr.msra.gmra.mxu0 %v2411_v60  ;;  %2073 = vmatmul.mubr.bf16.vlgmr.msra.gmra.mxu1 %v806_v10  ;;  %v603_v60 = vmul.f32 %v1852_v0, %v2372_v3  ;;  %v1916_v10 = vunpack.c.h.bf16 %v1974_v56  ;;  %v676_v38 = vadd.f32 %v2383_v14, %v605_v28  ;;  %v637_v39 = vmul.f32 %v1920_v29, %v2372_v3 }
  0x31   : > { %2044 = vmatprep.mubr.bf16.mxu0 %v791_v26  ;;  %2076 = vmatprep.mubr.bf16.mxu1 %v807_v35  ;;  %v769_v30 = vmax.f32 %v705_v23, 0.0  ;;  %v675_v31 = vadd.f32 %v2383_v14, %v604_v24  ;;  %v810_v35 = vpack.c.bf16 %v768_v17, %v767_v13  ;;  %v707_v41 = vadd.f32 %v2383_v14, %v636_v32 }
  0x32   : > { %v674_v18 = vadd.f32 %v2383_v14, %v603_v60  ;;  %v635_v19 = vmul.f32 %v1916_v10, %v2372_v3  ;;  %v606_v43 = vmul.f32 %v1859_v33, %v2372_v3  ;;  %v740_v46 = vmax.f32 %v676_v38, 0.0 }
  0x33   : > { %v739_v40 = vmax.f32 %v675_v31, 0.0  ;;  %v1923_v47 = vunpack.c.l.bf16 %v1976_v34  ;;  %v607_v49 = vmul.f32 %v1860_v42, %v2372_v3  ;;  %v1924_v51 = vunpack.c.h.bf16 %v1976_v34 }
  0x34   : > { %v738_v26 = vmax.f32 %v674_v18, 0.0  ;;  %v706_v27 = vadd.f32 %v2383_v14, %v635_v19  ;;  %v677_v50 = vadd.f32 %v2383_v14, %v606_v43  ;;  %v771_v54 = vmax.f32 %v707_v41, 0.0 }
  0x35   : > { %v796_v53 = vpack.c.bf16 %v740_v46, %v739_v40  ;;  %v638_v55 = vmul.f32 %v1923_v47, %v2372_v3  ;;  %v1863_v56 = vunpack.c.l.bf16 %v1961_v44  ;;  %v678_v58 = vadd.f32 %v2383_v14, %v607_v49  ;;  %v1964_v40 = vld [vmem:[%s2367_s29 + $0x60] sm:$0xff]  }
  0x36   : > { %v770_v37 = vmax.f32 %v706_v27, 0.0  ;;  %v795_v45 = vpack.c.bf16 %v738_v26, %v737_v22  ;;  %v639_v59 = vmul.f32 %v1924_v51, %v2372_v3  ;;  %v1864_v61 = vunpack.c.h.bf16 %v1961_v44 }
  0x37   : > { %v741_v63 = vmax.f32 %v677_v50, 0.0  ;;  %v709_v0 = vadd.f32 %v2383_v14, %v638_v55  ;;  %v608_v1 = vmul.f32 %v1863_v56, %v2372_v3  ;;  %v1927_v2 = vunpack.c.l.bf16 %v1977_v52 }
  0x38   : > { %2045 = vmatmul.mubr.bf16.gmra.mxu0 %v2433_v36  ;;  %2077 = vmatmul.mubr.bf16.gmra.mxu1 %v808_v57  ;;  %v708_v36 = vadd.f32 %v2383_v14, %v637_v39  ;;  %v811_v48 = vpack.c.bf16 %v770_v37, %v769_v30  ;;  %v710_v5 = vadd.f32 %v2383_v14, %v639_v59  ;;  %v1928_v7 = vunpack.c.h.bf16 %v1977_v52  ;;  %v1979_v30 = vld [vmem:[%s2367_s29 + $0xd8] sm:$0xff]   ;;  %v1980_v52 = vld [vmem:[%s2367_s29 + $0xe0] sm:$0xff]  }
  0x39   : > { %2048 = vmatprep.mubr.bf16.mxu0 %v793_v4  ;;  %2080 = vmatprep.mubr.bf16.mxu1 %v809_v8  ;;  %v742_v4 = vmax.f32 %v678_v58, 0.0  ;;  %v609_v6 = vmul.f32 %v1864_v61, %v2372_v3  ;;  %v773_v8 = vmax.f32 %v709_v0, 0.0  ;;  %v679_v60 = vadd.f32 %v2383_v14, %v608_v1 }
  0x3a   : > { %v772_v57 = vmax.f32 %v708_v36, 0.0  ;;  %v640_v9 = vmul.f32 %v1927_v2, %v2372_v3  ;;  %v1867_v10 = vunpack.c.l.bf16 %v1962_v62  ;;  %v774_v15 = vmax.f32 %v710_v5, 0.0 }
  0x3b   : > { %v680_v16 = vadd.f32 %v2383_v14, %v609_v6  ;;  %v641_v17 = vmul.f32 %v1928_v7, %v2372_v3  ;;  %v743_v18 = vmax.f32 %v679_v60, 0.0  ;;  %v1868_v19 = vunpack.c.h.bf16 %v1962_v62  ;;  %v1965_v62 = vld [vmem:[%s2367_s29 + $0x68] sm:$0xff]  }
  0x3c   : > { %v812_v13 = vpack.c.bf16 %v772_v57, %v771_v54  ;;  %v610_v20 = vmul.f32 %v1867_v10, %v2372_v3  ;;  %v797_v22 = vpack.c.bf16 %v742_v4, %v741_v63  ;;  %v1931_v25 = vunpack.c.l.bf16 %v1978_v11 }
  0x3d   : > { %v744_v23 = vmax.f32 %v680_v16, 0.0  ;;  %v712_v24 = vadd.f32 %v2383_v14, %v641_v17  ;;  %v813_v26 = vpack.c.bf16 %v774_v15, %v773_v8  ;;  %v611_v27 = vmul.f32 %v1868_v19, %v2372_v3  ;;  %v1981_v8 = vld [vmem:[%s2367_s29 + $0xe8] sm:$0xff]  }
  0x3e   : > { %v681_v28 = vadd.f32 %v2383_v14, %v610_v20  ;;  %v1932_v29 = vunpack.c.h.bf16 %v1978_v11  ;;  %v642_v33 = vmul.f32 %v1931_v25, %v2372_v3  ;;  %v1871_v34 = vunpack.c.l.bf16 %v1963_v21 }
  0x3f   : > { %v798_v31 = vpack.c.bf16 %v744_v23, %v743_v18  ;;  %v682_v37 = vadd.f32 %v2383_v14, %v611_v27  ;;  %v1872_v39 = vunpack.c.h.bf16 %v1963_v21  ;;  %v1935_v44 = vunpack.c.l.bf16 %v1979_v30  ;;  %v1966_v18 = vld [vmem:[%s2367_s29 + $0x70] sm:$0xff]  }
  0x40   : > { %2049 = vmatmul.mubr.bf16.gmra.mxu0 %v794_v12  ;;  %2081 = vmatmul.mubr.bf16.gmra.mxu1 %v810_v35  ;;  %v711_v12 = vadd.f32 %v2383_v14, %v640_v9  ;;  %v776_v35 = vmax.f32 %v712_v24, 0.0  ;;  %v643_v38 = vmul.f32 %v1932_v29, %v2372_v3  ;;  %v745_v41 = vmax.f32 %v681_v28, 0.0 }
  0x41   : > { %2052 = vmatprep.mubr.bf16.mxu0 %v795_v45  ;;  %2084 = vmatprep.mubr.bf16.mxu1 %v811_v48  ;;  %v713_v42 = vadd.f32 %v2383_v14, %v642_v33  ;;  %v612_v43 = vmul.f32 %v1871_v34, %v2372_v3  ;;  %v746_v45 = vmax.f32 %v682_v37, 0.0  ;;  %v613_v36 = vmul.f32 %v1872_v39, %v2372_v3 }
  0x42   : > { %v775_v32 = vmax.f32 %v711_v12, 0.0  ;;  %v714_v46 = vadd.f32 %v2383_v14, %v643_v38  ;;  %v1936_v47 = vunpack.c.h.bf16 %v1979_v30  ;;  %v644_v50 = vmul.f32 %v1935_v44, %v2372_v3  ;;  %v1982_v30 = vld [vmem:[%s2367_s29 + $0xf0] sm:$0xff]  }
  0x43   : > { %v777_v48 = vmax.f32 %v713_v42, 0.0  ;;  %v683_v49 = vadd.f32 %v2383_v14, %v612_v43  ;;  %v1875_v51 = vunpack.c.l.bf16 %v1964_v40  ;;  %v1876_v59 = vunpack.c.h.bf16 %v1964_v40  ;;  %v1967_v40 = vld [vmem:[%s2367_s29 + $0x78] sm:$0xff]  }
  0x44   : > { %v814_v54 = vpack.c.bf16 %v776_v35, %v775_v32  ;;  %v778_v55 = vmax.f32 %v714_v46, 0.0  ;;  %v645_v56 = vmul.f32 %v1936_v47, %v2372_v3  ;;  %v715_v58 = vadd.f32 %v2383_v14, %v644_v50 }
  0x45   : > { %v747_v57 = vmax.f32 %v683_v49, 0.0  ;;  %v614_v61 = vmul.f32 %v1875_v51, %v2372_v3  ;;  %v799_v63 = vpack.c.bf16 %v746_v45, %v745_v41  ;;  %v1939_v2 = vunpack.c.l.bf16 %v1980_v52 }
  0x46   : > { %v716_v1 = vadd.f32 %v2383_v14, %v645_v56  ;;  %v815_v4 = vpack.c.bf16 %v778_v55, %v777_v48  ;;  %v615_v5 = vmul.f32 %v1876_v59, %v2372_v3  ;;  %v1940_v7 = vunpack.c.h.bf16 %v1980_v52  ;;  %v1983_v48 = vld [vmem:[%s2367_s29 + $0xf8] sm:$0xff]  }
  0x47   : > { %v685_v6 = vadd.f32 %v2383_v14, %v614_v61  ;;  %v779_v9 = vmax.f32 %v715_v58, 0.0  ;;  %v646_v10 = vmul.f32 %v1939_v2, %v2372_v3  ;;  %v1879_v11 = vunpack.c.l.bf16 %v1965_v62 }
  0x48   : > { %2053 = vmatmul.mubr.bf16.gmra.mxu0 %v796_v53  ;;  %2085 = vmatmul.mubr.bf16.gmra.mxu1 %v812_v13  ;;  %v684_v53 = vadd.f32 %v2383_v14, %v613_v36  ;;  %v780_v13 = vmax.f32 %v716_v1, 0.0  ;;  %v686_v15 = vadd.f32 %v2383_v14, %v615_v5  ;;  %v647_v16 = vmul.f32 %v1940_v7, %v2372_v3 }
  0x49   : > { %2056 = vmatprep.mubr.bf16.mxu0 %v797_v22  ;;  %2088 = vmatprep.mubr.bf16.mxu1 %v813_v26  ;;  %v1880_v17 = vunpack.c.h.bf16 %v1965_v62  ;;  %v749_v12 = vmax.f32 %v685_v6, 0.0  ;;  %v717_v19 = vadd.f32 %v2383_v14, %v646_v10  ;;  %v616_v20 = vmul.f32 %v1879_v11, %v2372_v3 }
  0x4a   : > { %v748_v0 = vmax.f32 %v684_v53, 0.0  ;;  %v1943_v21 = vunpack.c.l.bf16 %v1981_v8  ;;  %v750_v22 = vmax.f32 %v686_v15, 0.0  ;;  %v718_v23 = vadd.f32 %v2383_v14, %v647_v16 }
  0x4b   : > { %v617_v24 = vmul.f32 %v1880_v17, %v2372_v3  ;;  %v1944_v25 = vunpack.c.h.bf16 %v1981_v8  ;;  %v781_v26 = vmax.f32 %v717_v19, 0.0  ;;  %v687_v27 = vadd.f32 %v2383_v14, %v616_v20 }
  0x4c   : > { %v800_v60 = vpack.c.bf16 %v748_v0, %v747_v57  ;;  %v648_v28 = vmul.f32 %v1943_v21, %v2372_v3  ;;  %v1883_v29 = vunpack.c.l.bf16 %v1966_v18  ;;  %v782_v32 = vmax.f32 %v718_v23, 0.0 }
  0x4d   : > { %v688_v33 = vadd.f32 %v2383_v14, %v617_v24  ;;  %v649_v34 = vmul.f32 %v1944_v25, %v2372_v3  ;;  %v801_v35 = vpack.c.bf16 %v750_v22, %v749_v12  ;;  %v1884_v38 = vunpack.c.h.bf16 %v1966_v18 }
  0x4e   : > { %v719_v37 = vadd.f32 %v2383_v14, %v648_v28  ;;  %v618_v39 = vmul.f32 %v1883_v29, %v2372_v3  ;;  %v817_v41 = vpack.c.bf16 %v782_v32, %v781_v26  ;;  %v751_v42 = vmax.f32 %v687_v27, 0.0 }
  0x4f   : > { %v720_v43 = vadd.f32 %v2383_v14, %v649_v34  ;;  %v1947_v44 = vunpack.c.l.bf16 %v1982_v30  ;;  %v752_v45 = vmax.f32 %v688_v33, 0.0  ;;  %v619_v46 = vmul.f32 %v1884_v38, %v2372_v3 }
  0x50   : > { %2057 = vmatmul.mubr.bf16.gmra.mxu0 %v798_v31  ;;  %2089 = vmatmul.mubr.bf16.gmra.mxu1 %v814_v54  ;;  %v816_v31 = vpack.c.bf16 %v780_v13, %v779_v9  ;;  %v689_v36 = vadd.f32 %v2383_v14, %v618_v39  ;;  %v1948_v47 = vunpack.c.h.bf16 %v1982_v30  ;;  %v783_v49 = vmax.f32 %v719_v37, 0.0 }
  0x51   : > { %2060 = vmatprep.mubr.bf16.mxu0 %v799_v63  ;;  %2092 = vmatprep.mubr.bf16.mxu1 %v815_v4  ;;  %v784_v50 = vmax.f32 %v720_v43, 0.0  ;;  %v650_v51 = vmul.f32 %v1947_v44, %v2372_v3  ;;  %v1887_v52 = vunpack.c.l.bf16 %v1967_v40  ;;  %v690_v54 = vadd.f32 %v2383_v14, %v619_v46 }
  0x52   : > { %v651_v55 = vmul.f32 %v1948_v47, %v2372_v3  ;;  %v1888_v53 = vunpack.c.h.bf16 %v1967_v40  ;;  %v753_v56 = vmax.f32 %v689_v36, 0.0  ;;  %v1951_v59 = vunpack.c.l.bf16 %v1983_v48 }
  0x53   : > { %v721_v57 = vadd.f32 %v2383_v14, %v650_v51  ;;  %v620_v58 = vmul.f32 %v1887_v52, %v2372_v3  ;;  %v754_v61 = vmax.f32 %v690_v54, 0.0  ;;  %v1952_v0 = vunpack.c.h.bf16 %v1983_v48 }
  0x54   : > { %v722_v62 = vadd.f32 %v2383_v14, %v651_v55  ;;  %v621_v63 = vmul.f32 %v1888_v53, %v2372_v3  ;;  %v802_v1 = vpack.c.bf16 %v752_v45, %v751_v42  ;;  %v818_v2 = vpack.c.bf16 %v784_v50, %v783_v49 }
  0x55   : > { %v785_v4 = vmax.f32 %v721_v57, 0.0  ;;  %v652_v5 = vmul.f32 %v1951_v59, %v2372_v3  ;;  %v691_v7 = vadd.f32 %v2383_v14, %v620_v58  ;;  %v803_v9 = vpack.c.bf16 %v754_v61, %v753_v56 }
  0x56   : > { %v786_v6 = vmax.f32 %v722_v62, 0.0  ;;  %v692_v8 = vadd.f32 %v2383_v14, %v621_v63 }
  0x57   : > { %v723_v10 = vadd.f32 %v2383_v14, %v652_v5  ;;  %v755_v15 = vmax.f32 %v691_v7, 0.0 }
  0x58   : > { %2061 = vmatmul.mubr.bf16.gmra.mxu0 %v800_v60  ;;  %2093 = vmatmul.mubr.bf16.gmra.mxu1 %v816_v31  ;;  %v653_v60 = vmul.f32 %v1952_v0, %v2372_v3  ;;  %v819_v11 = vpack.c.bf16 %v786_v6, %v785_v4  ;;  %v756_v16 = vmax.f32 %v692_v8, 0.0  ;;  %v2553_v3 = vld [vmem:[%s2702_s4] ss:$0 sm:$0xff] }
  0x59   : > { %2064 = vmatprep.mubr.bf16.mxu0 %v801_v35  ;;  %2096 = vmatprep.mubr.bf16.mxu1 %v817_v41  ;;  %v787_v17 = vmax.f32 %v723_v10, 0.0 }
  0x5a   : > { %v724_v13 = vadd.f32 %v2383_v14, %v653_v60  ;;  %v804_v12 = vpack.c.bf16 %v756_v16, %v755_v15 }
  0x5c   : > { %v788_v18 = vmax.f32 %v724_v13, 0.0 }
  0x5e   : > { %v820_v19 = vpack.c.bf16 %v788_v18, %v787_v17 }
  0x60   : > { %2065 = vmatmul.mubr.bf16.gmra.mxu0 %v802_v1  ;;  %2097 = vmatmul.mubr.bf16.gmra.mxu1 %v818_v2 }
  0x61   : > { %2068 = vmatprep.mubr.bf16.mxu0 %v803_v9  ;;  %2100 = vmatprep.mubr.bf16.mxu1 %v819_v11 }
  0x68   : > { %2069 = vmatmul.mubr.bf16.gmra.mxu0 %v804_v12  ;;  %2101 = vmatmul.mubr.bf16.gmra.mxu1 %v820_v19 }
  0xf0   : > { %v2042_v20 = vpop.f32.mrf.mxu0  ;;  %v2074_v21 = vpop.f32.mrf.mxu1 }
  0xf1   : > { %v1442_v14 = vadd.f32 %v2042_v20, %v2553_v3  ;;  %v1474_v22 = vadd.f32 %v2074_v21, %v2553_v3 }
  0xf2   : > { %v983_v23 = vpop.f32.mrf.mxu0  ;;  %v1111_v24 = vpop.f32.mrf.mxu1 }
  0xf3   : > { %2152 = vtanh.f32 %v1442_v14  ;;  %v1440_v25 = vadd.f32 %v2553_v3, %v983_v23  ;;  %v1472_v26 = vadd.f32 %v2553_v3, %v1111_v24 }
  0xf4   : > { %2154 = vtanh.f32 %v1474_v22  ;;  %v2043_v27 = vpop.f32.mrf.mxu0  ;;  %v2075_v28 = vpop.f32.mrf.mxu1 }
  0xf5   : > { %2156 = vtanh.f32 %v1440_v25  ;;  %v1443_v29 = vadd.f32 %v2043_v27, %v2553_v3  ;;  %v1475_v30 = vadd.f32 %v2075_v28, %v2553_v3 }
  0xf6   : > { %2158 = vtanh.f32 %v1472_v26  ;;  %v986_v31 = vpop.f32.mrf.mxu0  ;;  %v1114_v32 = vpop.f32.mrf.mxu1 }
  0xf7   : > { %2160 = vtanh.f32 %v1443_v29  ;;  %v1441_v33 = vadd.f32 %v2553_v3, %v986_v31  ;;  %v1473_v34 = vadd.f32 %v2553_v3, %v1114_v32 }
  0xf8   : > { %2162 = vtanh.f32 %v1475_v30  ;;  %v2046_v35 = vpop.f32.mrf.mxu0  ;;  %v2078_v37 = vpop.f32.mrf.mxu1 }
  0xf9   : > { %2164 = vtanh.f32 %v1441_v33  ;;  %v1446_v38 = vadd.f32 %v2046_v35, %v2553_v3  ;;  %v1478_v39 = vadd.f32 %v2078_v37, %v2553_v3 }
  0xfa   : > { %2166 = vtanh.f32 %v1473_v34  ;;  %v999_v40 = vpop.f32.mrf.mxu0  ;;  %v1127_v41 = vpop.f32.mrf.mxu1 }
  0xfb   : > { %2168 = vtanh.f32 %v1446_v38  ;;  %v1444_v42 = vadd.f32 %v2553_v3, %v999_v40  ;;  %v1476_v43 = vadd.f32 %v2553_v3, %v1127_v41 }
  0xfc   : > { %2170 = vtanh.f32 %v1478_v39  ;;  %v2047_v44 = vpop.f32.mrf.mxu0  ;;  %v2079_v45 = vpop.f32.mrf.mxu1 }
  0xfd   : > { %2172 = vtanh.f32 %v1444_v42  ;;  %v1447_v46 = vadd.f32 %v2047_v44, %v2553_v3  ;;  %v1479_v36 = vadd.f32 %v2079_v45, %v2553_v3 }
  0xfe   : > { %2174 = vtanh.f32 %v1476_v43  ;;  %v1002_v47 = vpop.f32.mrf.mxu0  ;;  %v1130_v48 = vpop.f32.mrf.mxu1 }
  0xff   : > { %2176 = vtanh.f32 %v1447_v46  ;;  %v1445_v49 = vadd.f32 %v2553_v3, %v1002_v47  ;;  %v1477_v50 = vadd.f32 %v2553_v3, %v1130_v48 }
 0x100   : > { %v2153_v51 = vpop.eup %2152  ;;  %2178 = vtanh.f32 %v1479_v36  ;;  %v2050_v52 = vpop.f32.mrf.mxu0 }
 0x101   : > { %v2082_v54 = vpop.f32.mrf.mxu1  ;;  %v2155_v55 = vpop.eup %2154  ;;  %1570 = vst [vmem:[%s2573_s14 + $0x10] sm:$0xff] %v2153_v51  ;;  %2180 = vtanh.f32 %v1445_v49  ;;  %v1450_v53 = vadd.f32 %v2050_v52, %v2553_v3 }
 0x102   : > { %v1482_v56 = vadd.f32 %v2082_v54, %v2553_v3  ;;  %v2157_v57 = vpop.eup %2156  ;;  %1602 = vst [vmem:[%s2573_s14 + $0x110] sm:$0xff] %v2155_v55  ;;  %2182 = vtanh.f32 %v1477_v50  ;;  %v1015_v58 = vpop.f32.mrf.mxu0 }
 0x103   : > { %v1143_v59 = vpop.f32.mrf.mxu1  ;;  %v2159_v61 = vpop.eup %2158  ;;  %1568 = vst [vmem:[%s2573_s14] sm:$0xff] %v2157_v57  ;;  %2184 = vtanh.f32 %v1450_v53  ;;  %v1448_v62 = vadd.f32 %v2553_v3, %v1015_v58 }
 0x104   : > { %v1480_v63 = vadd.f32 %v2553_v3, %v1143_v59  ;;  %v2161_v0 = vpop.eup %2160  ;;  %1600 = vst [vmem:[%s2573_s14 + $0x100] sm:$0xff] %v2159_v61  ;;  %2186 = vtanh.f32 %v1482_v56  ;;  %v2051_v1 = vpop.f32.mrf.mxu0 }
 0x105   : > { %v2083_v2 = vpop.f32.mrf.mxu1  ;;  %v2163_v4 = vpop.eup %2162  ;;  %1571 = vst [vmem:[%s2573_s14 + $0x18] sm:$0xff] %v2161_v0  ;;  %2188 = vtanh.f32 %v1448_v62  ;;  %v1451_v5 = vadd.f32 %v2051_v1, %v2553_v3 }
 0x106   : > { %v1483_v6 = vadd.f32 %v2083_v2, %v2553_v3  ;;  %v2165_v7 = vpop.eup %2164  ;;  %1603 = vst [vmem:[%s2573_s14 + $0x118] sm:$0xff] %v2163_v4  ;;  %2190 = vtanh.f32 %v1480_v63  ;;  %v1018_v8 = vpop.f32.mrf.mxu0 }
 0x107   : > { %v1146_v60 = vpop.f32.mrf.mxu1  ;;  %v2167_v9 = vpop.eup %2166  ;;  %1569 = vst [vmem:[%s2573_s14 + $0x8] sm:$0xff] %v2165_v7  ;;  %2192 = vtanh.f32 %v1451_v5  ;;  %v1449_v10 = vadd.f32 %v2553_v3, %v1018_v8 }
 0x108   : > { %v1481_v11 = vadd.f32 %v2553_v3, %v1146_v60  ;;  %v2169_v13 = vpop.eup %2168  ;;  %1601 = vst [vmem:[%s2573_s14 + $0x108] sm:$0xff] %v2167_v9  ;;  %2194 = vtanh.f32 %v1483_v6  ;;  %v2054_v15 = vpop.f32.mrf.mxu0 }
 0x109   : > { %v2086_v16 = vpop.f32.mrf.mxu1  ;;  %v2171_v17 = vpop.eup %2170  ;;  %1574 = vst [vmem:[%s2573_s14 + $0x30] sm:$0xff] %v2169_v13  ;;  %2196 = vtanh.f32 %v1449_v10  ;;  %v1454_v18 = vadd.f32 %v2054_v15, %v2553_v3 }
 0x10a   : > { %v1486_v12 = vadd.f32 %v2086_v16, %v2553_v3  ;;  %v2173_v19 = vpop.eup %2172  ;;  %1606 = vst [vmem:[%s2573_s14 + $0x130] sm:$0xff] %v2171_v17  ;;  %2198 = vtanh.f32 %v1481_v11  ;;  %v1031_v20 = vpop.f32.mrf.mxu0 }
 0x10b   : > { %v1159_v21 = vpop.f32.mrf.mxu1  ;;  %v2175_v14 = vpop.eup %2174  ;;  %1572 = vst [vmem:[%s2573_s14 + $0x20] sm:$0xff] %v2173_v19  ;;  %2200 = vtanh.f32 %v1454_v18  ;;  %v1452_v22 = vadd.f32 %v2553_v3, %v1031_v20 }
 0x10c   : > { %v1484_v23 = vadd.f32 %v2553_v3, %v1159_v21  ;;  %v2177_v24 = vpop.eup %2176  ;;  %1604 = vst [vmem:[%s2573_s14 + $0x120] sm:$0xff] %v2175_v14  ;;  %2202 = vtanh.f32 %v1486_v12  ;;  %v2055_v25 = vpop.f32.mrf.mxu0 }
 0x10d   : > { %v2087_v26 = vpop.f32.mrf.mxu1  ;;  %v2179_v27 = vpop.eup %2178  ;;  %1575 = vst [vmem:[%s2573_s14 + $0x38] sm:$0xff] %v2177_v24  ;;  %2204 = vtanh.f32 %v1452_v22  ;;  %v1455_v28 = vadd.f32 %v2055_v25, %v2553_v3 }
 0x10e   : > { %v1487_v29 = vadd.f32 %v2087_v26, %v2553_v3  ;;  %v2181_v30 = vpop.eup %2180  ;;  %1607 = vst [vmem:[%s2573_s14 + $0x138] sm:$0xff] %v2179_v27  ;;  %2206 = vtanh.f32 %v1484_v23  ;;  %v1034_v31 = vpop.f32.mrf.mxu0 }
 0x10f   : > { %v1162_v32 = vpop.f32.mrf.mxu1  ;;  %v2183_v33 = vpop.eup %2182  ;;  %1573 = vst [vmem:[%s2573_s14 + $0x28] sm:$0xff] %v2181_v30  ;;  %2208 = vtanh.f32 %v1455_v28  ;;  %v1453_v34 = vadd.f32 %v2553_v3, %v1034_v31 }
 0x110   : > { %v1485_v35 = vadd.f32 %v2553_v3, %v1162_v32  ;;  %v2185_v37 = vpop.eup %2184  ;;  %1605 = vst [vmem:[%s2573_s14 + $0x128] sm:$0xff] %v2183_v33  ;;  %2210 = vtanh.f32 %v1487_v29  ;;  %v2058_v38 = vpop.f32.mrf.mxu0 }
 0x111   : > { %v2090_v39 = vpop.f32.mrf.mxu1  ;;  %v2187_v40 = vpop.eup %2186  ;;  %1578 = vst [vmem:[%s2573_s14 + $0x50] sm:$0xff] %v2185_v37  ;;  %2212 = vtanh.f32 %v1453_v34  ;;  %v1458_v41 = vadd.f32 %v2058_v38, %v2553_v3 }
 0x112   : > { %v1490_v42 = vadd.f32 %v2090_v39, %v2553_v3  ;;  %v2189_v43 = vpop.eup %2188  ;;  %1610 = vst [vmem:[%s2573_s14 + $0x150] sm:$0xff] %v2187_v40  ;;  %2214 = vtanh.f32 %v1485_v35  ;;  %v1047_v44 = vpop.f32.mrf.mxu0 }
 0x113   : > { %v1175_v45 = vpop.f32.mrf.mxu1  ;;  %v2191_v46 = vpop.eup %2190  ;;  %1576 = vst [vmem:[%s2573_s14 + $0x40] sm:$0xff] %v2189_v43  ;;  %2216 = vtanh.f32 %v1458_v41  ;;  %v1456_v36 = vadd.f32 %v2553_v3, %v1047_v44 }
 0x114   : > { %v1488_v47 = vadd.f32 %v2553_v3, %v1175_v45  ;;  %v2193_v48 = vpop.eup %2192  ;;  %1608 = vst [vmem:[%s2573_s14 + $0x140] sm:$0xff] %v2191_v46  ;;  %2218 = vtanh.f32 %v1490_v42  ;;  %v2059_v49 = vpop.f32.mrf.mxu0 }
 0x115   : > { %v2091_v50 = vpop.f32.mrf.mxu1  ;;  %v2195_v51 = vpop.eup %2194  ;;  %1579 = vst [vmem:[%s2573_s14 + $0x58] sm:$0xff] %v2193_v48  ;;  %2220 = vtanh.f32 %v1456_v36  ;;  %v1459_v52 = vadd.f32 %v2059_v49, %v2553_v3 }
 0x116   : > { %v1491_v54 = vadd.f32 %v2091_v50, %v2553_v3  ;;  %v2197_v55 = vpop.eup %2196  ;;  %1611 = vst [vmem:[%s2573_s14 + $0x158] sm:$0xff] %v2195_v51  ;;  %2222 = vtanh.f32 %v1488_v47  ;;  %v1050_v53 = vpop.f32.mrf.mxu0 }
 0x117   : > { %v1178_v56 = vpop.f32.mrf.mxu1  ;;  %v2199_v57 = vpop.eup %2198  ;;  %1577 = vst [vmem:[%s2573_s14 + $0x48] sm:$0xff] %v2197_v55  ;;  %2224 = vtanh.f32 %v1459_v52  ;;  %v1457_v58 = vadd.f32 %v2553_v3, %v1050_v53 }
 0x118   : > { %v1489_v59 = vadd.f32 %v2553_v3, %v1178_v56  ;;  %v2201_v61 = vpop.eup %2200  ;;  %1609 = vst [vmem:[%s2573_s14 + $0x148] sm:$0xff] %v2199_v57  ;;  %2226 = vtanh.f32 %v1491_v54  ;;  %v2062_v62 = vpop.f32.mrf.mxu0 }
 0x119   : > { %v2094_v63 = vpop.f32.mrf.mxu1  ;;  %v2203_v0 = vpop.eup %2202  ;;  %1582 = vst [vmem:[%s2573_s14 + $0x70] sm:$0xff] %v2201_v61  ;;  %2228 = vtanh.f32 %v1457_v58  ;;  %v1462_v1 = vadd.f32 %v2062_v62, %v2553_v3 }
 0x11a   : > { %v1494_v2 = vadd.f32 %v2094_v63, %v2553_v3  ;;  %v2205_v4 = vpop.eup %2204  ;;  %1614 = vst [vmem:[%s2573_s14 + $0x170] sm:$0xff] %v2203_v0  ;;  %2230 = vtanh.f32 %v1489_v59  ;;  %v1063_v5 = vpop.f32.mrf.mxu0 }
 0x11b   : > { %v1191_v6 = vpop.f32.mrf.mxu1  ;;  %v2207_v7 = vpop.eup %2206  ;;  %1580 = vst [vmem:[%s2573_s14 + $0x60] sm:$0xff] %v2205_v4  ;;  %2232 = vtanh.f32 %v1462_v1  ;;  %v1460_v8 = vadd.f32 %v2553_v3, %v1063_v5 }
 0x11c   : > { %v1492_v60 = vadd.f32 %v2553_v3, %v1191_v6  ;;  %v2209_v9 = vpop.eup %2208  ;;  %1612 = vst [vmem:[%s2573_s14 + $0x160] sm:$0xff] %v2207_v7  ;;  %2234 = vtanh.f32 %v1494_v2  ;;  %v2063_v10 = vpop.f32.mrf.mxu0 }
 0x11d   : > { %v2095_v11 = vpop.f32.mrf.mxu1  ;;  %v2211_v13 = vpop.eup %2210  ;;  %1583 = vst [vmem:[%s2573_s14 + $0x78] sm:$0xff] %v2209_v9  ;;  %2236 = vtanh.f32 %v1460_v8  ;;  %v1463_v15 = vadd.f32 %v2063_v10, %v2553_v3 }
 0x11e   : > { %v1495_v16 = vadd.f32 %v2095_v11, %v2553_v3  ;;  %v2213_v17 = vpop.eup %2212  ;;  %1615 = vst [vmem:[%s2573_s14 + $0x178] sm:$0xff] %v2211_v13  ;;  %2238 = vtanh.f32 %v1492_v60  ;;  %v1066_v18 = vpop.f32.mrf.mxu0 }
 0x11f   : > { %v1194_v12 = vpop.f32.mrf.mxu1  ;;  %v2215_v19 = vpop.eup %2214  ;;  %1581 = vst [vmem:[%s2573_s14 + $0x68] sm:$0xff] %v2213_v17  ;;  %2240 = vtanh.f32 %v1463_v15  ;;  %v1461_v20 = vadd.f32 %v2553_v3, %v1066_v18 }
 0x120   : > { %v1493_v21 = vadd.f32 %v2553_v3, %v1194_v12  ;;  %v2217_v14 = vpop.eup %2216  ;;  %1613 = vst [vmem:[%s2573_s14 + $0x168] sm:$0xff] %v2215_v19  ;;  %2242 = vtanh.f32 %v1495_v16  ;;  %v2066_v22 = vpop.f32.mrf.mxu0 }
 0x121   : > { %v2098_v23 = vpop.f32.mrf.mxu1  ;;  %v2219_v24 = vpop.eup %2218  ;;  %1586 = vst [vmem:[%s2573_s14 + $0x90] sm:$0xff] %v2217_v14  ;;  %2244 = vtanh.f32 %v1461_v20  ;;  %v1466_v25 = vadd.f32 %v2066_v22, %v2553_v3 }
 0x122   : > { %v1498_v26 = vadd.f32 %v2098_v23, %v2553_v3  ;;  %v2221_v27 = vpop.eup %2220  ;;  %1618 = vst [vmem:[%s2573_s14 + $0x190] sm:$0xff] %v2219_v24  ;;  %2246 = vtanh.f32 %v1493_v21  ;;  %v1079_v28 = vpop.f32.mrf.mxu0 }
 0x123   : > { %v1207_v29 = vpop.f32.mrf.mxu1  ;;  %v2223_v30 = vpop.eup %2222  ;;  %1584 = vst [vmem:[%s2573_s14 + $0x80] sm:$0xff] %v2221_v27  ;;  %2248 = vtanh.f32 %v1466_v25  ;;  %v1464_v31 = vadd.f32 %v2553_v3, %v1079_v28 }
 0x124   : > { %v1496_v32 = vadd.f32 %v2553_v3, %v1207_v29  ;;  %v2225_v33 = vpop.eup %2224  ;;  %1616 = vst [vmem:[%s2573_s14 + $0x180] sm:$0xff] %v2223_v30  ;;  %2250 = vtanh.f32 %v1498_v26  ;;  %v2067_v34 = vpop.f32.mrf.mxu0 }
 0x125   : > { %v2099_v35 = vpop.f32.mrf.mxu1  ;;  %v2227_v37 = vpop.eup %2226  ;;  %1587 = vst [vmem:[%s2573_s14 + $0x98] sm:$0xff] %v2225_v33  ;;  %2252 = vtanh.f32 %v1464_v31  ;;  %v1467_v38 = vadd.f32 %v2067_v34, %v2553_v3 }
 0x126   : > { %v1499_v39 = vadd.f32 %v2099_v35, %v2553_v3  ;;  %v2229_v40 = vpop.eup %2228  ;;  %1619 = vst [vmem:[%s2573_s14 + $0x198] sm:$0xff] %v2227_v37  ;;  %2254 = vtanh.f32 %v1496_v32  ;;  %v1082_v41 = vpop.f32.mrf.mxu0 }
 0x127   : > { %v1210_v42 = vpop.f32.mrf.mxu1  ;;  %v2231_v43 = vpop.eup %2230  ;;  %1585 = vst [vmem:[%s2573_s14 + $0x88] sm:$0xff] %v2229_v40  ;;  %2256 = vtanh.f32 %v1467_v38  ;;  %v1465_v44 = vadd.f32 %v2553_v3, %v1082_v41 }
 0x128   : > { %v1497_v45 = vadd.f32 %v2553_v3, %v1210_v42  ;;  %v2233_v46 = vpop.eup %2232  ;;  %1617 = vst [vmem:[%s2573_s14 + $0x188] sm:$0xff] %v2231_v43  ;;  %2258 = vtanh.f32 %v1499_v39  ;;  %v2070_v36 = vpop.f32.mrf.mxu0 }
 0x129   : > { %v2102_v47 = vpop.f32.mrf.mxu1  ;;  %v2235_v48 = vpop.eup %2234  ;;  %1590 = vst [vmem:[%s2573_s14 + $0xb0] sm:$0xff] %v2233_v46  ;;  %2260 = vtanh.f32 %v1465_v44  ;;  %v1470_v49 = vadd.f32 %v2070_v36, %v2553_v3 }
 0x12a   : > { %v1502_v50 = vadd.f32 %v2102_v47, %v2553_v3  ;;  %v2237_v51 = vpop.eup %2236  ;;  %1622 = vst [vmem:[%s2573_s14 + $0x1b0] sm:$0xff] %v2235_v48  ;;  %2262 = vtanh.f32 %v1497_v45  ;;  %v1095_v52 = vpop.f32.mrf.mxu0 }
 0x12b   : > { %v1223_v54 = vpop.f32.mrf.mxu1  ;;  %v2239_v55 = vpop.eup %2238  ;;  %1588 = vst [vmem:[%s2573_s14 + $0xa0] sm:$0xff] %v2237_v51  ;;  %2264 = vtanh.f32 %v1470_v49  ;;  %v1468_v53 = vadd.f32 %v2553_v3, %v1095_v52 }
 0x12c   : > { %v1500_v56 = vadd.f32 %v2553_v3, %v1223_v54  ;;  %v2241_v57 = vpop.eup %2240  ;;  %1620 = vst [vmem:[%s2573_s14 + $0x1a0] sm:$0xff] %v2239_v55  ;;  %2266 = vtanh.f32 %v1502_v50  ;;  %v2071_v58 = vpop.f32.mrf.mxu0 }
 0x12d   : > { %v2103_v59 = vpop.f32.mrf.mxu1  ;;  %v2243_v61 = vpop.eup %2242  ;;  %1591 = vst [vmem:[%s2573_s14 + $0xb8] sm:$0xff] %v2241_v57  ;;  %2268 = vtanh.f32 %v1468_v53  ;;  %v1471_v62 = vadd.f32 %v2071_v58, %v2553_v3 }
 0x12e   : > { %v1503_v63 = vadd.f32 %v2103_v59, %v2553_v3  ;;  %v2245_v0 = vpop.eup %2244  ;;  %1623 = vst [vmem:[%s2573_s14 + $0x1b8] sm:$0xff] %v2243_v61  ;;  %2270 = vtanh.f32 %v1500_v56  ;;  %v1098_v1 = vpop.f32.mrf.mxu0 }
 0x12f   : > { %v1226_v2 = vpop.f32.mrf.mxu1  ;;  %v2247_v4 = vpop.eup %2246  ;;  %1589 = vst [vmem:[%s2573_s14 + $0xa8] sm:$0xff] %v2245_v0  ;;  %2272 = vtanh.f32 %v1471_v62  ;;  %v1469_v5 = vadd.f32 %v2553_v3, %v1098_v1 }
 0x130   : > { %v1501_v6 = vadd.f32 %v2553_v3, %v1226_v2  ;;  %v2249_v7 = vpop.eup %2248  ;;  %1621 = vst [vmem:[%s2573_s14 + $0x1a8] sm:$0xff] %v2247_v4  ;;  %2274 = vtanh.f32 %v1503_v63 }
 0x131   : > { %v2251_v8 = vpop.eup %2250  ;;  %1594 = vst [vmem:[%s2573_s14 + $0xd0] sm:$0xff] %v2249_v7  ;;  %2276 = vtanh.f32 %v1469_v5 }
 0x132   : > { %v2253_v60 = vpop.eup %2252  ;;  %1626 = vst [vmem:[%s2573_s14 + $0x1d0] sm:$0xff] %v2251_v8  ;;  %2278 = vtanh.f32 %v1501_v6 }
 0x133   : > { %v2255_v9 = vpop.eup %2254  ;;  %1592 = vst [vmem:[%s2573_s14 + $0xc0] sm:$0xff] %v2253_v60 }
 0x134   : > { %v2257_v10 = vpop.eup %2256  ;;  %1624 = vst [vmem:[%s2573_s14 + $0x1c0] sm:$0xff] %v2255_v9 }
 0x135   : > { %v2259_v3 = vpop.eup %2258  ;;  %1595 = vst [vmem:[%s2573_s14 + $0xd8] sm:$0xff] %v2257_v10 }
 0x136   : > { %v2261_v11 = vpop.eup %2260  ;;  %1627 = vst [vmem:[%s2573_s14 + $0x1d8] sm:$0xff] %v2259_v3 }
 0x137   : > { %v2263_v13 = vpop.eup %2262  ;;  %1593 = vst [vmem:[%s2573_s14 + $0xc8] sm:$0xff] %v2261_v11 }
 0x138   : > { %v2265_v15 = vpop.eup %2264  ;;  %1625 = vst [vmem:[%s2573_s14 + $0x1c8] sm:$0xff] %v2263_v13 }
 0x139   : > { %v2267_v16 = vpop.eup %2266  ;;  %1598 = vst [vmem:[%s2573_s14 + $0xf0] sm:$0xff] %v2265_v15 }
 0x13a   : > { %v2269_v17 = vpop.eup %2268  ;;  %1630 = vst [vmem:[%s2573_s14 + $0x1f0] sm:$0xff] %v2267_v16 }
 0x13b   : > { %v2271_v18 = vpop.eup %2270  ;;  %1596 = vst [vmem:[%s2573_s14 + $0xe0] sm:$0xff] %v2269_v17 }
 0x13c   : > { %v2273_v12 = vpop.eup %2272  ;;  %1628 = vst [vmem:[%s2573_s14 + $0x1e0] sm:$0xff] %v2271_v18 }
 0x13d   : > { %v2275_v19 = vpop.eup %2274  ;;  %1599 = vst [vmem:[%s2573_s14 + $0xf8] sm:$0xff] %v2273_v12 }
 0x13e   : > { %v2277_v20 = vpop.eup %2276  ;;  %1631 = vst [vmem:[%s2573_s14 + $0x1f8] sm:$0xff] %v2275_v19 }
 0x13f   : > { %v2279_v21 = vpop.eup %2278  ;;  %1597 = vst [vmem:[%s2573_s14 + $0xe8] sm:$0xff] %v2277_v20 }
 0x140   : > { %1629 = vst [vmem:[%s2573_s14 + $0x1e8] sm:$0xff] %v2279_v21 }
 0x141 PF: > { %s15_s20 = sadd.s32 1, %s2302_s20   ;;  %s2704_s18 = smov %s2298_s19 }
 0x142   : > { %p12_p5 = scmp.ge.s32.totalorder %s15_s20, 6   ;;  %s2705_s19 = smov %s2707_s21 }
 0x144   :  { %14 = sbr.rel (!%p12_p5) target bundleno = 2 (0x2), region = 90 }

</bundles_post_ra>
